<compile_context>
chip_gen: v5e
topology: v5e:2x2
jax: 0.10.0
libtpu: 0.0.40
codegen_flags: <defaults>
</compile_context>

<pallas_src>
import functools
import math

import jax
import jax.numpy as jnp
from jax import lax
from jax.experimental import pallas as pl
from jax.experimental.pallas import tpu as pltpu


def _round_up(x, m):
    return ((x + m - 1) // m) * m


def _sepconv_kernel(x_hbm, wdw_ref, wpw_ref, shift_ref, o_ref,
                    buf, sem, dw_ref, *, activation: bool):
    """Grid = (N, n_strips); one TH-row output strip per step.

    x_hbm:     (N, Hp+2, WH, Cin_p)   padded NHWC input, left in HBM (pl.ANY)
    wdw_ref:   (9, Cin_p)             depthwise 3x3 weights, row = kh*3 + kw
    wpw_ref:   (Cin_p, Cout_p)        pointwise weights with BN scale folded in
    shift_ref: (1, Cout_p)            folded bias + BN shift
    o_ref:     (1, TH, Wp, Cout_p)    output strip (lane-dense last dim)
    buf:       (2, TH+2, WH, Cin_p)   VMEM double buffer for input strips (with halo)
    sem:       DMA semaphores (2,)
    dw_ref:    (TH*Wp, Cin_p)         VMEM scratch holding the depthwise result
    """
    n = pl.program_id(0)
    i = pl.program_id(1)
    n_strips = pl.num_programs(1)

    TH = buf.shape[1] - 2
    cin_p = buf.shape[3]
    Wp = dw_ref.shape[0] // TH
    cout_p = o_ref.shape[3]

    def start_fetch(strip, slot):
        row0 = pl.multiple_of(strip * TH, TH)
        pltpu.make_async_copy(
            x_hbm.at[n, pl.ds(row0, TH + 2)],
            buf.at[slot],
            sem.at[slot],
        ).start()

    # Prime the pipeline at the first strip of each batch image.
    @pl.when(i == 0)
    def _():
        start_fetch(0, 0)

    # Prefetch the next strip while this one is being computed.
    @pl.when(i + 1 < n_strips)
    def _():
        start_fetch(i + 1, (i + 1) % 2)

    slot = i % 2
    row0 = pl.multiple_of(i * TH, TH)
    pltpu.make_async_copy(
        x_hbm.at[n, pl.ds(row0, TH + 2)], buf.at[slot], sem.at[slot]
    ).wait()

    # Hoist the 9 per-tap weight rows out of the row loop.
    w = [wdw_ref[k].astype(jnp.float32) for k in range(9)]  # each (Cin_p,)

    def depthwise(s):
        # s is a static Python slot index -> all ref loads below are static & aligned
        # (the shifted combines happen on values, not refs).
        for r in range(TH):
            cs0 = cs1 = cs2 = None
            for kh in range(3):
                row = buf[s, r + kh].astype(jnp.float32)       # (WH, Cin_p), aligned load
                t0 = row * w[kh * 3 + 0]
                t1 = row * w[kh * 3 + 1]
                t2 = row * w[kh * 3 + 2]
                cs0 = t0 if cs0 is None else cs0 + t0
                cs1 = t1 if cs1 is None else cs1 + t1
                cs2 = t2 if cs2 is None else cs2 + t2
            # Horizontal taps: only 3 sublane-shifted slices per row (was 9 shifted loads).
            dw_ref[r * Wp:(r + 1) * Wp, :] = (
                cs0[0:Wp, :] + cs1[1:1 + Wp, :] + cs2[2:2 + Wp, :])

    @pl.when(slot == 0)
    def _():
        depthwise(0)

    @pl.when(slot == 1)
    def _():
        depthwise(1)

    # Pointwise 1x1 conv (+ folded BN scale) on the MXU: (TH*Wp, Cin_p) x (Cin_p, Cout_p).
    y = jnp.dot(dw_ref[...], wpw_ref[...], preferred_element_type=jnp.float32)
    y = y + shift_ref[...].astype(jnp.float32)        # folded bias + BN shift

    if activation:                                    # Swish
        y = y * jax.nn.sigmoid(y)

    o_ref[0] = y.reshape(TH, Wp, cout_p).astype(o_ref.dtype)


def separable_conv_block(x_nchw, params, *, norm=True, activation=False, row_tile=8):
    """Forward pass of SeparableConvBlock. Input/output in NCHW (PyTorch layout)."""
    wdw = params["dw_weight"]        # (Cin, 3, 3)
    wpw = params["pw_weight"]        # (Cout, Cin)
    bias = params["pw_bias"]         # (Cout,)
    gamma = params["bn_gamma"]       # (Cout,)
    beta = params["bn_beta"]         # (Cout,)
    rmean = params["bn_mean"]        # (Cout,)
    rvar = params["bn_var"]          # (Cout,)
    eps = 1e-3

    N, cin, H, W = x_nchw.shape
    cout = wpw.shape[0]

    LANE, SUB = 128, 8
    cin_p = _round_up(cin, LANE)      # lane-dense input channels
    cout_p = _round_up(cout, LANE)    # lane-dense output channels (unmasked vst)
    Wp = _round_up(W, SUB)            # sublane-aligned output width
    WH = Wp + SUB                     # buffer width incl. 1-px halo, sublane-aligned

    # Row-strip size: shrink to fit a modest VMEM budget, then grow (up to 16 rows) when
    # it divides H evenly, to amortize per-step overhead and enlarge the matmul M dim.
    BUDGET = 6 * 1024 * 1024
    def _footprint(th):
        return 4 * (2 * (th + 2) * WH * cin_p          # double-buffered input strip
                    + th * Wp * cin_p                  # depthwise scratch
                    + 2 * th * Wp * cout_p)            # double-buffered output strip

    TH = max(1, int(row_tile))
    while TH > 1 and _footprint(TH) > BUDGET:
        TH //= 2
    while TH < 16 and TH * 2 <= H and H % (TH * 2) == 0 and _footprint(TH * 2) <= BUDGET:
        TH *= 2
    Hp = _round_up(H, TH)
    n_strips = Hp // TH

    # --- wrapper glue (single pad pass: spatial halo + alignment + channel lane-pad) ---
    x_nhwc = jnp.transpose(x_nchw, (0, 2, 3, 1))
    x_pad = jnp.pad(
        x_nhwc,
        ((0, 0), (1, 1 + Hp - H), (1, WH - 1 - W), (0, cin_p - cin)))
    # shape (N, Hp+2, WH, cin_p); extra zero rows/cols/channels are sliced off below.

    wdw_k = jnp.pad(
        jnp.transpose(wdw, (1, 2, 0)).reshape(9, cin),
        ((0, 0), (0, cin_p - cin))).astype(jnp.float32)              # (9, Cin_p)

    # Fold BN (inference) into the pointwise weights and a single shift vector.
    if norm:
        scale = gamma / jnp.sqrt(rvar + eps)
        shift = bias * scale + beta - rmean * scale
    else:
        scale = jnp.ones_like(bias)
        shift = bias
    wpw_folded = jnp.transpose(wpw, (1, 0)) * scale[None, :]          # (Cin, Cout)
    wpw_k = jnp.pad(wpw_folded,
                    ((0, cin_p - cin), (0, cout_p - cout))).astype(jnp.float32)
    shift_k = jnp.pad(shift, (0, cout_p - cout)).reshape(1, cout_p).astype(jnp.float32)

    kernel = functools.partial(_sepconv_kernel, activation=activation)

    out_pad = pl.pallas_call(
        kernel,
        out_shape=jax.ShapeDtypeStruct((N, Hp, Wp, cout_p), x_nchw.dtype),
        grid_spec=pltpu.PrefetchScalarGridSpec(
            num_scalar_prefetch=0,
            grid=(N, n_strips),
            in_specs=[
                pl.BlockSpec(memory_space=pl.ANY),                       # x stays in HBM
                pl.BlockSpec((9, cin_p), lambda n, i: (0, 0)),           # resident weights
                pl.BlockSpec((cin_p, cout_p), lambda n, i: (0, 0)),
                pl.BlockSpec((1, cout_p), lambda n, i: (0, 0)),
            ],
            out_specs=pl.BlockSpec((1, TH, Wp, cout_p), lambda n, i: (n, i, 0, 0)),
            scratch_shapes=[
                pltpu.VMEM((2, TH + 2, WH, cin_p), x_pad.dtype),
                pltpu.SemaphoreType.DMA((2,)),
                pltpu.VMEM((TH * Wp, cin_p), jnp.float32),
            ]),
        compiler_params=pltpu.CompilerParams(
            dimension_semantics=("parallel", "arbitrary"),
            vmem_limit_bytes=32 * 1024 * 1024),
    )(x_pad, wdw_k, wpw_k, shift_k)

    out = out_pad[:, :H, :W, :cout]
    return jnp.transpose(out, (0, 3, 1, 2))   # back to NCHW


def _reference(x_nchw, params, *, norm=True, activation=False):
    """Independent pure-JAX reference (lax.conv) for validation."""
    wdw = params["dw_weight"]   # (Cin, 3, 3)
    wpw = params["pw_weight"]   # (Cout, Cin)
    cin = x_nchw.shape[1]
    cout = wpw.shape[0]
    eps = 1e-3

    dw_oihw = wdw.reshape(cin, 1, 3, 3)
    dw = lax.conv_general_dilated(
        x_nchw, dw_oihw, window_strides=(1, 1), padding=((1, 1), (1, 1)),
        feature_group_count=cin, dimension_numbers=("NCHW", "OIHW", "NCHW"))
    pw_oihw = wpw.reshape(cout, cin, 1, 1)
    y = lax.conv_general_dilated(
        dw, pw_oihw, window_strides=(1, 1), padding="VALID",
        dimension_numbers=("NCHW", "OIHW", "NCHW"))
    y = y + params["pw_bias"][None, :, None, None]
    if norm:
        scale = params["bn_gamma"] / jnp.sqrt(params["bn_var"] + eps)
        shift = params["bn_beta"] - params["bn_mean"] * scale
        y = y * scale[None, :, None, None] + shift[None, :, None, None]
    if activation:
        y = y * jax.nn.sigmoid(y)
    return y


def _init_params(key, cin, cout):
    ks = jax.random.split(key, 6)
    dw_w = jax.random.normal(ks[0], (cin, 3, 3), jnp.float32) / math.sqrt(9.0)
    pw_w = jax.random.normal(ks[1], (cout, cin), jnp.float32) / math.sqrt(cin)
    pw_b = jax.random.normal(ks[2], (cout,), jnp.float32) * 0.1
    gamma = 1.0 + 0.1 * jax.random.normal(ks[3], (cout,), jnp.float32)
    beta = 0.1 * jax.random.normal(ks[4], (cout,), jnp.float32)
    rmean = 0.1 * jax.random.normal(ks[5], (cout,), jnp.float32)
    rvar = jnp.ones((cout,), jnp.float32)
    return dict(dw_weight=dw_w, pw_weight=pw_w, pw_bias=pw_b,
                bn_gamma=gamma, bn_beta=beta, bn_mean=rmean, bn_var=rvar)


if __name__ == "__main__":
    N, Cin, H, W = 2, 4, 16, 16
    Cout = 8

    key = jax.random.PRNGKey(0)
    kx, kp = jax.random.split(key)
    x = jax.random.normal(kx, (N, Cin, H, W), jnp.float32)
    params = _init_params(kp, Cin, Cout)

    ok = True
    for norm, act in ((True, False), (True, True), (False, True)):
        out = separable_conv_block(x, params, norm=norm, activation=act)
        out = jax.block_until_ready(out)
        ref = _reference(x, params, norm=norm, activation=act)
        if not jnp.allclose(out, ref, atol=1e-4, rtol=1e-4):
            ok = False
            print("mismatch for norm=%s act=%s, max err=%e"
                  % (norm, act, float(jnp.max(jnp.abs(out - ref)))))

    if ok:
        print("KERNEL_OK")
</pallas_src>

<mosaic_0001>
module attributes {stable_mosaic.version = 11 : i64} {
  func.func @_sepconv_kernel(%arg0: i32, %arg1: i32, %arg2: memref<2x18x24x128xf32, #tpu.memory_space<any>>, %arg3: memref<9x128xf32, #tpu.memory_space<vmem>>, %arg4: memref<128x128xf32, #tpu.memory_space<vmem>>, %arg5: memref<1x128xf32, #tpu.memory_space<vmem>>, %arg6: memref<1x16x16x128xf32, #tpu.memory_space<vmem>>, %arg7: memref<2x18x24x128xf32, #tpu.memory_space<vmem>>, %arg8: memref<2x!tpu.dma_semaphore, #tpu.memory_space<semaphore_mem>>, %arg9: memref<256x128xf32, #tpu.memory_space<vmem>>) attributes {dimension_semantics = [#tpu.dimension_semantics<parallel>, #tpu.dimension_semantics<arbitrary>], iteration_bounds = array<i64: 2, 1>, scalar_prefetch = 0 : i64, scratch_operands = 3 : i64, tpu.core_type = #tpu.core_type<tc>, window_params = [{}, {pipeline_mode = #tpu.pipeline_mode<synchronous>, transform_indices = @transform_1, window_bounds = array<i64: 9, 128>}, {pipeline_mode = #tpu.pipeline_mode<synchronous>, transform_indices = @transform_2, window_bounds = array<i64: 128, 128>}, {pipeline_mode = #tpu.pipeline_mode<synchronous>, transform_indices = @transform_3, window_bounds = array<i64: 1, 128>}, {transform_indices = @transform_4, window_bounds = array<i64: 1, 16, 16, 128>}]} {
    %c0_i32 = arith.constant 0 : i32
    %0 = arith.cmpi eq, %arg1, %c0_i32 : i32
    %1 = arith.extui %0 : i1 to i32
    %c0_i32_0 = arith.constant 0 : i32
    %2 = arith.cmpi ne, %1, %c0_i32_0 : i32
    scf.if %2 {
      %c0_i32_36 = arith.constant 0 : i32
      %59 = tpu.assume_multiple %c0_i32_36, 16 : i32
      %c0_i32_37 = arith.constant 0 : i32
      %c0_i32_38 = arith.constant 0 : i32
      %c0_i32_39 = arith.constant 0 : i32
      %c0_i32_40 = arith.constant 0 : i32
      %60 = tpu.memref_slice %arg2[%arg0, %59, %c0_i32_39, %c0_i32_40] : memref<2x18x24x128xf32, #tpu.memory_space<any>> -> memref<1x18x24x128xf32, #tpu.memory_space<any>>
      %61 = tpu.memref_squeeze %60 : memref<1x18x24x128xf32, #tpu.memory_space<any>> -> memref<18x24x128xf32, #tpu.memory_space<any>>
      %c0_i32_41 = arith.constant 0 : i32
      %c0_i32_42 = arith.constant 0 : i32
      %c0_i32_43 = arith.constant 0 : i32
      %62 = tpu.memref_slice %arg7[%c0_i32_37, %c0_i32_41, %c0_i32_42, %c0_i32_43] : memref<2x18x24x128xf32, #tpu.memory_space<vmem>> -> memref<1x18x24x128xf32, #tpu.memory_space<vmem>>
      %63 = tpu.memref_squeeze %62 : memref<1x18x24x128xf32, #tpu.memory_space<vmem>> -> memref<18x24x128xf32, #tpu.memory_space<vmem>>
      %64 = tpu.memref_slice %arg8[%c0_i32_38] : memref<2x!tpu.dma_semaphore, #tpu.memory_space<semaphore_mem>> -> memref<1x!tpu.dma_semaphore, #tpu.memory_space<semaphore_mem>>
      %65 = tpu.memref_squeeze %64 : memref<1x!tpu.dma_semaphore, #tpu.memory_space<semaphore_mem>> -> memref<!tpu.dma_semaphore, #tpu.memory_space<semaphore_mem>>
      tpu.enqueue_dma source(%61 : memref<18x24x128xf32, #tpu.memory_space<any>>) target(%63 : memref<18x24x128xf32, #tpu.memory_space<vmem>>) target_semaphore(%65 : memref<!tpu.dma_semaphore, #tpu.memory_space<semaphore_mem>>)
    } else {
    }
    %c1_i32 = arith.constant 1 : i32
    %3 = arith.addi %arg1, %c1_i32 : i32
    %c1_i32_1 = arith.constant 1 : i32
    %4 = arith.cmpi slt, %3, %c1_i32_1 : i32
    %5 = arith.extui %4 : i1 to i32
    %c0_i32_2 = arith.constant 0 : i32
    %6 = arith.cmpi ne, %5, %c0_i32_2 : i32
    scf.if %6 {
      %c1_i32_36 = arith.constant 1 : i32
      %59 = arith.addi %arg1, %c1_i32_36 : i32
      %c1_i32_37 = arith.constant 1 : i32
      %60 = arith.addi %arg1, %c1_i32_37 : i32
      %c2_i32_38 = arith.constant 2 : i32
      %c0_i32_39 = arith.constant 0 : i32
      %61 = arith.cmpi eq, %c2_i32_38, %c0_i32_39 : i32
      %c1_i32_40 = arith.constant 1 : i32
      %62 = arith.select %61, %c1_i32_40, %c2_i32_38 : i32
      %63 = arith.remsi %60, %62 : i32
      %c0_i32_41 = arith.constant 0 : i32
      %64 = arith.cmpi ne, %63, %c0_i32_41 : i32
      %c0_i32_42 = arith.constant 0 : i32
      %65 = arith.cmpi slt, %63, %c0_i32_42 : i32
      %c0_i32_43 = arith.constant 0 : i32
      %66 = arith.cmpi slt, %62, %c0_i32_43 : i32
      %67 = arith.xori %65, %66 : i1
      %68 = arith.andi %67, %64 : i1
      %69 = arith.addi %63, %62 : i32
      %70 = arith.select %68, %69, %63 : i32
      %c16_i32_44 = arith.constant 16 : i32
      %71 = arith.muli %59, %c16_i32_44 : i32
      %72 = tpu.assume_multiple %71, 16 : i32
      %c0_i32_45 = arith.constant 0 : i32
      %c0_i32_46 = arith.constant 0 : i32
      %73 = tpu.memref_slice %arg2[%arg0, %72, %c0_i32_45, %c0_i32_46] : memref<2x18x24x128xf32, #tpu.memory_space<any>> -> memref<1x18x24x128xf32, #tpu.memory_space<any>>
      %74 = tpu.memref_squeeze %73 : memref<1x18x24x128xf32, #tpu.memory_space<any>> -> memref<18x24x128xf32, #tpu.memory_space<any>>
      %c0_i32_47 = arith.constant 0 : i32
      %c0_i32_48 = arith.constant 0 : i32
      %c0_i32_49 = arith.constant 0 : i32
      %75 = tpu.memref_slice %arg7[%70, %c0_i32_47, %c0_i32_48, %c0_i32_49] : memref<2x18x24x128xf32, #tpu.memory_space<vmem>> -> memref<1x18x24x128xf32, #tpu.memory_space<vmem>>
      %76 = tpu.memref_squeeze %75 : memref<1x18x24x128xf32, #tpu.memory_space<vmem>> -> memref<18x24x128xf32, #tpu.memory_space<vmem>>
      %77 = tpu.memref_slice %arg8[%70] : memref<2x!tpu.dma_semaphore, #tpu.memory_space<semaphore_mem>> -> memref<1x!tpu.dma_semaphore, #tpu.memory_space<semaphore_mem>>
      %78 = tpu.memref_squeeze %77 : memref<1x!tpu.dma_semaphore, #tpu.memory_space<semaphore_mem>> -> memref<!tpu.dma_semaphore, #tpu.memory_space<semaphore_mem>>
      tpu.enqueue_dma source(%74 : memref<18x24x128xf32, #tpu.memory_space<any>>) target(%76 : memref<18x24x128xf32, #tpu.memory_space<vmem>>) target_semaphore(%78 : memref<!tpu.dma_semaphore, #tpu.memory_space<semaphore_mem>>)
    } else {
    }
    %c2_i32 = arith.constant 2 : i32
    %c0_i32_3 = arith.constant 0 : i32
    %7 = arith.cmpi eq, %c2_i32, %c0_i32_3 : i32
    %c1_i32_4 = arith.constant 1 : i32
    %8 = arith.select %7, %c1_i32_4, %c2_i32 : i32
    %9 = arith.remsi %arg1, %8 : i32
    %c0_i32_5 = arith.constant 0 : i32
    %10 = arith.cmpi ne, %9, %c0_i32_5 : i32
    %c0_i32_6 = arith.constant 0 : i32
    %11 = arith.cmpi slt, %9, %c0_i32_6 : i32
    %c0_i32_7 = arith.constant 0 : i32
    %12 = arith.cmpi slt, %8, %c0_i32_7 : i32
    %13 = arith.xori %11, %12 : i1
    %14 = arith.andi %13, %10 : i1
    %15 = arith.addi %9, %8 : i32
    %16 = arith.select %14, %15, %9 : i32
    %c16_i32 = arith.constant 16 : i32
    %17 = arith.muli %arg1, %c16_i32 : i32
    %18 = tpu.assume_multiple %17, 16 : i32
    %c0_i32_8 = arith.constant 0 : i32
    %c0_i32_9 = arith.constant 0 : i32
    %19 = tpu.memref_slice %arg2[%arg0, %18, %c0_i32_8, %c0_i32_9] : memref<2x18x24x128xf32, #tpu.memory_space<any>> -> memref<1x18x24x128xf32, #tpu.memory_space<any>>
    %20 = tpu.memref_squeeze %19 : memref<1x18x24x128xf32, #tpu.memory_space<any>> -> memref<18x24x128xf32, #tpu.memory_space<any>>
    %c0_i32_10 = arith.constant 0 : i32
    %c0_i32_11 = arith.constant 0 : i32
    %c0_i32_12 = arith.constant 0 : i32
    %21 = tpu.memref_slice %arg7[%16, %c0_i32_10, %c0_i32_11, %c0_i32_12] : memref<2x18x24x128xf32, #tpu.memory_space<vmem>> -> memref<1x18x24x128xf32, #tpu.memory_space<vmem>>
    %22 = tpu.memref_squeeze %21 : memref<1x18x24x128xf32, #tpu.memory_space<vmem>> -> memref<18x24x128xf32, #tpu.memory_space<vmem>>
    %23 = tpu.memref_slice %arg8[%16] : memref<2x!tpu.dma_semaphore, #tpu.memory_space<semaphore_mem>> -> memref<1x!tpu.dma_semaphore, #tpu.memory_space<semaphore_mem>>
    %24 = tpu.memref_squeeze %23 : memref<1x!tpu.dma_semaphore, #tpu.memory_space<semaphore_mem>> -> memref<!tpu.dma_semaphore, #tpu.memory_space<semaphore_mem>>
    tpu.wait_dma2 semaphore(%24 : memref<!tpu.dma_semaphore, #tpu.memory_space<semaphore_mem>>) src(%20 : memref<18x24x128xf32, #tpu.memory_space<any>>) dst(%22 : memref<18x24x128xf32, #tpu.memory_space<vmem>>)
    %c0 = arith.constant 0 : index
    %c0_13 = arith.constant 0 : index
    %25 = vector.load %arg3[%c0, %c0_13] : memref<9x128xf32, #tpu.memory_space<vmem>>, vector<1x128xf32>
    %26 = vector.shape_cast %25 : vector<1x128xf32> to vector<128xf32>
    %c1 = arith.constant 1 : index
    %c0_14 = arith.constant 0 : index
    %27 = vector.load %arg3[%c1, %c0_14] : memref<9x128xf32, #tpu.memory_space<vmem>>, vector<1x128xf32>
    %28 = vector.shape_cast %27 : vector<1x128xf32> to vector<128xf32>
    %c2 = arith.constant 2 : index
    %c0_15 = arith.constant 0 : index
    %29 = vector.load %arg3[%c2, %c0_15] : memref<9x128xf32, #tpu.memory_space<vmem>>, vector<1x128xf32>
    %30 = vector.shape_cast %29 : vector<1x128xf32> to vector<128xf32>
    %c3 = arith.constant 3 : index
    %c0_16 = arith.constant 0 : index
    %31 = vector.load %arg3[%c3, %c0_16] : memref<9x128xf32, #tpu.memory_space<vmem>>, vector<1x128xf32>
    %32 = vector.shape_cast %31 : vector<1x128xf32> to vector<128xf32>
    %c4 = arith.constant 4 : index
    %c0_17 = arith.constant 0 : index
    %33 = vector.load %arg3[%c4, %c0_17] : memref<9x128xf32, #tpu.memory_space<vmem>>, vector<1x128xf32>
    %34 = vector.shape_cast %33 : vector<1x128xf32> to vector<128xf32>
    %c5 = arith.constant 5 : index
    %c0_18 = arith.constant 0 : index
    %35 = vector.load %arg3[%c5, %c0_18] : memref<9x128xf32, #tpu.memory_space<vmem>>, vector<1x128xf32>
    %36 = vector.shape_cast %35 : vector<1x128xf32> to vector<128xf32>
    %c6 = arith.constant 6 : index
    %c0_19 = arith.constant 0 : index
    %37 = vector.load %arg3[%c6, %c0_19] : memref<9x128xf32, #tpu.memory_space<vmem>>, vector<1x128xf32>
    %38 = vector.shape_cast %37 : vector<1x128xf32> to vector<128xf32>
    %c7 = arith.constant 7 : index
    %c0_20 = arith.constant 0 : index
    %39 = vector.load %arg3[%c7, %c0_20] : memref<9x128xf32, #tpu.memory_space<vmem>>, vector<1x128xf32>
    %40 = vector.shape_cast %39 : vector<1x128xf32> to vector<128xf32>
    %c8 = arith.constant 8 : index
    %c0_21 = arith.constant 0 : index
    %41 = vector.load %arg3[%c8, %c0_21] : memref<9x128xf32, #tpu.memory_space<vmem>>, vector<1x128xf32>
    %42 = vector.shape_cast %41 : vector<1x128xf32> to vector<128xf32>
    %c0_i32_22 = arith.constant 0 : i32
    %43 = arith.cmpi eq, %16, %c0_i32_22 : i32
    %44 = arith.extui %43 : i1 to i32
    %c0_i32_23 = arith.constant 0 : i32
    %45 = arith.cmpi ne, %44, %c0_i32_23 : i32
    scf.if %45 {
      %c0_36 = arith.constant 0 : index
      %c0_37 = arith.constant 0 : index
      %c0_38 = arith.constant 0 : index
      %c0_39 = arith.constant 0 : index
      %59 = vector.load %arg7[%c0_36, %c0_37, %c0_38, %c0_39] : memref<2x18x24x128xf32, #tpu.memory_space<vmem>>, vector<1x1x24x128xf32>
      %60 = vector.shape_cast %59 : vector<1x1x24x128xf32> to vector<24x128xf32>
      %61 = vector.shape_cast %26 : vector<128xf32> to vector<1x128xf32>
      %62 = vector.broadcast %61 : vector<1x128xf32> to vector<24x128xf32>
      %63 = arith.mulf %60, %62 : vector<24x128xf32>
      %64 = vector.shape_cast %28 : vector<128xf32> to vector<1x128xf32>
      %65 = vector.broadcast %64 : vector<1x128xf32> to vector<24x128xf32>
      %66 = arith.mulf %60, %65 : vector<24x128xf32>
      %67 = vector.shape_cast %30 : vector<128xf32> to vector<1x128xf32>
      %68 = vector.broadcast %67 : vector<1x128xf32> to vector<24x128xf32>
      %69 = arith.mulf %60, %68 : vector<24x128xf32>
      %c0_40 = arith.constant 0 : index
      %c1_41 = arith.constant 1 : index
      %c0_42 = arith.constant 0 : index
      %c0_43 = arith.constant 0 : index
      %70 = vector.load %arg7[%c0_40, %c1_41, %c0_42, %c0_43] : memref<2x18x24x128xf32, #tpu.memory_space<vmem>>, vector<1x1x24x128xf32>
      %71 = vector.shape_cast %70 : vector<1x1x24x128xf32> to vector<24x128xf32>
      %72 = vector.shape_cast %32 : vector<128xf32> to vector<1x128xf32>
      %73 = vector.broadcast %72 : vector<1x128xf32> to vector<24x128xf32>
      %74 = arith.mulf %71, %73 : vector<24x128xf32>
      %75 = vector.shape_cast %34 : vector<128xf32> to vector<1x128xf32>
      %76 = vector.broadcast %75 : vector<1x128xf32> to vector<24x128xf32>
      %77 = arith.mulf %71, %76 : vector<24x128xf32>
      %78 = vector.shape_cast %36 : vector<128xf32> to vector<1x128xf32>
      %79 = vector.broadcast %78 : vector<1x128xf32> to vector<24x128xf32>
      %80 = arith.mulf %71, %79 : vector<24x128xf32>
      %81 = arith.addf %63, %74 : vector<24x128xf32>
      %82 = arith.addf %66, %77 : vector<24x128xf32>
      %83 = arith.addf %69, %80 : vector<24x128xf32>
      %c0_44 = arith.constant 0 : index
      %c2_45 = arith.constant 2 : index
      %c0_46 = arith.constant 0 : index
      %c0_47 = arith.constant 0 : index
      %84 = vector.load %arg7[%c0_44, %c2_45, %c0_46, %c0_47] : memref<2x18x24x128xf32, #tpu.memory_space<vmem>>, vector<1x1x24x128xf32>
      %85 = vector.shape_cast %84 : vector<1x1x24x128xf32> to vector<24x128xf32>
      %86 = vector.shape_cast %38 : vector<128xf32> to vector<1x128xf32>
      %87 = vector.broadcast %86 : vector<1x128xf32> to vector<24x128xf32>
      %88 = arith.mulf %85, %87 : vector<24x128xf32>
      %89 = vector.shape_cast %40 : vector<128xf32> to vector<1x128xf32>
      %90 = vector.broadcast %89 : vector<1x128xf32> to vector<24x128xf32>
      %91 = arith.mulf %85, %90 : vector<24x128xf32>
      %92 = vector.shape_cast %42 : vector<128xf32> to vector<1x128xf32>
      %93 = vector.broadcast %92 : vector<1x128xf32> to vector<24x128xf32>
      %94 = arith.mulf %85, %93 : vector<24x128xf32>
      %95 = arith.addf %81, %88 : vector<24x128xf32>
      %96 = arith.addf %82, %91 : vector<24x128xf32>
      %97 = arith.addf %83, %94 : vector<24x128xf32>
      %98 = vector.extract_strided_slice %95 {offsets = [0, 0], sizes = [16, 128], strides = [1, 1]} : vector<24x128xf32> to vector<16x128xf32>
      %99 = vector.extract_strided_slice %96 {offsets = [1, 0], sizes = [16, 128], strides = [1, 1]} : vector<24x128xf32> to vector<16x128xf32>
      %100 = arith.addf %98, %99 : vector<16x128xf32>
      %101 = vector.extract_strided_slice %97 {offsets = [2, 0], sizes = [16, 128], strides = [1, 1]} : vector<24x128xf32> to vector<16x128xf32>
      %102 = arith.addf %100, %101 : vector<16x128xf32>
      %c0_48 = arith.constant 0 : index
      %c0_49 = arith.constant 0 : index
      %103 = vector.load %arg9[%c0_48, %c0_49] : memref<256x128xf32, #tpu.memory_space<vmem>>, vector<16x128xf32>
      tpu.vector_store %arg9[%c0_48, %c0_49], %102 {strides = array<i32>} : memref<256x128xf32, #tpu.memory_space<vmem>>, vector<16x128xf32>,
      %c0_50 = arith.constant 0 : index
      %c1_51 = arith.constant 1 : index
      %c0_52 = arith.constant 0 : index
      %c0_53 = arith.constant 0 : index
      %104 = vector.load %arg7[%c0_50, %c1_51, %c0_52, %c0_53] : memref<2x18x24x128xf32, #tpu.memory_space<vmem>>, vector<1x1x24x128xf32>
      %105 = vector.shape_cast %104 : vector<1x1x24x128xf32> to vector<24x128xf32>
      %106 = vector.shape_cast %26 : vector<128xf32> to vector<1x128xf32>
      %107 = vector.broadcast %106 : vector<1x128xf32> to vector<24x128xf32>
      %108 = arith.mulf %105, %107 : vector<24x128xf32>
      %109 = vector.shape_cast %28 : vector<128xf32> to vector<1x128xf32>
      %110 = vector.broadcast %109 : vector<1x128xf32> to vector<24x128xf32>
      %111 = arith.mulf %105, %110 : vector<24x128xf32>
      %112 = vector.shape_cast %30 : vector<128xf32> to vector<1x128xf32>
      %113 = vector.broadcast %112 : vector<1x128xf32> to vector<24x128xf32>
      %114 = arith.mulf %105, %113 : vector<24x128xf32>
      %c0_54 = arith.constant 0 : index
      %c2_55 = arith.constant 2 : index
      %c0_56 = arith.constant 0 : index
      %c0_57 = arith.constant 0 : index
      %115 = vector.load %arg7[%c0_54, %c2_55, %c0_56, %c0_57] : memref<2x18x24x128xf32, #tpu.memory_space<vmem>>, vector<1x1x24x128xf32>
      %116 = vector.shape_cast %115 : vector<1x1x24x128xf32> to vector<24x128xf32>
      %117 = vector.shape_cast %32 : vector<128xf32> to vector<1x128xf32>
      %118 = vector.broadcast %117 : vector<1x128xf32> to vector<24x128xf32>
      %119 = arith.mulf %116, %118 : vector<24x128xf32>
      %120 = vector.shape_cast %34 : vector<128xf32> to vector<1x128xf32>
      %121 = vector.broadcast %120 : vector<1x128xf32> to vector<24x128xf32>
      %122 = arith.mulf %116, %121 : vector<24x128xf32>
      %123 = vector.shape_cast %36 : vector<128xf32> to vector<1x128xf32>
      %124 = vector.broadcast %123 : vector<1x128xf32> to vector<24x128xf32>
      %125 = arith.mulf %116, %124 : vector<24x128xf32>
      %126 = arith.addf %108, %119 : vector<24x128xf32>
      %127 = arith.addf %111, %122 : vector<24x128xf32>
      %128 = arith.addf %114, %125 : vector<24x128xf32>
      %c0_58 = arith.constant 0 : index
      %c3_59 = arith.constant 3 : index
      %c0_60 = arith.constant 0 : index
      %c0_61 = arith.constant 0 : index
      %129 = vector.load %arg7[%c0_58, %c3_59, %c0_60, %c0_61] : memref<2x18x24x128xf32, #tpu.memory_space<vmem>>, vector<1x1x24x128xf32>
      %130 = vector.shape_cast %129 : vector<1x1x24x128xf32> to vector<24x128xf32>
      %131 = vector.shape_cast %38 : vector<128xf32> to vector<1x128xf32>
      %132 = vector.broadcast %131 : vector<1x128xf32> to vector<24x128xf32>
      %133 = arith.mulf %130, %132 : vector<24x128xf32>
      %134 = vector.shape_cast %40 : vector<128xf32> to vector<1x128xf32>
      %135 = vector.broadcast %134 : vector<1x128xf32> to vector<24x128xf32>
      %136 = arith.mulf %130, %135 : vector<24x128xf32>
      %137 = vector.shape_cast %42 : vector<128xf32> to vector<1x128xf32>
      %138 = vector.broadcast %137 : vector<1x128xf32> to vector<24x128xf32>
      %139 = arith.mulf %130, %138 : vector<24x128xf32>
      %140 = arith.addf %126, %133 : vector<24x128xf32>
      %141 = arith.addf %127, %136 : vector<24x128xf32>
      %142 = arith.addf %128, %139 : vector<24x128xf32>
      %143 = vector.extract_strided_slice %140 {offsets = [0, 0], sizes = [16, 128], strides = [1, 1]} : vector<24x128xf32> to vector<16x128xf32>
      %144 = vector.extract_strided_slice %141 {offsets = [1, 0], sizes = [16, 128], strides = [1, 1]} : vector<24x128xf32> to vector<16x128xf32>
      %145 = arith.addf %143, %144 : vector<16x128xf32>
      %146 = vector.extract_strided_slice %142 {offsets = [2, 0], sizes = [16, 128], strides = [1, 1]} : vector<24x128xf32> to vector<16x128xf32>
      %147 = arith.addf %145, %146 : vector<16x128xf32>
      %c16 = arith.constant 16 : index
      %c0_62 = arith.constant 0 : index
      %148 = vector.load %arg9[%c16, %c0_62] : memref<256x128xf32, #tpu.memory_space<vmem>>, vector<16x128xf32>
      tpu.vector_store %arg9[%c16, %c0_62], %147 {strides = array<i32>} : memref<256x128xf32, #tpu.memory_space<vmem>>, vector<16x128xf32>,
      %c0_63 = arith.constant 0 : index
      %c2_64 = arith.constant 2 : index
      %c0_65 = arith.constant 0 : index
      %c0_66 = arith.constant 0 : index
      %149 = vector.load %arg7[%c0_63, %c2_64, %c0_65, %c0_66] : memref<2x18x24x128xf32, #tpu.memory_space<vmem>>, vector<1x1x24x128xf32>
      %150 = vector.shape_cast %149 : vector<1x1x24x128xf32> to vector<24x128xf32>
      %151 = vector.shape_cast %26 : vector<128xf32> to vector<1x128xf32>
      %152 = vector.broadcast %151 : vector<1x128xf32> to vector<24x128xf32>
      %153 = arith.mulf %150, %152 : vector<24x128xf32>
      %154 = vector.shape_cast %28 : vector<128xf32> to vector<1x128xf32>
      %155 = vector.broadcast %154 : vector<1x128xf32> to vector<24x128xf32>
      %156 = arith.mulf %150, %155 : vector<24x128xf32>
      %157 = vector.shape_cast %30 : vector<128xf32> to vector<1x128xf32>
      %158 = vector.broadcast %157 : vector<1x128xf32> to vector<24x128xf32>
      %159 = arith.mulf %150, %158 : vector<24x128xf32>
      %c0_67 = arith.constant 0 : index
      %c3_68 = arith.constant 3 : index
      %c0_69 = arith.constant 0 : index
      %c0_70 = arith.constant 0 : index
      %160 = vector.load %arg7[%c0_67, %c3_68, %c0_69, %c0_70] : memref<2x18x24x128xf32, #tpu.memory_space<vmem>>, vector<1x1x24x128xf32>
      %161 = vector.shape_cast %160 : vector<1x1x24x128xf32> to vector<24x128xf32>
      %162 = vector.shape_cast %32 : vector<128xf32> to vector<1x128xf32>
      %163 = vector.broadcast %162 : vector<1x128xf32> to vector<24x128xf32>
      %164 = arith.mulf %161, %163 : vector<24x128xf32>
      %165 = vector.shape_cast %34 : vector<128xf32> to vector<1x128xf32>
      %166 = vector.broadcast %165 : vector<1x128xf32> to vector<24x128xf32>
      %167 = arith.mulf %161, %166 : vector<24x128xf32>
      %168 = vector.shape_cast %36 : vector<128xf32> to vector<1x128xf32>
      %169 = vector.broadcast %168 : vector<1x128xf32> to vector<24x128xf32>
      %170 = arith.mulf %161, %169 : vector<24x128xf32>
      %171 = arith.addf %153, %164 : vector<24x128xf32>
      %172 = arith.addf %156, %167 : vector<24x128xf32>
      %173 = arith.addf %159, %170 : vector<24x128xf32>
      %c0_71 = arith.constant 0 : index
      %c4_72 = arith.constant 4 : index
      %c0_73 = arith.constant 0 : index
      %c0_74 = arith.constant 0 : index
      %174 = vector.load %arg7[%c0_71, %c4_72, %c0_73, %c0_74] : memref<2x18x24x128xf32, #tpu.memory_space<vmem>>, vector<1x1x24x128xf32>
      %175 = vector.shape_cast %174 : vector<1x1x24x128xf32> to vector<24x128xf32>
      %176 = vector.shape_cast %38 : vector<128xf32> to vector<1x128xf32>
      %177 = vector.broadcast %176 : vector<1x128xf32> to vector<24x128xf32>
      %178 = arith.mulf %175, %177 : vector<24x128xf32>
      %179 = vector.shape_cast %40 : vector<128xf32> to vector<1x128xf32>
      %180 = vector.broadcast %179 : vector<1x128xf32> to vector<24x128xf32>
      %181 = arith.mulf %175, %180 : vector<24x128xf32>
      %182 = vector.shape_cast %42 : vector<128xf32> to vector<1x128xf32>
      %183 = vector.broadcast %182 : vector<1x128xf32> to vector<24x128xf32>
      %184 = arith.mulf %175, %183 : vector<24x128xf32>
      %185 = arith.addf %171, %178 : vector<24x128xf32>
      %186 = arith.addf %172, %181 : vector<24x128xf32>
      %187 = arith.addf %173, %184 : vector<24x128xf32>
      %188 = vector.extract_strided_slice %185 {offsets = [0, 0], sizes = [16, 128], strides = [1, 1]} : vector<24x128xf32> to vector<16x128xf32>
      %189 = vector.extract_strided_slice %186 {offsets = [1, 0], sizes = [16, 128], strides = [1, 1]} : vector<24x128xf32> to vector<16x128xf32>
      %190 = arith.addf %188, %189 : vector<16x128xf32>
      %191 = vector.extract_strided_slice %187 {offsets = [2, 0], sizes = [16, 128], strides = [1, 1]} : vector<24x128xf32> to vector<16x128xf32>
      %192 = arith.addf %190, %191 : vector<16x128xf32>
      %c32 = arith.constant 32 : index
      %c0_75 = arith.constant 0 : index
      %193 = vector.load %arg9[%c32, %c0_75] : memref<256x128xf32, #tpu.memory_space<vmem>>, vector<16x128xf32>
      tpu.vector_store %arg9[%c32, %c0_75], %192 {strides = array<i32>} : memref<256x128xf32, #tpu.memory_space<vmem>>, vector<16x128xf32>,
      %c0_76 = arith.constant 0 : index
      %c3_77 = arith.constant 3 : index
      %c0_78 = arith.constant 0 : index
      %c0_79 = arith.constant 0 : index
      %194 = vector.load %arg7[%c0_76, %c3_77, %c0_78, %c0_79] : memref<2x18x24x128xf32, #tpu.memory_space<vmem>>, vector<1x1x24x128xf32>
      %195 = vector.shape_cast %194 : vector<1x1x24x128xf32> to vector<24x128xf32>
      %196 = vector.shape_cast %26 : vector<128xf32> to vector<1x128xf32>
      %197 = vector.broadcast %196 : vector<1x128xf32> to vector<24x128xf32>
      %198 = arith.mulf %195, %197 : vector<24x128xf32>
      %199 = vector.shape_cast %28 : vector<128xf32> to vector<1x128xf32>
      %200 = vector.broadcast %199 : vector<1x128xf32> to vector<24x128xf32>
      %201 = arith.mulf %195, %200 : vector<24x128xf32>
      %202 = vector.shape_cast %30 : vector<128xf32> to vector<1x128xf32>
      %203 = vector.broadcast %202 : vector<1x128xf32> to vector<24x128xf32>
      %204 = arith.mulf %195, %203 : vector<24x128xf32>
      %c0_80 = arith.constant 0 : index
      %c4_81 = arith.constant 4 : index
      %c0_82 = arith.constant 0 : index
      %c0_83 = arith.constant 0 : index
      %205 = vector.load %arg7[%c0_80, %c4_81, %c0_82, %c0_83] : memref<2x18x24x128xf32, #tpu.memory_space<vmem>>, vector<1x1x24x128xf32>
      %206 = vector.shape_cast %205 : vector<1x1x24x128xf32> to vector<24x128xf32>
      %207 = vector.shape_cast %32 : vector<128xf32> to vector<1x128xf32>
      %208 = vector.broadcast %207 : vector<1x128xf32> to vector<24x128xf32>
      %209 = arith.mulf %206, %208 : vector<24x128xf32>
      %210 = vector.shape_cast %34 : vector<128xf32> to vector<1x128xf32>
      %211 = vector.broadcast %210 : vector<1x128xf32> to vector<24x128xf32>
      %212 = arith.mulf %206, %211 : vector<24x128xf32>
      %213 = vector.shape_cast %36 : vector<128xf32> to vector<1x128xf32>
      %214 = vector.broadcast %213 : vector<1x128xf32> to vector<24x128xf32>
      %215 = arith.mulf %206, %214 : vector<24x128xf32>
      %216 = arith.addf %198, %209 : vector<24x128xf32>
      %217 = arith.addf %201, %212 : vector<24x128xf32>
      %218 = arith.addf %204, %215 : vector<24x128xf32>
      %c0_84 = arith.constant 0 : index
      %c5_85 = arith.constant 5 : index
      %c0_86 = arith.constant 0 : index
      %c0_87 = arith.constant 0 : index
      %219 = vector.load %arg7[%c0_84, %c5_85, %c0_86, %c0_87] : memref<2x18x24x128xf32, #tpu.memory_space<vmem>>, vector<1x1x24x128xf32>
      %220 = vector.shape_cast %219 : vector<1x1x24x128xf32> to vector<24x128xf32>
      %221 = vector.shape_cast %38 : vector<128xf32> to vector<1x128xf32>
      %222 = vector.broadcast %221 : vector<1x128xf32> to vector<24x128xf32>
      %223 = arith.mulf %220, %222 : vector<24x128xf32>
      %224 = vector.shape_cast %40 : vector<128xf32> to vector<1x128xf32>
      %225 = vector.broadcast %224 : vector<1x128xf32> to vector<24x128xf32>
      %226 = arith.mulf %220, %225 : vector<24x128xf32>
      %227 = vector.shape_cast %42 : vector<128xf32> to vector<1x128xf32>
      %228 = vector.broadcast %227 : vector<1x128xf32> to vector<24x128xf32>
      %229 = arith.mulf %220, %228 : vector<24x128xf32>
      %230 = arith.addf %216, %223 : vector<24x128xf32>
      %231 = arith.addf %217, %226 : vector<24x128xf32>
      %232 = arith.addf %218, %229 : vector<24x128xf32>
      %233 = vector.extract_strided_slice %230 {offsets = [0, 0], sizes = [16, 128], strides = [1, 1]} : vector<24x128xf32> to vector<16x128xf32>
      %234 = vector.extract_strided_slice %231 {offsets = [1, 0], sizes = [16, 128], strides = [1, 1]} : vector<24x128xf32> to vector<16x128xf32>
      %235 = arith.addf %233, %234 : vector<16x128xf32>
      %236 = vector.extract_strided_slice %232 {offsets = [2, 0], sizes = [16, 128], strides = [1, 1]} : vector<24x128xf32> to vector<16x128xf32>
      %237 = arith.addf %235, %236 : vector<16x128xf32>
      %c48 = arith.constant 48 : index
      %c0_88 = arith.constant 0 : index
      %238 = vector.load %arg9[%c48, %c0_88] : memref<256x128xf32, #tpu.memory_space<vmem>>, vector<16x128xf32>
      tpu.vector_store %arg9[%c48, %c0_88], %237 {strides = array<i32>} : memref<256x128xf32, #tpu.memory_space<vmem>>, vector<16x128xf32>,
      %c0_89 = arith.constant 0 : index
      %c4_90 = arith.constant 4 : index
      %c0_91 = arith.constant 0 : index
      %c0_92 = arith.constant 0 : index
      %239 = vector.load %arg7[%c0_89, %c4_90, %c0_91, %c0_92] : memref<2x18x24x128xf32, #tpu.memory_space<vmem>>, vector<1x1x24x128xf32>
      %240 = vector.shape_cast %239 : vector<1x1x24x128xf32> to vector<24x128xf32>
      %241 = vector.shape_cast %26 : vector<128xf32> to vector<1x128xf32>
      %242 = vector.broadcast %241 : vector<1x128xf32> to vector<24x128xf32>
      %243 = arith.mulf %240, %242 : vector<24x128xf32>
      %244 = vector.shape_cast %28 : vector<128xf32> to vector<1x128xf32>
      %245 = vector.broadcast %244 : vector<1x128xf32> to vector<24x128xf32>
      %246 = arith.mulf %240, %245 : vector<24x128xf32>
      %247 = vector.shape_cast %30 : vector<128xf32> to vector<1x128xf32>
      %248 = vector.broadcast %247 : vector<1x128xf32> to vector<24x128xf32>
      %249 = arith.mulf %240, %248 : vector<24x128xf32>
      %c0_93 = arith.constant 0 : index
      %c5_94 = arith.constant 5 : index
      %c0_95 = arith.constant 0 : index
      %c0_96 = arith.constant 0 : index
      %250 = vector.load %arg7[%c0_93, %c5_94, %c0_95, %c0_96] : memref<2x18x24x128xf32, #tpu.memory_space<vmem>>, vector<1x1x24x128xf32>
      %251 = vector.shape_cast %250 : vector<1x1x24x128xf32> to vector<24x128xf32>
      %252 = vector.shape_cast %32 : vector<128xf32> to vector<1x128xf32>
      %253 = vector.broadcast %252 : vector<1x128xf32> to vector<24x128xf32>
      %254 = arith.mulf %251, %253 : vector<24x128xf32>
      %255 = vector.shape_cast %34 : vector<128xf32> to vector<1x128xf32>
      %256 = vector.broadcast %255 : vector<1x128xf32> to vector<24x128xf32>
      %257 = arith.mulf %251, %256 : vector<24x128xf32>
      %258 = vector.shape_cast %36 : vector<128xf32> to vector<1x128xf32>
      %259 = vector.broadcast %258 : vector<1x128xf32> to vector<24x128xf32>
      %260 = arith.mulf %251, %259 : vector<24x128xf32>
      %261 = arith.addf %243, %254 : vector<24x128xf32>
      %262 = arith.addf %246, %257 : vector<24x128xf32>
      %263 = arith.addf %249, %260 : vector<24x128xf32>
      %c0_97 = arith.constant 0 : index
      %c6_98 = arith.constant 6 : index
      %c0_99 = arith.constant 0 : index
      %c0_100 = arith.constant 0 : index
      %264 = vector.load %arg7[%c0_97, %c6_98, %c0_99, %c0_100] : memref<2x18x24x128xf32, #tpu.memory_space<vmem>>, vector<1x1x24x128xf32>
      %265 = vector.shape_cast %264 : vector<1x1x24x128xf32> to vector<24x128xf32>
      %266 = vector.shape_cast %38 : vector<128xf32> to vector<1x128xf32>
      %267 = vector.broadcast %266 : vector<1x128xf32> to vector<24x128xf32>
      %268 = arith.mulf %265, %267 : vector<24x128xf32>
      %269 = vector.shape_cast %40 : vector<128xf32> to vector<1x128xf32>
      %270 = vector.broadcast %269 : vector<1x128xf32> to vector<24x128xf32>
      %271 = arith.mulf %265, %270 : vector<24x128xf32>
      %272 = vector.shape_cast %42 : vector<128xf32> to vector<1x128xf32>
      %273 = vector.broadcast %272 : vector<1x128xf32> to vector<24x128xf32>
      %274 = arith.mulf %265, %273 : vector<24x128xf32>
      %275 = arith.addf %261, %268 : vector<24x128xf32>
      %276 = arith.addf %262, %271 : vector<24x128xf32>
      %277 = arith.addf %263, %274 : vector<24x128xf32>
      %278 = vector.extract_strided_slice %275 {offsets = [0, 0], sizes = [16, 128], strides = [1, 1]} : vector<24x128xf32> to vector<16x128xf32>
      %279 = vector.extract_strided_slice %276 {offsets = [1, 0], sizes = [16, 128], strides = [1, 1]} : vector<24x128xf32> to vector<16x128xf32>
      %280 = arith.addf %278, %279 : vector<16x128xf32>
      %281 = vector.extract_strided_slice %277 {offsets = [2, 0], sizes = [16, 128], strides = [1, 1]} : vector<24x128xf32> to vector<16x128xf32>
      %282 = arith.addf %280, %281 : vector<16x128xf32>
      %c64 = arith.constant 64 : index
      %c0_101 = arith.constant 0 : index
      %283 = vector.load %arg9[%c64, %c0_101] : memref<256x128xf32, #tpu.memory_space<vmem>>, vector<16x128xf32>
      tpu.vector_store %arg9[%c64, %c0_101], %282 {strides = array<i32>} : memref<256x128xf32, #tpu.memory_space<vmem>>, vector<16x128xf32>,
      %c0_102 = arith.constant 0 : index
      %c5_103 = arith.constant 5 : index
      %c0_104 = arith.constant 0 : index
      %c0_105 = arith.constant 0 : index
      %284 = vector.load %arg7[%c0_102, %c5_103, %c0_104, %c0_105] : memref<2x18x24x128xf32, #tpu.memory_space<vmem>>, vector<1x1x24x128xf32>
      %285 = vector.shape_cast %284 : vector<1x1x24x128xf32> to vector<24x128xf32>
      %286 = vector.shape_cast %26 : vector<128xf32> to vector<1x128xf32>
      %287 = vector.broadcast %286 : vector<1x128xf32> to vector<24x128xf32>
      %288 = arith.mulf %285, %287 : vector<24x128xf32>
      %289 = vector.shape_cast %28 : vector<128xf32> to vector<1x128xf32>
      %290 = vector.broadcast %289 : vector<1x128xf32> to vector<24x128xf32>
      %291 = arith.mulf %285, %290 : vector<24x128xf32>
      %292 = vector.shape_cast %30 : vector<128xf32> to vector<1x128xf32>
      %293 = vector.broadcast %292 : vector<1x128xf32> to vector<24x128xf32>
      %294 = arith.mulf %285, %293 : vector<24x128xf32>
      %c0_106 = arith.constant 0 : index
      %c6_107 = arith.constant 6 : index
      %c0_108 = arith.constant 0 : index
      %c0_109 = arith.constant 0 : index
      %295 = vector.load %arg7[%c0_106, %c6_107, %c0_108, %c0_109] : memref<2x18x24x128xf32, #tpu.memory_space<vmem>>, vector<1x1x24x128xf32>
      %296 = vector.shape_cast %295 : vector<1x1x24x128xf32> to vector<24x128xf32>
      %297 = vector.shape_cast %32 : vector<128xf32> to vector<1x128xf32>
      %298 = vector.broadcast %297 : vector<1x128xf32> to vector<24x128xf32>
      %299 = arith.mulf %296, %298 : vector<24x128xf32>
      %300 = vector.shape_cast %34 : vector<128xf32> to vector<1x128xf32>
      %301 = vector.broadcast %300 : vector<1x128xf32> to vector<24x128xf32>
      %302 = arith.mulf %296, %301 : vector<24x128xf32>
      %303 = vector.shape_cast %36 : vector<128xf32> to vector<1x128xf32>
      %304 = vector.broadcast %303 : vector<1x128xf32> to vector<24x128xf32>
      %305 = arith.mulf %296, %304 : vector<24x128xf32>
      %306 = arith.addf %288, %299 : vector<24x128xf32>
      %307 = arith.addf %291, %302 : vector<24x128xf32>
      %308 = arith.addf %294, %305 : vector<24x128xf32>
      %c0_110 = arith.constant 0 : index
      %c7_111 = arith.constant 7 : index
      %c0_112 = arith.constant 0 : index
      %c0_113 = arith.constant 0 : index
      %309 = vector.load %arg7[%c0_110, %c7_111, %c0_112, %c0_113] : memref<2x18x24x128xf32, #tpu.memory_space<vmem>>, vector<1x1x24x128xf32>
      %310 = vector.shape_cast %309 : vector<1x1x24x128xf32> to vector<24x128xf32>
      %311 = vector.shape_cast %38 : vector<128xf32> to vector<1x128xf32>
      %312 = vector.broadcast %311 : vector<1x128xf32> to vector<24x128xf32>
      %313 = arith.mulf %310, %312 : vector<24x128xf32>
      %314 = vector.shape_cast %40 : vector<128xf32> to vector<1x128xf32>
      %315 = vector.broadcast %314 : vector<1x128xf32> to vector<24x128xf32>
      %316 = arith.mulf %310, %315 : vector<24x128xf32>
      %317 = vector.shape_cast %42 : vector<128xf32> to vector<1x128xf32>
      %318 = vector.broadcast %317 : vector<1x128xf32> to vector<24x128xf32>
      %319 = arith.mulf %310, %318 : vector<24x128xf32>
      %320 = arith.addf %306, %313 : vector<24x128xf32>
      %321 = arith.addf %307, %316 : vector<24x128xf32>
      %322 = arith.addf %308, %319 : vector<24x128xf32>
      %323 = vector.extract_strided_slice %320 {offsets = [0, 0], sizes = [16, 128], strides = [1, 1]} : vector<24x128xf32> to vector<16x128xf32>
      %324 = vector.extract_strided_slice %321 {offsets = [1, 0], sizes = [16, 128], strides = [1, 1]} : vector<24x128xf32> to vector<16x128xf32>
      %325 = arith.addf %323, %324 : vector<16x128xf32>
      %326 = vector.extract_strided_slice %322 {offsets = [2, 0], sizes = [16, 128], strides = [1, 1]} : vector<24x128xf32> to vector<16x128xf32>
      %327 = arith.addf %325, %326 : vector<16x128xf32>
      %c80 = arith.constant 80 : index
      %c0_114 = arith.constant 0 : index
      %328 = vector.load %arg9[%c80, %c0_114] : memref<256x128xf32, #tpu.memory_space<vmem>>, vector<16x128xf32>
      tpu.vector_store %arg9[%c80, %c0_114], %327 {strides = array<i32>} : memref<256x128xf32, #tpu.memory_space<vmem>>, vector<16x128xf32>,
      %c0_115 = arith.constant 0 : index
      %c6_116 = arith.constant 6 : index
      %c0_117 = arith.constant 0 : index
      %c0_118 = arith.constant 0 : index
      %329 = vector.load %arg7[%c0_115, %c6_116, %c0_117, %c0_118] : memref<2x18x24x128xf32, #tpu.memory_space<vmem>>, vector<1x1x24x128xf32>
      %330 = vector.shape_cast %329 : vector<1x1x24x128xf32> to vector<24x128xf32>
      %331 = vector.shape_cast %26 : vector<128xf32> to vector<1x128xf32>
      %332 = vector.broadcast %331 : vector<1x128xf32> to vector<24x128xf32>
      %333 = arith.mulf %330, %332 : vector<24x128xf32>
      %334 = vector.shape_cast %28 : vector<128xf32> to vector<1x128xf32>
      %335 = vector.broadcast %334 : vector<1x128xf32> to vector<24x128xf32>
      %336 = arith.mulf %330, %335 : vector<24x128xf32>
      %337 = vector.shape_cast %30 : vector<128xf32> to vector<1x128xf32>
      %338 = vector.broadcast %337 : vector<1x128xf32> to vector<24x128xf32>
      %339 = arith.mulf %330, %338 : vector<24x128xf32>
      %c0_119 = arith.constant 0 : index
      %c7_120 = arith.constant 7 : index
      %c0_121 = arith.constant 0 : index
      %c0_122 = arith.constant 0 : index
      %340 = vector.load %arg7[%c0_119, %c7_120, %c0_121, %c0_122] : memref<2x18x24x128xf32, #tpu.memory_space<vmem>>, vector<1x1x24x128xf32>
      %341 = vector.shape_cast %340 : vector<1x1x24x128xf32> to vector<24x128xf32>
      %342 = vector.shape_cast %32 : vector<128xf32> to vector<1x128xf32>
      %343 = vector.broadcast %342 : vector<1x128xf32> to vector<24x128xf32>
      %344 = arith.mulf %341, %343 : vector<24x128xf32>
      %345 = vector.shape_cast %34 : vector<128xf32> to vector<1x128xf32>
      %346 = vector.broadcast %345 : vector<1x128xf32> to vector<24x128xf32>
      %347 = arith.mulf %341, %346 : vector<24x128xf32>
      %348 = vector.shape_cast %36 : vector<128xf32> to vector<1x128xf32>
      %349 = vector.broadcast %348 : vector<1x128xf32> to vector<24x128xf32>
      %350 = arith.mulf %341, %349 : vector<24x128xf32>
      %351 = arith.addf %333, %344 : vector<24x128xf32>
      %352 = arith.addf %336, %347 : vector<24x128xf32>
      %353 = arith.addf %339, %350 : vector<24x128xf32>
      %c0_123 = arith.constant 0 : index
      %c8_124 = arith.constant 8 : index
      %c0_125 = arith.constant 0 : index
      %c0_126 = arith.constant 0 : index
      %354 = vector.load %arg7[%c0_123, %c8_124, %c0_125, %c0_126] : memref<2x18x24x128xf32, #tpu.memory_space<vmem>>, vector<1x1x24x128xf32>
      %355 = vector.shape_cast %354 : vector<1x1x24x128xf32> to vector<24x128xf32>
      %356 = vector.shape_cast %38 : vector<128xf32> to vector<1x128xf32>
      %357 = vector.broadcast %356 : vector<1x128xf32> to vector<24x128xf32>
      %358 = arith.mulf %355, %357 : vector<24x128xf32>
      %359 = vector.shape_cast %40 : vector<128xf32> to vector<1x128xf32>
      %360 = vector.broadcast %359 : vector<1x128xf32> to vector<24x128xf32>
      %361 = arith.mulf %355, %360 : vector<24x128xf32>
      %362 = vector.shape_cast %42 : vector<128xf32> to vector<1x128xf32>
      %363 = vector.broadcast %362 : vector<1x128xf32> to vector<24x128xf32>
      %364 = arith.mulf %355, %363 : vector<24x128xf32>
      %365 = arith.addf %351, %358 : vector<24x128xf32>
      %366 = arith.addf %352, %361 : vector<24x128xf32>
      %367 = arith.addf %353, %364 : vector<24x128xf32>
      %368 = vector.extract_strided_slice %365 {offsets = [0, 0], sizes = [16, 128], strides = [1, 1]} : vector<24x128xf32> to vector<16x128xf32>
      %369 = vector.extract_strided_slice %366 {offsets = [1, 0], sizes = [16, 128], strides = [1, 1]} : vector<24x128xf32> to vector<16x128xf32>
      %370 = arith.addf %368, %369 : vector<16x128xf32>
      %371 = vector.extract_strided_slice %367 {offsets = [2, 0], sizes = [16, 128], strides = [1, 1]} : vector<24x128xf32> to vector<16x128xf32>
      %372 = arith.addf %370, %371 : vector<16x128xf32>
      %c96 = arith.constant 96 : index
      %c0_127 = arith.constant 0 : index
      %373 = vector.load %arg9[%c96, %c0_127] : memref<256x128xf32, #tpu.memory_space<vmem>>, vector<16x128xf32>
      tpu.vector_store %arg9[%c96, %c0_127], %372 {strides = array<i32>} : memref<256x128xf32, #tpu.memory_space<vmem>>, vector<16x128xf32>,
      %c0_128 = arith.constant 0 : index
      %c7_129 = arith.constant 7 : index
      %c0_130 = arith.constant 0 : index
      %c0_131 = arith.constant 0 : index
      %374 = vector.load %arg7[%c0_128, %c7_129, %c0_130, %c0_131] : memref<2x18x24x128xf32, #tpu.memory_space<vmem>>, vector<1x1x24x128xf32>
      %375 = vector.shape_cast %374 : vector<1x1x24x128xf32> to vector<24x128xf32>
      %376 = vector.shape_cast %26 : vector<128xf32> to vector<1x128xf32>
      %377 = vector.broadcast %376 : vector<1x128xf32> to vector<24x128xf32>
      %378 = arith.mulf %375, %377 : vector<24x128xf32>
      %379 = vector.shape_cast %28 : vector<128xf32> to vector<1x128xf32>
      %380 = vector.broadcast %379 : vector<1x128xf32> to vector<24x128xf32>
      %381 = arith.mulf %375, %380 : vector<24x128xf32>
      %382 = vector.shape_cast %30 : vector<128xf32> to vector<1x128xf32>
      %383 = vector.broadcast %382 : vector<1x128xf32> to vector<24x128xf32>
      %384 = arith.mulf %375, %383 : vector<24x128xf32>
      %c0_132 = arith.constant 0 : index
      %c8_133 = arith.constant 8 : index
      %c0_134 = arith.constant 0 : index
      %c0_135 = arith.constant 0 : index
      %385 = vector.load %arg7[%c0_132, %c8_133, %c0_134, %c0_135] : memref<2x18x24x128xf32, #tpu.memory_space<vmem>>, vector<1x1x24x128xf32>
      %386 = vector.shape_cast %385 : vector<1x1x24x128xf32> to vector<24x128xf32>
      %387 = vector.shape_cast %32 : vector<128xf32> to vector<1x128xf32>
      %388 = vector.broadcast %387 : vector<1x128xf32> to vector<24x128xf32>
      %389 = arith.mulf %386, %388 : vector<24x128xf32>
      %390 = vector.shape_cast %34 : vector<128xf32> to vector<1x128xf32>
      %391 = vector.broadcast %390 : vector<1x128xf32> to vector<24x128xf32>
      %392 = arith.mulf %386, %391 : vector<24x128xf32>
      %393 = vector.shape_cast %36 : vector<128xf32> to vector<1x128xf32>
      %394 = vector.broadcast %393 : vector<1x128xf32> to vector<24x128xf32>
      %395 = arith.mulf %386, %394 : vector<24x128xf32>
      %396 = arith.addf %378, %389 : vector<24x128xf32>
      %397 = arith.addf %381, %392 : vector<24x128xf32>
      %398 = arith.addf %384, %395 : vector<24x128xf32>
      %c0_136 = arith.constant 0 : index
      %c9 = arith.constant 9 : index
      %c0_137 = arith.constant 0 : index
      %c0_138 = arith.constant 0 : index
      %399 = vector.load %arg7[%c0_136, %c9, %c0_137, %c0_138] : memref<2x18x24x128xf32, #tpu.memory_space<vmem>>, vector<1x1x24x128xf32>
      %400 = vector.shape_cast %399 : vector<1x1x24x128xf32> to vector<24x128xf32>
      %401 = vector.shape_cast %38 : vector<128xf32> to vector<1x128xf32>
      %402 = vector.broadcast %401 : vector<1x128xf32> to vector<24x128xf32>
      %403 = arith.mulf %400, %402 : vector<24x128xf32>
      %404 = vector.shape_cast %40 : vector<128xf32> to vector<1x128xf32>
      %405 = vector.broadcast %404 : vector<1x128xf32> to vector<24x128xf32>
      %406 = arith.mulf %400, %405 : vector<24x128xf32>
      %407 = vector.shape_cast %42 : vector<128xf32> to vector<1x128xf32>
      %408 = vector.broadcast %407 : vector<1x128xf32> to vector<24x128xf32>
      %409 = arith.mulf %400, %408 : vector<24x128xf32>
      %410 = arith.addf %396, %403 : vector<24x128xf32>
      %411 = arith.addf %397, %406 : vector<24x128xf32>
      %412 = arith.addf %398, %409 : vector<24x128xf32>
      %413 = vector.extract_strided_slice %410 {offsets = [0, 0], sizes = [16, 128], strides = [1, 1]} : vector<24x128xf32> to vector<16x128xf32>
      %414 = vector.extract_strided_slice %411 {offsets = [1, 0], sizes = [16, 128], strides = [1, 1]} : vector<24x128xf32> to vector<16x128xf32>
      %415 = arith.addf %413, %414 : vector<16x128xf32>
      %416 = vector.extract_strided_slice %412 {offsets = [2, 0], sizes = [16, 128], strides = [1, 1]} : vector<24x128xf32> to vector<16x128xf32>
      %417 = arith.addf %415, %416 : vector<16x128xf32>
      %c112 = arith.constant 112 : index
      %c0_139 = arith.constant 0 : index
      %418 = vector.load %arg9[%c112, %c0_139] : memref<256x128xf32, #tpu.memory_space<vmem>>, vector<16x128xf32>
      tpu.vector_store %arg9[%c112, %c0_139], %417 {strides = array<i32>} : memref<256x128xf32, #tpu.memory_space<vmem>>, vector<16x128xf32>,
      %c0_140 = arith.constant 0 : index
      %c8_141 = arith.constant 8 : index
      %c0_142 = arith.constant 0 : index
      %c0_143 = arith.constant 0 : index
      %419 = vector.load %arg7[%c0_140, %c8_141, %c0_142, %c0_143] : memref<2x18x24x128xf32, #tpu.memory_space<vmem>>, vector<1x1x24x128xf32>
      %420 = vector.shape_cast %419 : vector<1x1x24x128xf32> to vector<24x128xf32>
      %421 = vector.shape_cast %26 : vector<128xf32> to vector<1x128xf32>
      %422 = vector.broadcast %421 : vector<1x128xf32> to vector<24x128xf32>
      %423 = arith.mulf %420, %422 : vector<24x128xf32>
      %424 = vector.shape_cast %28 : vector<128xf32> to vector<1x128xf32>
      %425 = vector.broadcast %424 : vector<1x128xf32> to vector<24x128xf32>
      %426 = arith.mulf %420, %425 : vector<24x128xf32>
      %427 = vector.shape_cast %30 : vector<128xf32> to vector<1x128xf32>
      %428 = vector.broadcast %427 : vector<1x128xf32> to vector<24x128xf32>
      %429 = arith.mulf %420, %428 : vector<24x128xf32>
      %c0_144 = arith.constant 0 : index
      %c9_145 = arith.constant 9 : index
      %c0_146 = arith.constant 0 : index
      %c0_147 = arith.constant 0 : index
      %430 = vector.load %arg7[%c0_144, %c9_145, %c0_146, %c0_147] : memref<2x18x24x128xf32, #tpu.memory_space<vmem>>, vector<1x1x24x128xf32>
      %431 = vector.shape_cast %430 : vector<1x1x24x128xf32> to vector<24x128xf32>
      %432 = vector.shape_cast %32 : vector<128xf32> to vector<1x128xf32>
      %433 = vector.broadcast %432 : vector<1x128xf32> to vector<24x128xf32>
      %434 = arith.mulf %431, %433 : vector<24x128xf32>
      %435 = vector.shape_cast %34 : vector<128xf32> to vector<1x128xf32>
      %436 = vector.broadcast %435 : vector<1x128xf32> to vector<24x128xf32>
      %437 = arith.mulf %431, %436 : vector<24x128xf32>
      %438 = vector.shape_cast %36 : vector<128xf32> to vector<1x128xf32>
      %439 = vector.broadcast %438 : vector<1x128xf32> to vector<24x128xf32>
      %440 = arith.mulf %431, %439 : vector<24x128xf32>
      %441 = arith.addf %423, %434 : vector<24x128xf32>
      %442 = arith.addf %426, %437 : vector<24x128xf32>
      %443 = arith.addf %429, %440 : vector<24x128xf32>
      %c0_148 = arith.constant 0 : index
      %c10 = arith.constant 10 : index
      %c0_149 = arith.constant 0 : index
      %c0_150 = arith.constant 0 : index
      %444 = vector.load %arg7[%c0_148, %c10, %c0_149, %c0_150] : memref<2x18x24x128xf32, #tpu.memory_space<vmem>>, vector<1x1x24x128xf32>
      %445 = vector.shape_cast %444 : vector<1x1x24x128xf32> to vector<24x128xf32>
      %446 = vector.shape_cast %38 : vector<128xf32> to vector<1x128xf32>
      %447 = vector.broadcast %446 : vector<1x128xf32> to vector<24x128xf32>
      %448 = arith.mulf %445, %447 : vector<24x128xf32>
      %449 = vector.shape_cast %40 : vector<128xf32> to vector<1x128xf32>
      %450 = vector.broadcast %449 : vector<1x128xf32> to vector<24x128xf32>
      %451 = arith.mulf %445, %450 : vector<24x128xf32>
      %452 = vector.shape_cast %42 : vector<128xf32> to vector<1x128xf32>
      %453 = vector.broadcast %452 : vector<1x128xf32> to vector<24x128xf32>
      %454 = arith.mulf %445, %453 : vector<24x128xf32>
      %455 = arith.addf %441, %448 : vector<24x128xf32>
      %456 = arith.addf %442, %451 : vector<24x128xf32>
      %457 = arith.addf %443, %454 : vector<24x128xf32>
      %458 = vector.extract_strided_slice %455 {offsets = [0, 0], sizes = [16, 128], strides = [1, 1]} : vector<24x128xf32> to vector<16x128xf32>
      %459 = vector.extract_strided_slice %456 {offsets = [1, 0], sizes = [16, 128], strides = [1, 1]} : vector<24x128xf32> to vector<16x128xf32>
      %460 = arith.addf %458, %459 : vector<16x128xf32>
      %461 = vector.extract_strided_slice %457 {offsets = [2, 0], sizes = [16, 128], strides = [1, 1]} : vector<24x128xf32> to vector<16x128xf32>
      %462 = arith.addf %460, %461 : vector<16x128xf32>
      %c128 = arith.constant 128 : index
      %c0_151 = arith.constant 0 : index
      %463 = vector.load %arg9[%c128, %c0_151] : memref<256x128xf32, #tpu.memory_space<vmem>>, vector<16x128xf32>
      tpu.vector_store %arg9[%c128, %c0_151], %462 {strides = array<i32>} : memref<256x128xf32, #tpu.memory_space<vmem>>, vector<16x128xf32>,
      %c0_152 = arith.constant 0 : index
      %c9_153 = arith.constant 9 : index
      %c0_154 = arith.constant 0 : index
      %c0_155 = arith.constant 0 : index
      %464 = vector.load %arg7[%c0_152, %c9_153, %c0_154, %c0_155] : memref<2x18x24x128xf32, #tpu.memory_space<vmem>>, vector<1x1x24x128xf32>
      %465 = vector.shape_cast %464 : vector<1x1x24x128xf32> to vector<24x128xf32>
      %466 = vector.shape_cast %26 : vector<128xf32> to vector<1x128xf32>
      %467 = vector.broadcast %466 : vector<1x128xf32> to vector<24x128xf32>
      %468 = arith.mulf %465, %467 : vector<24x128xf32>
      %469 = vector.shape_cast %28 : vector<128xf32> to vector<1x128xf32>
      %470 = vector.broadcast %469 : vector<1x128xf32> to vector<24x128xf32>
      %471 = arith.mulf %465, %470 : vector<24x128xf32>
      %472 = vector.shape_cast %30 : vector<128xf32> to vector<1x128xf32>
      %473 = vector.broadcast %472 : vector<1x128xf32> to vector<24x128xf32>
      %474 = arith.mulf %465, %473 : vector<24x128xf32>
      %c0_156 = arith.constant 0 : index
      %c10_157 = arith.constant 10 : index
      %c0_158 = arith.constant 0 : index
      %c0_159 = arith.constant 0 : index
      %475 = vector.load %arg7[%c0_156, %c10_157, %c0_158, %c0_159] : memref<2x18x24x128xf32, #tpu.memory_space<vmem>>, vector<1x1x24x128xf32>
      %476 = vector.shape_cast %475 : vector<1x1x24x128xf32> to vector<24x128xf32>
      %477 = vector.shape_cast %32 : vector<128xf32> to vector<1x128xf32>
      %478 = vector.broadcast %477 : vector<1x128xf32> to vector<24x128xf32>
      %479 = arith.mulf %476, %478 : vector<24x128xf32>
      %480 = vector.shape_cast %34 : vector<128xf32> to vector<1x128xf32>
      %481 = vector.broadcast %480 : vector<1x128xf32> to vector<24x128xf32>
      %482 = arith.mulf %476, %481 : vector<24x128xf32>
      %483 = vector.shape_cast %36 : vector<128xf32> to vector<1x128xf32>
      %484 = vector.broadcast %483 : vector<1x128xf32> to vector<24x128xf32>
      %485 = arith.mulf %476, %484 : vector<24x128xf32>
      %486 = arith.addf %468, %479 : vector<24x128xf32>
      %487 = arith.addf %471, %482 : vector<24x128xf32>
      %488 = arith.addf %474, %485 : vector<24x128xf32>
      %c0_160 = arith.constant 0 : index
      %c11 = arith.constant 11 : index
      %c0_161 = arith.constant 0 : index
      %c0_162 = arith.constant 0 : index
      %489 = vector.load %arg7[%c0_160, %c11, %c0_161, %c0_162] : memref<2x18x24x128xf32, #tpu.memory_space<vmem>>, vector<1x1x24x128xf32>
      %490 = vector.shape_cast %489 : vector<1x1x24x128xf32> to vector<24x128xf32>
      %491 = vector.shape_cast %38 : vector<128xf32> to vector<1x128xf32>
      %492 = vector.broadcast %491 : vector<1x128xf32> to vector<24x128xf32>
      %493 = arith.mulf %490, %492 : vector<24x128xf32>
      %494 = vector.shape_cast %40 : vector<128xf32> to vector<1x128xf32>
      %495 = vector.broadcast %494 : vector<1x128xf32> to vector<24x128xf32>
      %496 = arith.mulf %490, %495 : vector<24x128xf32>
      %497 = vector.shape_cast %42 : vector<128xf32> to vector<1x128xf32>
      %498 = vector.broadcast %497 : vector<1x128xf32> to vector<24x128xf32>
      %499 = arith.mulf %490, %498 : vector<24x128xf32>
      %500 = arith.addf %486, %493 : vector<24x128xf32>
      %501 = arith.addf %487, %496 : vector<24x128xf32>
      %502 = arith.addf %488, %499 : vector<24x128xf32>
      %503 = vector.extract_strided_slice %500 {offsets = [0, 0], sizes = [16, 128], strides = [1, 1]} : vector<24x128xf32> to vector<16x128xf32>
      %504 = vector.extract_strided_slice %501 {offsets = [1, 0], sizes = [16, 128], strides = [1, 1]} : vector<24x128xf32> to vector<16x128xf32>
      %505 = arith.addf %503, %504 : vector<16x128xf32>
      %506 = vector.extract_strided_slice %502 {offsets = [2, 0], sizes = [16, 128], strides = [1, 1]} : vector<24x128xf32> to vector<16x128xf32>
      %507 = arith.addf %505, %506 : vector<16x128xf32>
      %c144 = arith.constant 144 : index
      %c0_163 = arith.constant 0 : index
      %508 = vector.load %arg9[%c144, %c0_163] : memref<256x128xf32, #tpu.memory_space<vmem>>, vector<16x128xf32>
      tpu.vector_store %arg9[%c144, %c0_163], %507 {strides = array<i32>} : memref<256x128xf32, #tpu.memory_space<vmem>>, vector<16x128xf32>,
      %c0_164 = arith.constant 0 : index
      %c10_165 = arith.constant 10 : index
      %c0_166 = arith.constant 0 : index
      %c0_167 = arith.constant 0 : index
      %509 = vector.load %arg7[%c0_164, %c10_165, %c0_166, %c0_167] : memref<2x18x24x128xf32, #tpu.memory_space<vmem>>, vector<1x1x24x128xf32>
      %510 = vector.shape_cast %509 : vector<1x1x24x128xf32> to vector<24x128xf32>
      %511 = vector.shape_cast %26 : vector<128xf32> to vector<1x128xf32>
      %512 = vector.broadcast %511 : vector<1x128xf32> to vector<24x128xf32>
      %513 = arith.mulf %510, %512 : vector<24x128xf32>
      %514 = vector.shape_cast %28 : vector<128xf32> to vector<1x128xf32>
      %515 = vector.broadcast %514 : vector<1x128xf32> to vector<24x128xf32>
      %516 = arith.mulf %510, %515 : vector<24x128xf32>
      %517 = vector.shape_cast %30 : vector<128xf32> to vector<1x128xf32>
      %518 = vector.broadcast %517 : vector<1x128xf32> to vector<24x128xf32>
      %519 = arith.mulf %510, %518 : vector<24x128xf32>
      %c0_168 = arith.constant 0 : index
      %c11_169 = arith.constant 11 : index
      %c0_170 = arith.constant 0 : index
      %c0_171 = arith.constant 0 : index
      %520 = vector.load %arg7[%c0_168, %c11_169, %c0_170, %c0_171] : memref<2x18x24x128xf32, #tpu.memory_space<vmem>>, vector<1x1x24x128xf32>
      %521 = vector.shape_cast %520 : vector<1x1x24x128xf32> to vector<24x128xf32>
      %522 = vector.shape_cast %32 : vector<128xf32> to vector<1x128xf32>
      %523 = vector.broadcast %522 : vector<1x128xf32> to vector<24x128xf32>
      %524 = arith.mulf %521, %523 : vector<24x128xf32>
      %525 = vector.shape_cast %34 : vector<128xf32> to vector<1x128xf32>
      %526 = vector.broadcast %525 : vector<1x128xf32> to vector<24x128xf32>
      %527 = arith.mulf %521, %526 : vector<24x128xf32>
      %528 = vector.shape_cast %36 : vector<128xf32> to vector<1x128xf32>
      %529 = vector.broadcast %528 : vector<1x128xf32> to vector<24x128xf32>
      %530 = arith.mulf %521, %529 : vector<24x128xf32>
      %531 = arith.addf %513, %524 : vector<24x128xf32>
      %532 = arith.addf %516, %527 : vector<24x128xf32>
      %533 = arith.addf %519, %530 : vector<24x128xf32>
      %c0_172 = arith.constant 0 : index
      %c12 = arith.constant 12 : index
      %c0_173 = arith.constant 0 : index
      %c0_174 = arith.constant 0 : index
      %534 = vector.load %arg7[%c0_172, %c12, %c0_173, %c0_174] : memref<2x18x24x128xf32, #tpu.memory_space<vmem>>, vector<1x1x24x128xf32>
      %535 = vector.shape_cast %534 : vector<1x1x24x128xf32> to vector<24x128xf32>
      %536 = vector.shape_cast %38 : vector<128xf32> to vector<1x128xf32>
      %537 = vector.broadcast %536 : vector<1x128xf32> to vector<24x128xf32>
      %538 = arith.mulf %535, %537 : vector<24x128xf32>
      %539 = vector.shape_cast %40 : vector<128xf32> to vector<1x128xf32>
      %540 = vector.broadcast %539 : vector<1x128xf32> to vector<24x128xf32>
      %541 = arith.mulf %535, %540 : vector<24x128xf32>
      %542 = vector.shape_cast %42 : vector<128xf32> to vector<1x128xf32>
      %543 = vector.broadcast %542 : vector<1x128xf32> to vector<24x128xf32>
      %544 = arith.mulf %535, %543 : vector<24x128xf32>
      %545 = arith.addf %531, %538 : vector<24x128xf32>
      %546 = arith.addf %532, %541 : vector<24x128xf32>
      %547 = arith.addf %533, %544 : vector<24x128xf32>
      %548 = vector.extract_strided_slice %545 {offsets = [0, 0], sizes = [16, 128], strides = [1, 1]} : vector<24x128xf32> to vector<16x128xf32>
      %549 = vector.extract_strided_slice %546 {offsets = [1, 0], sizes = [16, 128], strides = [1, 1]} : vector<24x128xf32> to vector<16x128xf32>
      %550 = arith.addf %548, %549 : vector<16x128xf32>
      %551 = vector.extract_strided_slice %547 {offsets = [2, 0], sizes = [16, 128], strides = [1, 1]} : vector<24x128xf32> to vector<16x128xf32>
      %552 = arith.addf %550, %551 : vector<16x128xf32>
      %c160 = arith.constant 160 : index
      %c0_175 = arith.constant 0 : index
      %553 = vector.load %arg9[%c160, %c0_175] : memref<256x128xf32, #tpu.memory_space<vmem>>, vector<16x128xf32>
      tpu.vector_store %arg9[%c160, %c0_175], %552 {strides = array<i32>} : memref<256x128xf32, #tpu.memory_space<vmem>>, vector<16x128xf32>,
      %c0_176 = arith.constant 0 : index
      %c11_177 = arith.constant 11 : index
      %c0_178 = arith.constant 0 : index
      %c0_179 = arith.constant 0 : index
      %554 = vector.load %arg7[%c0_176, %c11_177, %c0_178, %c0_179] : memref<2x18x24x128xf32, #tpu.memory_space<vmem>>, vector<1x1x24x128xf32>
      %555 = vector.shape_cast %554 : vector<1x1x24x128xf32> to vector<24x128xf32>
      %556 = vector.shape_cast %26 : vector<128xf32> to vector<1x128xf32>
      %557 = vector.broadcast %556 : vector<1x128xf32> to vector<24x128xf32>
      %558 = arith.mulf %555, %557 : vector<24x128xf32>
      %559 = vector.shape_cast %28 : vector<128xf32> to vector<1x128xf32>
      %560 = vector.broadcast %559 : vector<1x128xf32> to vector<24x128xf32>
      %561 = arith.mulf %555, %560 : vector<24x128xf32>
      %562 = vector.shape_cast %30 : vector<128xf32> to vector<1x128xf32>
      %563 = vector.broadcast %562 : vector<1x128xf32> to vector<24x128xf32>
      %564 = arith.mulf %555, %563 : vector<24x128xf32>
      %c0_180 = arith.constant 0 : index
      %c12_181 = arith.constant 12 : index
      %c0_182 = arith.constant 0 : index
      %c0_183 = arith.constant 0 : index
      %565 = vector.load %arg7[%c0_180, %c12_181, %c0_182, %c0_183] : memref<2x18x24x128xf32, #tpu.memory_space<vmem>>, vector<1x1x24x128xf32>
      %566 = vector.shape_cast %565 : vector<1x1x24x128xf32> to vector<24x128xf32>
      %567 = vector.shape_cast %32 : vector<128xf32> to vector<1x128xf32>
      %568 = vector.broadcast %567 : vector<1x128xf32> to vector<24x128xf32>
      %569 = arith.mulf %566, %568 : vector<24x128xf32>
      %570 = vector.shape_cast %34 : vector<128xf32> to vector<1x128xf32>
      %571 = vector.broadcast %570 : vector<1x128xf32> to vector<24x128xf32>
      %572 = arith.mulf %566, %571 : vector<24x128xf32>
      %573 = vector.shape_cast %36 : vector<128xf32> to vector<1x128xf32>
      %574 = vector.broadcast %573 : vector<1x128xf32> to vector<24x128xf32>
      %575 = arith.mulf %566, %574 : vector<24x128xf32>
      %576 = arith.addf %558, %569 : vector<24x128xf32>
      %577 = arith.addf %561, %572 : vector<24x128xf32>
      %578 = arith.addf %564, %575 : vector<24x128xf32>
      %c0_184 = arith.constant 0 : index
      %c13 = arith.constant 13 : index
      %c0_185 = arith.constant 0 : index
      %c0_186 = arith.constant 0 : index
      %579 = vector.load %arg7[%c0_184, %c13, %c0_185, %c0_186] : memref<2x18x24x128xf32, #tpu.memory_space<vmem>>, vector<1x1x24x128xf32>
      %580 = vector.shape_cast %579 : vector<1x1x24x128xf32> to vector<24x128xf32>
      %581 = vector.shape_cast %38 : vector<128xf32> to vector<1x128xf32>
      %582 = vector.broadcast %581 : vector<1x128xf32> to vector<24x128xf32>
      %583 = arith.mulf %580, %582 : vector<24x128xf32>
      %584 = vector.shape_cast %40 : vector<128xf32> to vector<1x128xf32>
      %585 = vector.broadcast %584 : vector<1x128xf32> to vector<24x128xf32>
      %586 = arith.mulf %580, %585 : vector<24x128xf32>
      %587 = vector.shape_cast %42 : vector<128xf32> to vector<1x128xf32>
      %588 = vector.broadcast %587 : vector<1x128xf32> to vector<24x128xf32>
      %589 = arith.mulf %580, %588 : vector<24x128xf32>
      %590 = arith.addf %576, %583 : vector<24x128xf32>
      %591 = arith.addf %577, %586 : vector<24x128xf32>
      %592 = arith.addf %578, %589 : vector<24x128xf32>
      %593 = vector.extract_strided_slice %590 {offsets = [0, 0], sizes = [16, 128], strides = [1, 1]} : vector<24x128xf32> to vector<16x128xf32>
      %594 = vector.extract_strided_slice %591 {offsets = [1, 0], sizes = [16, 128], strides = [1, 1]} : vector<24x128xf32> to vector<16x128xf32>
      %595 = arith.addf %593, %594 : vector<16x128xf32>
      %596 = vector.extract_strided_slice %592 {offsets = [2, 0], sizes = [16, 128], strides = [1, 1]} : vector<24x128xf32> to vector<16x128xf32>
      %597 = arith.addf %595, %596 : vector<16x128xf32>
      %c176 = arith.constant 176 : index
      %c0_187 = arith.constant 0 : index
      %598 = vector.load %arg9[%c176, %c0_187] : memref<256x128xf32, #tpu.memory_space<vmem>>, vector<16x128xf32>
      tpu.vector_store %arg9[%c176, %c0_187], %597 {strides = array<i32>} : memref<256x128xf32, #tpu.memory_space<vmem>>, vector<16x128xf32>,
      %c0_188 = arith.constant 0 : index
      %c12_189 = arith.constant 12 : index
      %c0_190 = arith.constant 0 : index
      %c0_191 = arith.constant 0 : index
      %599 = vector.load %arg7[%c0_188, %c12_189, %c0_190, %c0_191] : memref<2x18x24x128xf32, #tpu.memory_space<vmem>>, vector<1x1x24x128xf32>
      %600 = vector.shape_cast %599 : vector<1x1x24x128xf32> to vector<24x128xf32>
      %601 = vector.shape_cast %26 : vector<128xf32> to vector<1x128xf32>
      %602 = vector.broadcast %601 : vector<1x128xf32> to vector<24x128xf32>
      %603 = arith.mulf %600, %602 : vector<24x128xf32>
      %604 = vector.shape_cast %28 : vector<128xf32> to vector<1x128xf32>
      %605 = vector.broadcast %604 : vector<1x128xf32> to vector<24x128xf32>
      %606 = arith.mulf %600, %605 : vector<24x128xf32>
      %607 = vector.shape_cast %30 : vector<128xf32> to vector<1x128xf32>
      %608 = vector.broadcast %607 : vector<1x128xf32> to vector<24x128xf32>
      %609 = arith.mulf %600, %608 : vector<24x128xf32>
      %c0_192 = arith.constant 0 : index
      %c13_193 = arith.constant 13 : index
      %c0_194 = arith.constant 0 : index
      %c0_195 = arith.constant 0 : index
      %610 = vector.load %arg7[%c0_192, %c13_193, %c0_194, %c0_195] : memref<2x18x24x128xf32, #tpu.memory_space<vmem>>, vector<1x1x24x128xf32>
      %611 = vector.shape_cast %610 : vector<1x1x24x128xf32> to vector<24x128xf32>
      %612 = vector.shape_cast %32 : vector<128xf32> to vector<1x128xf32>
      %613 = vector.broadcast %612 : vector<1x128xf32> to vector<24x128xf32>
      %614 = arith.mulf %611, %613 : vector<24x128xf32>
      %615 = vector.shape_cast %34 : vector<128xf32> to vector<1x128xf32>
      %616 = vector.broadcast %615 : vector<1x128xf32> to vector<24x128xf32>
      %617 = arith.mulf %611, %616 : vector<24x128xf32>
      %618 = vector.shape_cast %36 : vector<128xf32> to vector<1x128xf32>
      %619 = vector.broadcast %618 : vector<1x128xf32> to vector<24x128xf32>
      %620 = arith.mulf %611, %619 : vector<24x128xf32>
      %621 = arith.addf %603, %614 : vector<24x128xf32>
      %622 = arith.addf %606, %617 : vector<24x128xf32>
      %623 = arith.addf %609, %620 : vector<24x128xf32>
      %c0_196 = arith.constant 0 : index
      %c14 = arith.constant 14 : index
      %c0_197 = arith.constant 0 : index
      %c0_198 = arith.constant 0 : index
      %624 = vector.load %arg7[%c0_196, %c14, %c0_197, %c0_198] : memref<2x18x24x128xf32, #tpu.memory_space<vmem>>, vector<1x1x24x128xf32>
      %625 = vector.shape_cast %624 : vector<1x1x24x128xf32> to vector<24x128xf32>
      %626 = vector.shape_cast %38 : vector<128xf32> to vector<1x128xf32>
      %627 = vector.broadcast %626 : vector<1x128xf32> to vector<24x128xf32>
      %628 = arith.mulf %625, %627 : vector<24x128xf32>
      %629 = vector.shape_cast %40 : vector<128xf32> to vector<1x128xf32>
      %630 = vector.broadcast %629 : vector<1x128xf32> to vector<24x128xf32>
      %631 = arith.mulf %625, %630 : vector<24x128xf32>
      %632 = vector.shape_cast %42 : vector<128xf32> to vector<1x128xf32>
      %633 = vector.broadcast %632 : vector<1x128xf32> to vector<24x128xf32>
      %634 = arith.mulf %625, %633 : vector<24x128xf32>
      %635 = arith.addf %621, %628 : vector<24x128xf32>
      %636 = arith.addf %622, %631 : vector<24x128xf32>
      %637 = arith.addf %623, %634 : vector<24x128xf32>
      %638 = vector.extract_strided_slice %635 {offsets = [0, 0], sizes = [16, 128], strides = [1, 1]} : vector<24x128xf32> to vector<16x128xf32>
      %639 = vector.extract_strided_slice %636 {offsets = [1, 0], sizes = [16, 128], strides = [1, 1]} : vector<24x128xf32> to vector<16x128xf32>
      %640 = arith.addf %638, %639 : vector<16x128xf32>
      %641 = vector.extract_strided_slice %637 {offsets = [2, 0], sizes = [16, 128], strides = [1, 1]} : vector<24x128xf32> to vector<16x128xf32>
      %642 = arith.addf %640, %641 : vector<16x128xf32>
      %c192 = arith.constant 192 : index
      %c0_199 = arith.constant 0 : index
      %643 = vector.load %arg9[%c192, %c0_199] : memref<256x128xf32, #tpu.memory_space<vmem>>, vector<16x128xf32>
      tpu.vector_store %arg9[%c192, %c0_199], %642 {strides = array<i32>} : memref<256x128xf32, #tpu.memory_space<vmem>>, vector<16x128xf32>,
      %c0_200 = arith.constant 0 : index
      %c13_201 = arith.constant 13 : index
      %c0_202 = arith.constant 0 : index
      %c0_203 = arith.constant 0 : index
      %644 = vector.load %arg7[%c0_200, %c13_201, %c0_202, %c0_203] : memref<2x18x24x128xf32, #tpu.memory_space<vmem>>, vector<1x1x24x128xf32>
      %645 = vector.shape_cast %644 : vector<1x1x24x128xf32> to vector<24x128xf32>
      %646 = vector.shape_cast %26 : vector<128xf32> to vector<1x128xf32>
      %647 = vector.broadcast %646 : vector<1x128xf32> to vector<24x128xf32>
      %648 = arith.mulf %645, %647 : vector<24x128xf32>
      %649 = vector.shape_cast %28 : vector<128xf32> to vector<1x128xf32>
      %650 = vector.broadcast %649 : vector<1x128xf32> to vector<24x128xf32>
      %651 = arith.mulf %645, %650 : vector<24x128xf32>
      %652 = vector.shape_cast %30 : vector<128xf32> to vector<1x128xf32>
      %653 = vector.broadcast %652 : vector<1x128xf32> to vector<24x128xf32>
      %654 = arith.mulf %645, %653 : vector<24x128xf32>
      %c0_204 = arith.constant 0 : index
      %c14_205 = arith.constant 14 : index
      %c0_206 = arith.constant 0 : index
      %c0_207 = arith.constant 0 : index
      %655 = vector.load %arg7[%c0_204, %c14_205, %c0_206, %c0_207] : memref<2x18x24x128xf32, #tpu.memory_space<vmem>>, vector<1x1x24x128xf32>
      %656 = vector.shape_cast %655 : vector<1x1x24x128xf32> to vector<24x128xf32>
      %657 = vector.shape_cast %32 : vector<128xf32> to vector<1x128xf32>
      %658 = vector.broadcast %657 : vector<1x128xf32> to vector<24x128xf32>
      %659 = arith.mulf %656, %658 : vector<24x128xf32>
      %660 = vector.shape_cast %34 : vector<128xf32> to vector<1x128xf32>
      %661 = vector.broadcast %660 : vector<1x128xf32> to vector<24x128xf32>
      %662 = arith.mulf %656, %661 : vector<24x128xf32>
      %663 = vector.shape_cast %36 : vector<128xf32> to vector<1x128xf32>
      %664 = vector.broadcast %663 : vector<1x128xf32> to vector<24x128xf32>
      %665 = arith.mulf %656, %664 : vector<24x128xf32>
      %666 = arith.addf %648, %659 : vector<24x128xf32>
      %667 = arith.addf %651, %662 : vector<24x128xf32>
      %668 = arith.addf %654, %665 : vector<24x128xf32>
      %c0_208 = arith.constant 0 : index
      %c15 = arith.constant 15 : index
      %c0_209 = arith.constant 0 : index
      %c0_210 = arith.constant 0 : index
      %669 = vector.load %arg7[%c0_208, %c15, %c0_209, %c0_210] : memref<2x18x24x128xf32, #tpu.memory_space<vmem>>, vector<1x1x24x128xf32>
      %670 = vector.shape_cast %669 : vector<1x1x24x128xf32> to vector<24x128xf32>
      %671 = vector.shape_cast %38 : vector<128xf32> to vector<1x128xf32>
      %672 = vector.broadcast %671 : vector<1x128xf32> to vector<24x128xf32>
      %673 = arith.mulf %670, %672 : vector<24x128xf32>
      %674 = vector.shape_cast %40 : vector<128xf32> to vector<1x128xf32>
      %675 = vector.broadcast %674 : vector<1x128xf32> to vector<24x128xf32>
      %676 = arith.mulf %670, %675 : vector<24x128xf32>
      %677 = vector.shape_cast %42 : vector<128xf32> to vector<1x128xf32>
      %678 = vector.broadcast %677 : vector<1x128xf32> to vector<24x128xf32>
      %679 = arith.mulf %670, %678 : vector<24x128xf32>
      %680 = arith.addf %666, %673 : vector<24x128xf32>
      %681 = arith.addf %667, %676 : vector<24x128xf32>
      %682 = arith.addf %668, %679 : vector<24x128xf32>
      %683 = vector.extract_strided_slice %680 {offsets = [0, 0], sizes = [16, 128], strides = [1, 1]} : vector<24x128xf32> to vector<16x128xf32>
      %684 = vector.extract_strided_slice %681 {offsets = [1, 0], sizes = [16, 128], strides = [1, 1]} : vector<24x128xf32> to vector<16x128xf32>
      %685 = arith.addf %683, %684 : vector<16x128xf32>
      %686 = vector.extract_strided_slice %682 {offsets = [2, 0], sizes = [16, 128], strides = [1, 1]} : vector<24x128xf32> to vector<16x128xf32>
      %687 = arith.addf %685, %686 : vector<16x128xf32>
      %c208 = arith.constant 208 : index
      %c0_211 = arith.constant 0 : index
      %688 = vector.load %arg9[%c208, %c0_211] : memref<256x128xf32, #tpu.memory_space<vmem>>, vector<16x128xf32>
      tpu.vector_store %arg9[%c208, %c0_211], %687 {strides = array<i32>} : memref<256x128xf32, #tpu.memory_space<vmem>>, vector<16x128xf32>,
      %c0_212 = arith.constant 0 : index
      %c14_213 = arith.constant 14 : index
      %c0_214 = arith.constant 0 : index
      %c0_215 = arith.constant 0 : index
      %689 = vector.load %arg7[%c0_212, %c14_213, %c0_214, %c0_215] : memref<2x18x24x128xf32, #tpu.memory_space<vmem>>, vector<1x1x24x128xf32>
      %690 = vector.shape_cast %689 : vector<1x1x24x128xf32> to vector<24x128xf32>
      %691 = vector.shape_cast %26 : vector<128xf32> to vector<1x128xf32>
      %692 = vector.broadcast %691 : vector<1x128xf32> to vector<24x128xf32>
      %693 = arith.mulf %690, %692 : vector<24x128xf32>
      %694 = vector.shape_cast %28 : vector<128xf32> to vector<1x128xf32>
      %695 = vector.broadcast %694 : vector<1x128xf32> to vector<24x128xf32>
      %696 = arith.mulf %690, %695 : vector<24x128xf32>
      %697 = vector.shape_cast %30 : vector<128xf32> to vector<1x128xf32>
      %698 = vector.broadcast %697 : vector<1x128xf32> to vector<24x128xf32>
      %699 = arith.mulf %690, %698 : vector<24x128xf32>
      %c0_216 = arith.constant 0 : index
      %c15_217 = arith.constant 15 : index
      %c0_218 = arith.constant 0 : index
      %c0_219 = arith.constant 0 : index
      %700 = vector.load %arg7[%c0_216, %c15_217, %c0_218, %c0_219] : memref<2x18x24x128xf32, #tpu.memory_space<vmem>>, vector<1x1x24x128xf32>
      %701 = vector.shape_cast %700 : vector<1x1x24x128xf32> to vector<24x128xf32>
      %702 = vector.shape_cast %32 : vector<128xf32> to vector<1x128xf32>
      %703 = vector.broadcast %702 : vector<1x128xf32> to vector<24x128xf32>
      %704 = arith.mulf %701, %703 : vector<24x128xf32>
      %705 = vector.shape_cast %34 : vector<128xf32> to vector<1x128xf32>
      %706 = vector.broadcast %705 : vector<1x128xf32> to vector<24x128xf32>
      %707 = arith.mulf %701, %706 : vector<24x128xf32>
      %708 = vector.shape_cast %36 : vector<128xf32> to vector<1x128xf32>
      %709 = vector.broadcast %708 : vector<1x128xf32> to vector<24x128xf32>
      %710 = arith.mulf %701, %709 : vector<24x128xf32>
      %711 = arith.addf %693, %704 : vector<24x128xf32>
      %712 = arith.addf %696, %707 : vector<24x128xf32>
      %713 = arith.addf %699, %710 : vector<24x128xf32>
      %c0_220 = arith.constant 0 : index
      %c16_221 = arith.constant 16 : index
      %c0_222 = arith.constant 0 : index
      %c0_223 = arith.constant 0 : index
      %714 = vector.load %arg7[%c0_220, %c16_221, %c0_222, %c0_223] : memref<2x18x24x128xf32, #tpu.memory_space<vmem>>, vector<1x1x24x128xf32>
      %715 = vector.shape_cast %714 : vector<1x1x24x128xf32> to vector<24x128xf32>
      %716 = vector.shape_cast %38 : vector<128xf32> to vector<1x128xf32>
      %717 = vector.broadcast %716 : vector<1x128xf32> to vector<24x128xf32>
      %718 = arith.mulf %715, %717 : vector<24x128xf32>
      %719 = vector.shape_cast %40 : vector<128xf32> to vector<1x128xf32>
      %720 = vector.broadcast %719 : vector<1x128xf32> to vector<24x128xf32>
      %721 = arith.mulf %715, %720 : vector<24x128xf32>
      %722 = vector.shape_cast %42 : vector<128xf32> to vector<1x128xf32>
      %723 = vector.broadcast %722 : vector<1x128xf32> to vector<24x128xf32>
      %724 = arith.mulf %715, %723 : vector<24x128xf32>
      %725 = arith.addf %711, %718 : vector<24x128xf32>
      %726 = arith.addf %712, %721 : vector<24x128xf32>
      %727 = arith.addf %713, %724 : vector<24x128xf32>
      %728 = vector.extract_strided_slice %725 {offsets = [0, 0], sizes = [16, 128], strides = [1, 1]} : vector<24x128xf32> to vector<16x128xf32>
      %729 = vector.extract_strided_slice %726 {offsets = [1, 0], sizes = [16, 128], strides = [1, 1]} : vector<24x128xf32> to vector<16x128xf32>
      %730 = arith.addf %728, %729 : vector<16x128xf32>
      %731 = vector.extract_strided_slice %727 {offsets = [2, 0], sizes = [16, 128], strides = [1, 1]} : vector<24x128xf32> to vector<16x128xf32>
      %732 = arith.addf %730, %731 : vector<16x128xf32>
      %c224 = arith.constant 224 : index
      %c0_224 = arith.constant 0 : index
      %733 = vector.load %arg9[%c224, %c0_224] : memref<256x128xf32, #tpu.memory_space<vmem>>, vector<16x128xf32>
      tpu.vector_store %arg9[%c224, %c0_224], %732 {strides = array<i32>} : memref<256x128xf32, #tpu.memory_space<vmem>>, vector<16x128xf32>,
      %c0_225 = arith.constant 0 : index
      %c15_226 = arith.constant 15 : index
      %c0_227 = arith.constant 0 : index
      %c0_228 = arith.constant 0 : index
      %734 = vector.load %arg7[%c0_225, %c15_226, %c0_227, %c0_228] : memref<2x18x24x128xf32, #tpu.memory_space<vmem>>, vector<1x1x24x128xf32>
      %735 = vector.shape_cast %734 : vector<1x1x24x128xf32> to vector<24x128xf32>
      %736 = vector.shape_cast %26 : vector<128xf32> to vector<1x128xf32>
      %737 = vector.broadcast %736 : vector<1x128xf32> to vector<24x128xf32>
      %738 = arith.mulf %735, %737 : vector<24x128xf32>
      %739 = vector.shape_cast %28 : vector<128xf32> to vector<1x128xf32>
      %740 = vector.broadcast %739 : vector<1x128xf32> to vector<24x128xf32>
      %741 = arith.mulf %735, %740 : vector<24x128xf32>
      %742 = vector.shape_cast %30 : vector<128xf32> to vector<1x128xf32>
      %743 = vector.broadcast %742 : vector<1x128xf32> to vector<24x128xf32>
      %744 = arith.mulf %735, %743 : vector<24x128xf32>
      %c0_229 = arith.constant 0 : index
      %c16_230 = arith.constant 16 : index
      %c0_231 = arith.constant 0 : index
      %c0_232 = arith.constant 0 : index
      %745 = vector.load %arg7[%c0_229, %c16_230, %c0_231, %c0_232] : memref<2x18x24x128xf32, #tpu.memory_space<vmem>>, vector<1x1x24x128xf32>
      %746 = vector.shape_cast %745 : vector<1x1x24x128xf32> to vector<24x128xf32>
      %747 = vector.shape_cast %32 : vector<128xf32> to vector<1x128xf32>
      %748 = vector.broadcast %747 : vector<1x128xf32> to vector<24x128xf32>
      %749 = arith.mulf %746, %748 : vector<24x128xf32>
      %750 = vector.shape_cast %34 : vector<128xf32> to vector<1x128xf32>
      %751 = vector.broadcast %750 : vector<1x128xf32> to vector<24x128xf32>
      %752 = arith.mulf %746, %751 : vector<24x128xf32>
      %753 = vector.shape_cast %36 : vector<128xf32> to vector<1x128xf32>
      %754 = vector.broadcast %753 : vector<1x128xf32> to vector<24x128xf32>
      %755 = arith.mulf %746, %754 : vector<24x128xf32>
      %756 = arith.addf %738, %749 : vector<24x128xf32>
      %757 = arith.addf %741, %752 : vector<24x128xf32>
      %758 = arith.addf %744, %755 : vector<24x128xf32>
      %c0_233 = arith.constant 0 : index
      %c17 = arith.constant 17 : index
      %c0_234 = arith.constant 0 : index
      %c0_235 = arith.constant 0 : index
      %759 = vector.load %arg7[%c0_233, %c17, %c0_234, %c0_235] : memref<2x18x24x128xf32, #tpu.memory_space<vmem>>, vector<1x1x24x128xf32>
      %760 = vector.shape_cast %759 : vector<1x1x24x128xf32> to vector<24x128xf32>
      %761 = vector.shape_cast %38 : vector<128xf32> to vector<1x128xf32>
      %762 = vector.broadcast %761 : vector<1x128xf32> to vector<24x128xf32>
      %763 = arith.mulf %760, %762 : vector<24x128xf32>
      %764 = vector.shape_cast %40 : vector<128xf32> to vector<1x128xf32>
      %765 = vector.broadcast %764 : vector<1x128xf32> to vector<24x128xf32>
      %766 = arith.mulf %760, %765 : vector<24x128xf32>
      %767 = vector.shape_cast %42 : vector<128xf32> to vector<1x128xf32>
      %768 = vector.broadcast %767 : vector<1x128xf32> to vector<24x128xf32>
      %769 = arith.mulf %760, %768 : vector<24x128xf32>
      %770 = arith.addf %756, %763 : vector<24x128xf32>
      %771 = arith.addf %757, %766 : vector<24x128xf32>
      %772 = arith.addf %758, %769 : vector<24x128xf32>
      %773 = vector.extract_strided_slice %770 {offsets = [0, 0], sizes = [16, 128], strides = [1, 1]} : vector<24x128xf32> to vector<16x128xf32>
      %774 = vector.extract_strided_slice %771 {offsets = [1, 0], sizes = [16, 128], strides = [1, 1]} : vector<24x128xf32> to vector<16x128xf32>
      %775 = arith.addf %773, %774 : vector<16x128xf32>
      %776 = vector.extract_strided_slice %772 {offsets = [2, 0], sizes = [16, 128], strides = [1, 1]} : vector<24x128xf32> to vector<16x128xf32>
      %777 = arith.addf %775, %776 : vector<16x128xf32>
      %c240 = arith.constant 240 : index
      %c0_236 = arith.constant 0 : index
      %778 = vector.load %arg9[%c240, %c0_236] : memref<256x128xf32, #tpu.memory_space<vmem>>, vector<16x128xf32>
      tpu.vector_store %arg9[%c240, %c0_236], %777 {strides = array<i32>} : memref<256x128xf32, #tpu.memory_space<vmem>>, vector<16x128xf32>,
    } else {
    }
    %c1_i32_24 = arith.constant 1 : i32
    %46 = arith.cmpi eq, %16, %c1_i32_24 : i32
    %47 = arith.extui %46 : i1 to i32
    %c0_i32_25 = arith.constant 0 : i32
    %48 = arith.cmpi ne, %47, %c0_i32_25 : i32
    scf.if %48 {
      %c1_36 = arith.constant 1 : index
      %c0_37 = arith.constant 0 : index
      %c0_38 = arith.constant 0 : index
      %c0_39 = arith.constant 0 : index
      %59 = vector.load %arg7[%c1_36, %c0_37, %c0_38, %c0_39] : memref<2x18x24x128xf32, #tpu.memory_space<vmem>>, vector<1x1x24x128xf32>
      %60 = vector.shape_cast %59 : vector<1x1x24x128xf32> to vector<24x128xf32>
      %61 = vector.shape_cast %26 : vector<128xf32> to vector<1x128xf32>
      %62 = vector.broadcast %61 : vector<1x128xf32> to vector<24x128xf32>
      %63 = arith.mulf %60, %62 : vector<24x128xf32>
      %64 = vector.shape_cast %28 : vector<128xf32> to vector<1x128xf32>
      %65 = vector.broadcast %64 : vector<1x128xf32> to vector<24x128xf32>
      %66 = arith.mulf %60, %65 : vector<24x128xf32>
      %67 = vector.shape_cast %30 : vector<128xf32> to vector<1x128xf32>
      %68 = vector.broadcast %67 : vector<1x128xf32> to vector<24x128xf32>
      %69 = arith.mulf %60, %68 : vector<24x128xf32>
      %c1_40 = arith.constant 1 : index
      %c1_41 = arith.constant 1 : index
      %c0_42 = arith.constant 0 : index
      %c0_43 = arith.constant 0 : index
      %70 = vector.load %arg7[%c1_40, %c1_41, %c0_42, %c0_43] : memref<2x18x24x128xf32, #tpu.memory_space<vmem>>, vector<1x1x24x128xf32>
      %71 = vector.shape_cast %70 : vector<1x1x24x128xf32> to vector<24x128xf32>
      %72 = vector.shape_cast %32 : vector<128xf32> to vector<1x128xf32>
      %73 = vector.broadcast %72 : vector<1x128xf32> to vector<24x128xf32>
      %74 = arith.mulf %71, %73 : vector<24x128xf32>
      %75 = vector.shape_cast %34 : vector<128xf32> to vector<1x128xf32>
      %76 = vector.broadcast %75 : vector<1x128xf32> to vector<24x128xf32>
      %77 = arith.mulf %71, %76 : vector<24x128xf32>
      %78 = vector.shape_cast %36 : vector<128xf32> to vector<1x128xf32>
      %79 = vector.broadcast %78 : vector<1x128xf32> to vector<24x128xf32>
      %80 = arith.mulf %71, %79 : vector<24x128xf32>
      %81 = arith.addf %63, %74 : vector<24x128xf32>
      %82 = arith.addf %66, %77 : vector<24x128xf32>
      %83 = arith.addf %69, %80 : vector<24x128xf32>
      %c1_44 = arith.constant 1 : index
      %c2_45 = arith.constant 2 : index
      %c0_46 = arith.constant 0 : index
      %c0_47 = arith.constant 0 : index
      %84 = vector.load %arg7[%c1_44, %c2_45, %c0_46, %c0_47] : memref<2x18x24x128xf32, #tpu.memory_space<vmem>>, vector<1x1x24x128xf32>
      %85 = vector.shape_cast %84 : vector<1x1x24x128xf32> to vector<24x128xf32>
      %86 = vector.shape_cast %38 : vector<128xf32> to vector<1x128xf32>
      %87 = vector.broadcast %86 : vector<1x128xf32> to vector<24x128xf32>
      %88 = arith.mulf %85, %87 : vector<24x128xf32>
      %89 = vector.shape_cast %40 : vector<128xf32> to vector<1x128xf32>
      %90 = vector.broadcast %89 : vector<1x128xf32> to vector<24x128xf32>
      %91 = arith.mulf %85, %90 : vector<24x128xf32>
      %92 = vector.shape_cast %42 : vector<128xf32> to vector<1x128xf32>
      %93 = vector.broadcast %92 : vector<1x128xf32> to vector<24x128xf32>
      %94 = arith.mulf %85, %93 : vector<24x128xf32>
      %95 = arith.addf %81, %88 : vector<24x128xf32>
      %96 = arith.addf %82, %91 : vector<24x128xf32>
      %97 = arith.addf %83, %94 : vector<24x128xf32>
      %98 = vector.extract_strided_slice %95 {offsets = [0, 0], sizes = [16, 128], strides = [1, 1]} : vector<24x128xf32> to vector<16x128xf32>
      %99 = vector.extract_strided_slice %96 {offsets = [1, 0], sizes = [16, 128], strides = [1, 1]} : vector<24x128xf32> to vector<16x128xf32>
      %100 = arith.addf %98, %99 : vector<16x128xf32>
      %101 = vector.extract_strided_slice %97 {offsets = [2, 0], sizes = [16, 128], strides = [1, 1]} : vector<24x128xf32> to vector<16x128xf32>
      %102 = arith.addf %100, %101 : vector<16x128xf32>
      %c0_48 = arith.constant 0 : index
      %c0_49 = arith.constant 0 : index
      %103 = vector.load %arg9[%c0_48, %c0_49] : memref<256x128xf32, #tpu.memory_space<vmem>>, vector<16x128xf32>
      tpu.vector_store %arg9[%c0_48, %c0_49], %102 {strides = array<i32>} : memref<256x128xf32, #tpu.memory_space<vmem>>, vector<16x128xf32>,
      %c1_50 = arith.constant 1 : index
      %c1_51 = arith.constant 1 : index
      %c0_52 = arith.constant 0 : index
      %c0_53 = arith.constant 0 : index
      %104 = vector.load %arg7[%c1_50, %c1_51, %c0_52, %c0_53] : memref<2x18x24x128xf32, #tpu.memory_space<vmem>>, vector<1x1x24x128xf32>
      %105 = vector.shape_cast %104 : vector<1x1x24x128xf32> to vector<24x128xf32>
      %106 = vector.shape_cast %26 : vector<128xf32> to vector<1x128xf32>
      %107 = vector.broadcast %106 : vector<1x128xf32> to vector<24x128xf32>
      %108 = arith.mulf %105, %107 : vector<24x128xf32>
      %109 = vector.shape_cast %28 : vector<128xf32> to vector<1x128xf32>
      %110 = vector.broadcast %109 : vector<1x128xf32> to vector<24x128xf32>
      %111 = arith.mulf %105, %110 : vector<24x128xf32>
      %112 = vector.shape_cast %30 : vector<128xf32> to vector<1x128xf32>
      %113 = vector.broadcast %112 : vector<1x128xf32> to vector<24x128xf32>
      %114 = arith.mulf %105, %113 : vector<24x128xf32>
      %c1_54 = arith.constant 1 : index
      %c2_55 = arith.constant 2 : index
      %c0_56 = arith.constant 0 : index
      %c0_57 = arith.constant 0 : index
      %115 = vector.load %arg7[%c1_54, %c2_55, %c0_56, %c0_57] : memref<2x18x24x128xf32, #tpu.memory_space<vmem>>, vector<1x1x24x128xf32>
      %116 = vector.shape_cast %115 : vector<1x1x24x128xf32> to vector<24x128xf32>
      %117 = vector.shape_cast %32 : vector<128xf32> to vector<1x128xf32>
      %118 = vector.broadcast %117 : vector<1x128xf32> to vector<24x128xf32>
      %119 = arith.mulf %116, %118 : vector<24x128xf32>
      %120 = vector.shape_cast %34 : vector<128xf32> to vector<1x128xf32>
      %121 = vector.broadcast %120 : vector<1x128xf32> to vector<24x128xf32>
      %122 = arith.mulf %116, %121 : vector<24x128xf32>
      %123 = vector.shape_cast %36 : vector<128xf32> to vector<1x128xf32>
      %124 = vector.broadcast %123 : vector<1x128xf32> to vector<24x128xf32>
      %125 = arith.mulf %116, %124 : vector<24x128xf32>
      %126 = arith.addf %108, %119 : vector<24x128xf32>
      %127 = arith.addf %111, %122 : vector<24x128xf32>
      %128 = arith.addf %114, %125 : vector<24x128xf32>
      %c1_58 = arith.constant 1 : index
      %c3_59 = arith.constant 3 : index
      %c0_60 = arith.constant 0 : index
      %c0_61 = arith.constant 0 : index
      %129 = vector.load %arg7[%c1_58, %c3_59, %c0_60, %c0_61] : memref<2x18x24x128xf32, #tpu.memory_space<vmem>>, vector<1x1x24x128xf32>
      %130 = vector.shape_cast %129 : vector<1x1x24x128xf32> to vector<24x128xf32>
      %131 = vector.shape_cast %38 : vector<128xf32> to vector<1x128xf32>
      %132 = vector.broadcast %131 : vector<1x128xf32> to vector<24x128xf32>
      %133 = arith.mulf %130, %132 : vector<24x128xf32>
      %134 = vector.shape_cast %40 : vector<128xf32> to vector<1x128xf32>
      %135 = vector.broadcast %134 : vector<1x128xf32> to vector<24x128xf32>
      %136 = arith.mulf %130, %135 : vector<24x128xf32>
      %137 = vector.shape_cast %42 : vector<128xf32> to vector<1x128xf32>
      %138 = vector.broadcast %137 : vector<1x128xf32> to vector<24x128xf32>
      %139 = arith.mulf %130, %138 : vector<24x128xf32>
      %140 = arith.addf %126, %133 : vector<24x128xf32>
      %141 = arith.addf %127, %136 : vector<24x128xf32>
      %142 = arith.addf %128, %139 : vector<24x128xf32>
      %143 = vector.extract_strided_slice %140 {offsets = [0, 0], sizes = [16, 128], strides = [1, 1]} : vector<24x128xf32> to vector<16x128xf32>
      %144 = vector.extract_strided_slice %141 {offsets = [1, 0], sizes = [16, 128], strides = [1, 1]} : vector<24x128xf32> to vector<16x128xf32>
      %145 = arith.addf %143, %144 : vector<16x128xf32>
      %146 = vector.extract_strided_slice %142 {offsets = [2, 0], sizes = [16, 128], strides = [1, 1]} : vector<24x128xf32> to vector<16x128xf32>
      %147 = arith.addf %145, %146 : vector<16x128xf32>
      %c16 = arith.constant 16 : index
      %c0_62 = arith.constant 0 : index
      %148 = vector.load %arg9[%c16, %c0_62] : memref<256x128xf32, #tpu.memory_space<vmem>>, vector<16x128xf32>
      tpu.vector_store %arg9[%c16, %c0_62], %147 {strides = array<i32>} : memref<256x128xf32, #tpu.memory_space<vmem>>, vector<16x128xf32>,
      %c1_63 = arith.constant 1 : index
      %c2_64 = arith.constant 2 : index
      %c0_65 = arith.constant 0 : index
      %c0_66 = arith.constant 0 : index
      %149 = vector.load %arg7[%c1_63, %c2_64, %c0_65, %c0_66] : memref<2x18x24x128xf32, #tpu.memory_space<vmem>>, vector<1x1x24x128xf32>
      %150 = vector.shape_cast %149 : vector<1x1x24x128xf32> to vector<24x128xf32>
      %151 = vector.shape_cast %26 : vector<128xf32> to vector<1x128xf32>
      %152 = vector.broadcast %151 : vector<1x128xf32> to vector<24x128xf32>
      %153 = arith.mulf %150, %152 : vector<24x128xf32>
      %154 = vector.shape_cast %28 : vector<128xf32> to vector<1x128xf32>
      %155 = vector.broadcast %154 : vector<1x128xf32> to vector<24x128xf32>
      %156 = arith.mulf %150, %155 : vector<24x128xf32>
      %157 = vector.shape_cast %30 : vector<128xf32> to vector<1x128xf32>
      %158 = vector.broadcast %157 : vector<1x128xf32> to vector<24x128xf32>
      %159 = arith.mulf %150, %158 : vector<24x128xf32>
      %c1_67 = arith.constant 1 : index
      %c3_68 = arith.constant 3 : index
      %c0_69 = arith.constant 0 : index
      %c0_70 = arith.constant 0 : index
      %160 = vector.load %arg7[%c1_67, %c3_68, %c0_69, %c0_70] : memref<2x18x24x128xf32, #tpu.memory_space<vmem>>, vector<1x1x24x128xf32>
      %161 = vector.shape_cast %160 : vector<1x1x24x128xf32> to vector<24x128xf32>
      %162 = vector.shape_cast %32 : vector<128xf32> to vector<1x128xf32>
      %163 = vector.broadcast %162 : vector<1x128xf32> to vector<24x128xf32>
      %164 = arith.mulf %161, %163 : vector<24x128xf32>
      %165 = vector.shape_cast %34 : vector<128xf32> to vector<1x128xf32>
      %166 = vector.broadcast %165 : vector<1x128xf32> to vector<24x128xf32>
      %167 = arith.mulf %161, %166 : vector<24x128xf32>
      %168 = vector.shape_cast %36 : vector<128xf32> to vector<1x128xf32>
      %169 = vector.broadcast %168 : vector<1x128xf32> to vector<24x128xf32>
      %170 = arith.mulf %161, %169 : vector<24x128xf32>
      %171 = arith.addf %153, %164 : vector<24x128xf32>
      %172 = arith.addf %156, %167 : vector<24x128xf32>
      %173 = arith.addf %159, %170 : vector<24x128xf32>
      %c1_71 = arith.constant 1 : index
      %c4_72 = arith.constant 4 : index
      %c0_73 = arith.constant 0 : index
      %c0_74 = arith.constant 0 : index
      %174 = vector.load %arg7[%c1_71, %c4_72, %c0_73, %c0_74] : memref<2x18x24x128xf32, #tpu.memory_space<vmem>>, vector<1x1x24x128xf32>
      %175 = vector.shape_cast %174 : vector<1x1x24x128xf32> to vector<24x128xf32>
      %176 = vector.shape_cast %38 : vector<128xf32> to vector<1x128xf32>
      %177 = vector.broadcast %176 : vector<1x128xf32> to vector<24x128xf32>
      %178 = arith.mulf %175, %177 : vector<24x128xf32>
      %179 = vector.shape_cast %40 : vector<128xf32> to vector<1x128xf32>
      %180 = vector.broadcast %179 : vector<1x128xf32> to vector<24x128xf32>
      %181 = arith.mulf %175, %180 : vector<24x128xf32>
      %182 = vector.shape_cast %42 : vector<128xf32> to vector<1x128xf32>
      %183 = vector.broadcast %182 : vector<1x128xf32> to vector<24x128xf32>
      %184 = arith.mulf %175, %183 : vector<24x128xf32>
      %185 = arith.addf %171, %178 : vector<24x128xf32>
      %186 = arith.addf %172, %181 : vector<24x128xf32>
      %187 = arith.addf %173, %184 : vector<24x128xf32>
      %188 = vector.extract_strided_slice %185 {offsets = [0, 0], sizes = [16, 128], strides = [1, 1]} : vector<24x128xf32> to vector<16x128xf32>
      %189 = vector.extract_strided_slice %186 {offsets = [1, 0], sizes = [16, 128], strides = [1, 1]} : vector<24x128xf32> to vector<16x128xf32>
      %190 = arith.addf %188, %189 : vector<16x128xf32>
      %191 = vector.extract_strided_slice %187 {offsets = [2, 0], sizes = [16, 128], strides = [1, 1]} : vector<24x128xf32> to vector<16x128xf32>
      %192 = arith.addf %190, %191 : vector<16x128xf32>
      %c32 = arith.constant 32 : index
      %c0_75 = arith.constant 0 : index
      %193 = vector.load %arg9[%c32, %c0_75] : memref<256x128xf32, #tpu.memory_space<vmem>>, vector<16x128xf32>
      tpu.vector_store %arg9[%c32, %c0_75], %192 {strides = array<i32>} : memref<256x128xf32, #tpu.memory_space<vmem>>, vector<16x128xf32>,
      %c1_76 = arith.constant 1 : index
      %c3_77 = arith.constant 3 : index
      %c0_78 = arith.constant 0 : index
      %c0_79 = arith.constant 0 : index
      %194 = vector.load %arg7[%c1_76, %c3_77, %c0_78, %c0_79] : memref<2x18x24x128xf32, #tpu.memory_space<vmem>>, vector<1x1x24x128xf32>
      %195 = vector.shape_cast %194 : vector<1x1x24x128xf32> to vector<24x128xf32>
      %196 = vector.shape_cast %26 : vector<128xf32> to vector<1x128xf32>
      %197 = vector.broadcast %196 : vector<1x128xf32> to vector<24x128xf32>
      %198 = arith.mulf %195, %197 : vector<24x128xf32>
      %199 = vector.shape_cast %28 : vector<128xf32> to vector<1x128xf32>
      %200 = vector.broadcast %199 : vector<1x128xf32> to vector<24x128xf32>
      %201 = arith.mulf %195, %200 : vector<24x128xf32>
      %202 = vector.shape_cast %30 : vector<128xf32> to vector<1x128xf32>
      %203 = vector.broadcast %202 : vector<1x128xf32> to vector<24x128xf32>
      %204 = arith.mulf %195, %203 : vector<24x128xf32>
      %c1_80 = arith.constant 1 : index
      %c4_81 = arith.constant 4 : index
      %c0_82 = arith.constant 0 : index
      %c0_83 = arith.constant 0 : index
      %205 = vector.load %arg7[%c1_80, %c4_81, %c0_82, %c0_83] : memref<2x18x24x128xf32, #tpu.memory_space<vmem>>, vector<1x1x24x128xf32>
      %206 = vector.shape_cast %205 : vector<1x1x24x128xf32> to vector<24x128xf32>
      %207 = vector.shape_cast %32 : vector<128xf32> to vector<1x128xf32>
      %208 = vector.broadcast %207 : vector<1x128xf32> to vector<24x128xf32>
      %209 = arith.mulf %206, %208 : vector<24x128xf32>
      %210 = vector.shape_cast %34 : vector<128xf32> to vector<1x128xf32>
      %211 = vector.broadcast %210 : vector<1x128xf32> to vector<24x128xf32>
      %212 = arith.mulf %206, %211 : vector<24x128xf32>
      %213 = vector.shape_cast %36 : vector<128xf32> to vector<1x128xf32>
      %214 = vector.broadcast %213 : vector<1x128xf32> to vector<24x128xf32>
      %215 = arith.mulf %206, %214 : vector<24x128xf32>
      %216 = arith.addf %198, %209 : vector<24x128xf32>
      %217 = arith.addf %201, %212 : vector<24x128xf32>
      %218 = arith.addf %204, %215 : vector<24x128xf32>
      %c1_84 = arith.constant 1 : index
      %c5_85 = arith.constant 5 : index
      %c0_86 = arith.constant 0 : index
      %c0_87 = arith.constant 0 : index
      %219 = vector.load %arg7[%c1_84, %c5_85, %c0_86, %c0_87] : memref<2x18x24x128xf32, #tpu.memory_space<vmem>>, vector<1x1x24x128xf32>
      %220 = vector.shape_cast %219 : vector<1x1x24x128xf32> to vector<24x128xf32>
      %221 = vector.shape_cast %38 : vector<128xf32> to vector<1x128xf32>
      %222 = vector.broadcast %221 : vector<1x128xf32> to vector<24x128xf32>
      %223 = arith.mulf %220, %222 : vector<24x128xf32>
      %224 = vector.shape_cast %40 : vector<128xf32> to vector<1x128xf32>
      %225 = vector.broadcast %224 : vector<1x128xf32> to vector<24x128xf32>
      %226 = arith.mulf %220, %225 : vector<24x128xf32>
      %227 = vector.shape_cast %42 : vector<128xf32> to vector<1x128xf32>
      %228 = vector.broadcast %227 : vector<1x128xf32> to vector<24x128xf32>
      %229 = arith.mulf %220, %228 : vector<24x128xf32>
      %230 = arith.addf %216, %223 : vector<24x128xf32>
      %231 = arith.addf %217, %226 : vector<24x128xf32>
      %232 = arith.addf %218, %229 : vector<24x128xf32>
      %233 = vector.extract_strided_slice %230 {offsets = [0, 0], sizes = [16, 128], strides = [1, 1]} : vector<24x128xf32> to vector<16x128xf32>
      %234 = vector.extract_strided_slice %231 {offsets = [1, 0], sizes = [16, 128], strides = [1, 1]} : vector<24x128xf32> to vector<16x128xf32>
      %235 = arith.addf %233, %234 : vector<16x128xf32>
      %236 = vector.extract_strided_slice %232 {offsets = [2, 0], sizes = [16, 128], strides = [1, 1]} : vector<24x128xf32> to vector<16x128xf32>
      %237 = arith.addf %235, %236 : vector<16x128xf32>
      %c48 = arith.constant 48 : index
      %c0_88 = arith.constant 0 : index
      %238 = vector.load %arg9[%c48, %c0_88] : memref<256x128xf32, #tpu.memory_space<vmem>>, vector<16x128xf32>
      tpu.vector_store %arg9[%c48, %c0_88], %237 {strides = array<i32>} : memref<256x128xf32, #tpu.memory_space<vmem>>, vector<16x128xf32>,
      %c1_89 = arith.constant 1 : index
      %c4_90 = arith.constant 4 : index
      %c0_91 = arith.constant 0 : index
      %c0_92 = arith.constant 0 : index
      %239 = vector.load %arg7[%c1_89, %c4_90, %c0_91, %c0_92] : memref<2x18x24x128xf32, #tpu.memory_space<vmem>>, vector<1x1x24x128xf32>
      %240 = vector.shape_cast %239 : vector<1x1x24x128xf32> to vector<24x128xf32>
      %241 = vector.shape_cast %26 : vector<128xf32> to vector<1x128xf32>
      %242 = vector.broadcast %241 : vector<1x128xf32> to vector<24x128xf32>
      %243 = arith.mulf %240, %242 : vector<24x128xf32>
      %244 = vector.shape_cast %28 : vector<128xf32> to vector<1x128xf32>
      %245 = vector.broadcast %244 : vector<1x128xf32> to vector<24x128xf32>
      %246 = arith.mulf %240, %245 : vector<24x128xf32>
      %247 = vector.shape_cast %30 : vector<128xf32> to vector<1x128xf32>
      %248 = vector.broadcast %247 : vector<1x128xf32> to vector<24x128xf32>
      %249 = arith.mulf %240, %248 : vector<24x128xf32>
      %c1_93 = arith.constant 1 : index
      %c5_94 = arith.constant 5 : index
      %c0_95 = arith.constant 0 : index
      %c0_96 = arith.constant 0 : index
      %250 = vector.load %arg7[%c1_93, %c5_94, %c0_95, %c0_96] : memref<2x18x24x128xf32, #tpu.memory_space<vmem>>, vector<1x1x24x128xf32>
      %251 = vector.shape_cast %250 : vector<1x1x24x128xf32> to vector<24x128xf32>
      %252 = vector.shape_cast %32 : vector<128xf32> to vector<1x128xf32>
      %253 = vector.broadcast %252 : vector<1x128xf32> to vector<24x128xf32>
      %254 = arith.mulf %251, %253 : vector<24x128xf32>
      %255 = vector.shape_cast %34 : vector<128xf32> to vector<1x128xf32>
      %256 = vector.broadcast %255 : vector<1x128xf32> to vector<24x128xf32>
      %257 = arith.mulf %251, %256 : vector<24x128xf32>
      %258 = vector.shape_cast %36 : vector<128xf32> to vector<1x128xf32>
      %259 = vector.broadcast %258 : vector<1x128xf32> to vector<24x128xf32>
      %260 = arith.mulf %251, %259 : vector<24x128xf32>
      %261 = arith.addf %243, %254 : vector<24x128xf32>
      %262 = arith.addf %246, %257 : vector<24x128xf32>
      %263 = arith.addf %249, %260 : vector<24x128xf32>
      %c1_97 = arith.constant 1 : index
      %c6_98 = arith.constant 6 : index
      %c0_99 = arith.constant 0 : index
      %c0_100 = arith.constant 0 : index
      %264 = vector.load %arg7[%c1_97, %c6_98, %c0_99, %c0_100] : memref<2x18x24x128xf32, #tpu.memory_space<vmem>>, vector<1x1x24x128xf32>
      %265 = vector.shape_cast %264 : vector<1x1x24x128xf32> to vector<24x128xf32>
      %266 = vector.shape_cast %38 : vector<128xf32> to vector<1x128xf32>
      %267 = vector.broadcast %266 : vector<1x128xf32> to vector<24x128xf32>
      %268 = arith.mulf %265, %267 : vector<24x128xf32>
      %269 = vector.shape_cast %40 : vector<128xf32> to vector<1x128xf32>
      %270 = vector.broadcast %269 : vector<1x128xf32> to vector<24x128xf32>
      %271 = arith.mulf %265, %270 : vector<24x128xf32>
      %272 = vector.shape_cast %42 : vector<128xf32> to vector<1x128xf32>
      %273 = vector.broadcast %272 : vector<1x128xf32> to vector<24x128xf32>
      %274 = arith.mulf %265, %273 : vector<24x128xf32>
      %275 = arith.addf %261, %268 : vector<24x128xf32>
      %276 = arith.addf %262, %271 : vector<24x128xf32>
      %277 = arith.addf %263, %274 : vector<24x128xf32>
      %278 = vector.extract_strided_slice %275 {offsets = [0, 0], sizes = [16, 128], strides = [1, 1]} : vector<24x128xf32> to vector<16x128xf32>
      %279 = vector.extract_strided_slice %276 {offsets = [1, 0], sizes = [16, 128], strides = [1, 1]} : vector<24x128xf32> to vector<16x128xf32>
      %280 = arith.addf %278, %279 : vector<16x128xf32>
      %281 = vector.extract_strided_slice %277 {offsets = [2, 0], sizes = [16, 128], strides = [1, 1]} : vector<24x128xf32> to vector<16x128xf32>
      %282 = arith.addf %280, %281 : vector<16x128xf32>
      %c64 = arith.constant 64 : index
      %c0_101 = arith.constant 0 : index
      %283 = vector.load %arg9[%c64, %c0_101] : memref<256x128xf32, #tpu.memory_space<vmem>>, vector<16x128xf32>
      tpu.vector_store %arg9[%c64, %c0_101], %282 {strides = array<i32>} : memref<256x128xf32, #tpu.memory_space<vmem>>, vector<16x128xf32>,
      %c1_102 = arith.constant 1 : index
      %c5_103 = arith.constant 5 : index
      %c0_104 = arith.constant 0 : index
      %c0_105 = arith.constant 0 : index
      %284 = vector.load %arg7[%c1_102, %c5_103, %c0_104, %c0_105] : memref<2x18x24x128xf32, #tpu.memory_space<vmem>>, vector<1x1x24x128xf32>
      %285 = vector.shape_cast %284 : vector<1x1x24x128xf32> to vector<24x128xf32>
      %286 = vector.shape_cast %26 : vector<128xf32> to vector<1x128xf32>
      %287 = vector.broadcast %286 : vector<1x128xf32> to vector<24x128xf32>
      %288 = arith.mulf %285, %287 : vector<24x128xf32>
      %289 = vector.shape_cast %28 : vector<128xf32> to vector<1x128xf32>
      %290 = vector.broadcast %289 : vector<1x128xf32> to vector<24x128xf32>
      %291 = arith.mulf %285, %290 : vector<24x128xf32>
      %292 = vector.shape_cast %30 : vector<128xf32> to vector<1x128xf32>
      %293 = vector.broadcast %292 : vector<1x128xf32> to vector<24x128xf32>
      %294 = arith.mulf %285, %293 : vector<24x128xf32>
      %c1_106 = arith.constant 1 : index
      %c6_107 = arith.constant 6 : index
      %c0_108 = arith.constant 0 : index
      %c0_109 = arith.constant 0 : index
      %295 = vector.load %arg7[%c1_106, %c6_107, %c0_108, %c0_109] : memref<2x18x24x128xf32, #tpu.memory_space<vmem>>, vector<1x1x24x128xf32>
      %296 = vector.shape_cast %295 : vector<1x1x24x128xf32> to vector<24x128xf32>
      %297 = vector.shape_cast %32 : vector<128xf32> to vector<1x128xf32>
      %298 = vector.broadcast %297 : vector<1x128xf32> to vector<24x128xf32>
      %299 = arith.mulf %296, %298 : vector<24x128xf32>
      %300 = vector.shape_cast %34 : vector<128xf32> to vector<1x128xf32>
      %301 = vector.broadcast %300 : vector<1x128xf32> to vector<24x128xf32>
      %302 = arith.mulf %296, %301 : vector<24x128xf32>
      %303 = vector.shape_cast %36 : vector<128xf32> to vector<1x128xf32>
      %304 = vector.broadcast %303 : vector<1x128xf32> to vector<24x128xf32>
      %305 = arith.mulf %296, %304 : vector<24x128xf32>
      %306 = arith.addf %288, %299 : vector<24x128xf32>
      %307 = arith.addf %291, %302 : vector<24x128xf32>
      %308 = arith.addf %294, %305 : vector<24x128xf32>
      %c1_110 = arith.constant 1 : index
      %c7_111 = arith.constant 7 : index
      %c0_112 = arith.constant 0 : index
      %c0_113 = arith.constant 0 : index
      %309 = vector.load %arg7[%c1_110, %c7_111, %c0_112, %c0_113] : memref<2x18x24x128xf32, #tpu.memory_space<vmem>>, vector<1x1x24x128xf32>
      %310 = vector.shape_cast %309 : vector<1x1x24x128xf32> to vector<24x128xf32>
      %311 = vector.shape_cast %38 : vector<128xf32> to vector<1x128xf32>
      %312 = vector.broadcast %311 : vector<1x128xf32> to vector<24x128xf32>
      %313 = arith.mulf %310, %312 : vector<24x128xf32>
      %314 = vector.shape_cast %40 : vector<128xf32> to vector<1x128xf32>
      %315 = vector.broadcast %314 : vector<1x128xf32> to vector<24x128xf32>
      %316 = arith.mulf %310, %315 : vector<24x128xf32>
      %317 = vector.shape_cast %42 : vector<128xf32> to vector<1x128xf32>
      %318 = vector.broadcast %317 : vector<1x128xf32> to vector<24x128xf32>
      %319 = arith.mulf %310, %318 : vector<24x128xf32>
      %320 = arith.addf %306, %313 : vector<24x128xf32>
      %321 = arith.addf %307, %316 : vector<24x128xf32>
      %322 = arith.addf %308, %319 : vector<24x128xf32>
      %323 = vector.extract_strided_slice %320 {offsets = [0, 0], sizes = [16, 128], strides = [1, 1]} : vector<24x128xf32> to vector<16x128xf32>
      %324 = vector.extract_strided_slice %321 {offsets = [1, 0], sizes = [16, 128], strides = [1, 1]} : vector<24x128xf32> to vector<16x128xf32>
      %325 = arith.addf %323, %324 : vector<16x128xf32>
      %326 = vector.extract_strided_slice %322 {offsets = [2, 0], sizes = [16, 128], strides = [1, 1]} : vector<24x128xf32> to vector<16x128xf32>
      %327 = arith.addf %325, %326 : vector<16x128xf32>
      %c80 = arith.constant 80 : index
      %c0_114 = arith.constant 0 : index
      %328 = vector.load %arg9[%c80, %c0_114] : memref<256x128xf32, #tpu.memory_space<vmem>>, vector<16x128xf32>
      tpu.vector_store %arg9[%c80, %c0_114], %327 {strides = array<i32>} : memref<256x128xf32, #tpu.memory_space<vmem>>, vector<16x128xf32>,
      %c1_115 = arith.constant 1 : index
      %c6_116 = arith.constant 6 : index
      %c0_117 = arith.constant 0 : index
      %c0_118 = arith.constant 0 : index
      %329 = vector.load %arg7[%c1_115, %c6_116, %c0_117, %c0_118] : memref<2x18x24x128xf32, #tpu.memory_space<vmem>>, vector<1x1x24x128xf32>
      %330 = vector.shape_cast %329 : vector<1x1x24x128xf32> to vector<24x128xf32>
      %331 = vector.shape_cast %26 : vector<128xf32> to vector<1x128xf32>
      %332 = vector.broadcast %331 : vector<1x128xf32> to vector<24x128xf32>
      %333 = arith.mulf %330, %332 : vector<24x128xf32>
      %334 = vector.shape_cast %28 : vector<128xf32> to vector<1x128xf32>
      %335 = vector.broadcast %334 : vector<1x128xf32> to vector<24x128xf32>
      %336 = arith.mulf %330, %335 : vector<24x128xf32>
      %337 = vector.shape_cast %30 : vector<128xf32> to vector<1x128xf32>
      %338 = vector.broadcast %337 : vector<1x128xf32> to vector<24x128xf32>
      %339 = arith.mulf %330, %338 : vector<24x128xf32>
      %c1_119 = arith.constant 1 : index
      %c7_120 = arith.constant 7 : index
      %c0_121 = arith.constant 0 : index
      %c0_122 = arith.constant 0 : index
      %340 = vector.load %arg7[%c1_119, %c7_120, %c0_121, %c0_122] : memref<2x18x24x128xf32, #tpu.memory_space<vmem>>, vector<1x1x24x128xf32>
      %341 = vector.shape_cast %340 : vector<1x1x24x128xf32> to vector<24x128xf32>
      %342 = vector.shape_cast %32 : vector<128xf32> to vector<1x128xf32>
      %343 = vector.broadcast %342 : vector<1x128xf32> to vector<24x128xf32>
      %344 = arith.mulf %341, %343 : vector<24x128xf32>
      %345 = vector.shape_cast %34 : vector<128xf32> to vector<1x128xf32>
      %346 = vector.broadcast %345 : vector<1x128xf32> to vector<24x128xf32>
      %347 = arith.mulf %341, %346 : vector<24x128xf32>
      %348 = vector.shape_cast %36 : vector<128xf32> to vector<1x128xf32>
      %349 = vector.broadcast %348 : vector<1x128xf32> to vector<24x128xf32>
      %350 = arith.mulf %341, %349 : vector<24x128xf32>
      %351 = arith.addf %333, %344 : vector<24x128xf32>
      %352 = arith.addf %336, %347 : vector<24x128xf32>
      %353 = arith.addf %339, %350 : vector<24x128xf32>
      %c1_123 = arith.constant 1 : index
      %c8_124 = arith.constant 8 : index
      %c0_125 = arith.constant 0 : index
      %c0_126 = arith.constant 0 : index
      %354 = vector.load %arg7[%c1_123, %c8_124, %c0_125, %c0_126] : memref<2x18x24x128xf32, #tpu.memory_space<vmem>>, vector<1x1x24x128xf32>
      %355 = vector.shape_cast %354 : vector<1x1x24x128xf32> to vector<24x128xf32>
      %356 = vector.shape_cast %38 : vector<128xf32> to vector<1x128xf32>
      %357 = vector.broadcast %356 : vector<1x128xf32> to vector<24x128xf32>
      %358 = arith.mulf %355, %357 : vector<24x128xf32>
      %359 = vector.shape_cast %40 : vector<128xf32> to vector<1x128xf32>
      %360 = vector.broadcast %359 : vector<1x128xf32> to vector<24x128xf32>
      %361 = arith.mulf %355, %360 : vector<24x128xf32>
      %362 = vector.shape_cast %42 : vector<128xf32> to vector<1x128xf32>
      %363 = vector.broadcast %362 : vector<1x128xf32> to vector<24x128xf32>
      %364 = arith.mulf %355, %363 : vector<24x128xf32>
      %365 = arith.addf %351, %358 : vector<24x128xf32>
      %366 = arith.addf %352, %361 : vector<24x128xf32>
      %367 = arith.addf %353, %364 : vector<24x128xf32>
      %368 = vector.extract_strided_slice %365 {offsets = [0, 0], sizes = [16, 128], strides = [1, 1]} : vector<24x128xf32> to vector<16x128xf32>
      %369 = vector.extract_strided_slice %366 {offsets = [1, 0], sizes = [16, 128], strides = [1, 1]} : vector<24x128xf32> to vector<16x128xf32>
      %370 = arith.addf %368, %369 : vector<16x128xf32>
      %371 = vector.extract_strided_slice %367 {offsets = [2, 0], sizes = [16, 128], strides = [1, 1]} : vector<24x128xf32> to vector<16x128xf32>
      %372 = arith.addf %370, %371 : vector<16x128xf32>
      %c96 = arith.constant 96 : index
      %c0_127 = arith.constant 0 : index
      %373 = vector.load %arg9[%c96, %c0_127] : memref<256x128xf32, #tpu.memory_space<vmem>>, vector<16x128xf32>
      tpu.vector_store %arg9[%c96, %c0_127], %372 {strides = array<i32>} : memref<256x128xf32, #tpu.memory_space<vmem>>, vector<16x128xf32>,
      %c1_128 = arith.constant 1 : index
      %c7_129 = arith.constant 7 : index
      %c0_130 = arith.constant 0 : index
      %c0_131 = arith.constant 0 : index
      %374 = vector.load %arg7[%c1_128, %c7_129, %c0_130, %c0_131] : memref<2x18x24x128xf32, #tpu.memory_space<vmem>>, vector<1x1x24x128xf32>
      %375 = vector.shape_cast %374 : vector<1x1x24x128xf32> to vector<24x128xf32>
      %376 = vector.shape_cast %26 : vector<128xf32> to vector<1x128xf32>
      %377 = vector.broadcast %376 : vector<1x128xf32> to vector<24x128xf32>
      %378 = arith.mulf %375, %377 : vector<24x128xf32>
      %379 = vector.shape_cast %28 : vector<128xf32> to vector<1x128xf32>
      %380 = vector.broadcast %379 : vector<1x128xf32> to vector<24x128xf32>
      %381 = arith.mulf %375, %380 : vector<24x128xf32>
      %382 = vector.shape_cast %30 : vector<128xf32> to vector<1x128xf32>
      %383 = vector.broadcast %382 : vector<1x128xf32> to vector<24x128xf32>
      %384 = arith.mulf %375, %383 : vector<24x128xf32>
      %c1_132 = arith.constant 1 : index
      %c8_133 = arith.constant 8 : index
      %c0_134 = arith.constant 0 : index
      %c0_135 = arith.constant 0 : index
      %385 = vector.load %arg7[%c1_132, %c8_133, %c0_134, %c0_135] : memref<2x18x24x128xf32, #tpu.memory_space<vmem>>, vector<1x1x24x128xf32>
      %386 = vector.shape_cast %385 : vector<1x1x24x128xf32> to vector<24x128xf32>
      %387 = vector.shape_cast %32 : vector<128xf32> to vector<1x128xf32>
      %388 = vector.broadcast %387 : vector<1x128xf32> to vector<24x128xf32>
      %389 = arith.mulf %386, %388 : vector<24x128xf32>
      %390 = vector.shape_cast %34 : vector<128xf32> to vector<1x128xf32>
      %391 = vector.broadcast %390 : vector<1x128xf32> to vector<24x128xf32>
      %392 = arith.mulf %386, %391 : vector<24x128xf32>
      %393 = vector.shape_cast %36 : vector<128xf32> to vector<1x128xf32>
      %394 = vector.broadcast %393 : vector<1x128xf32> to vector<24x128xf32>
      %395 = arith.mulf %386, %394 : vector<24x128xf32>
      %396 = arith.addf %378, %389 : vector<24x128xf32>
      %397 = arith.addf %381, %392 : vector<24x128xf32>
      %398 = arith.addf %384, %395 : vector<24x128xf32>
      %c1_136 = arith.constant 1 : index
      %c9 = arith.constant 9 : index
      %c0_137 = arith.constant 0 : index
      %c0_138 = arith.constant 0 : index
      %399 = vector.load %arg7[%c1_136, %c9, %c0_137, %c0_138] : memref<2x18x24x128xf32, #tpu.memory_space<vmem>>, vector<1x1x24x128xf32>
      %400 = vector.shape_cast %399 : vector<1x1x24x128xf32> to vector<24x128xf32>
      %401 = vector.shape_cast %38 : vector<128xf32> to vector<1x128xf32>
      %402 = vector.broadcast %401 : vector<1x128xf32> to vector<24x128xf32>
      %403 = arith.mulf %400, %402 : vector<24x128xf32>
      %404 = vector.shape_cast %40 : vector<128xf32> to vector<1x128xf32>
      %405 = vector.broadcast %404 : vector<1x128xf32> to vector<24x128xf32>
      %406 = arith.mulf %400, %405 : vector<24x128xf32>
      %407 = vector.shape_cast %42 : vector<128xf32> to vector<1x128xf32>
      %408 = vector.broadcast %407 : vector<1x128xf32> to vector<24x128xf32>
      %409 = arith.mulf %400, %408 : vector<24x128xf32>
      %410 = arith.addf %396, %403 : vector<24x128xf32>
      %411 = arith.addf %397, %406 : vector<24x128xf32>
      %412 = arith.addf %398, %409 : vector<24x128xf32>
      %413 = vector.extract_strided_slice %410 {offsets = [0, 0], sizes = [16, 128], strides = [1, 1]} : vector<24x128xf32> to vector<16x128xf32>
      %414 = vector.extract_strided_slice %411 {offsets = [1, 0], sizes = [16, 128], strides = [1, 1]} : vector<24x128xf32> to vector<16x128xf32>
      %415 = arith.addf %413, %414 : vector<16x128xf32>
      %416 = vector.extract_strided_slice %412 {offsets = [2, 0], sizes = [16, 128], strides = [1, 1]} : vector<24x128xf32> to vector<16x128xf32>
      %417 = arith.addf %415, %416 : vector<16x128xf32>
      %c112 = arith.constant 112 : index
      %c0_139 = arith.constant 0 : index
      %418 = vector.load %arg9[%c112, %c0_139] : memref<256x128xf32, #tpu.memory_space<vmem>>, vector<16x128xf32>
      tpu.vector_store %arg9[%c112, %c0_139], %417 {strides = array<i32>} : memref<256x128xf32, #tpu.memory_space<vmem>>, vector<16x128xf32>,
      %c1_140 = arith.constant 1 : index
      %c8_141 = arith.constant 8 : index
      %c0_142 = arith.constant 0 : index
      %c0_143 = arith.constant 0 : index
      %419 = vector.load %arg7[%c1_140, %c8_141, %c0_142, %c0_143] : memref<2x18x24x128xf32, #tpu.memory_space<vmem>>, vector<1x1x24x128xf32>
      %420 = vector.shape_cast %419 : vector<1x1x24x128xf32> to vector<24x128xf32>
      %421 = vector.shape_cast %26 : vector<128xf32> to vector<1x128xf32>
      %422 = vector.broadcast %421 : vector<1x128xf32> to vector<24x128xf32>
      %423 = arith.mulf %420, %422 : vector<24x128xf32>
      %424 = vector.shape_cast %28 : vector<128xf32> to vector<1x128xf32>
      %425 = vector.broadcast %424 : vector<1x128xf32> to vector<24x128xf32>
      %426 = arith.mulf %420, %425 : vector<24x128xf32>
      %427 = vector.shape_cast %30 : vector<128xf32> to vector<1x128xf32>
      %428 = vector.broadcast %427 : vector<1x128xf32> to vector<24x128xf32>
      %429 = arith.mulf %420, %428 : vector<24x128xf32>
      %c1_144 = arith.constant 1 : index
      %c9_145 = arith.constant 9 : index
      %c0_146 = arith.constant 0 : index
      %c0_147 = arith.constant 0 : index
      %430 = vector.load %arg7[%c1_144, %c9_145, %c0_146, %c0_147] : memref<2x18x24x128xf32, #tpu.memory_space<vmem>>, vector<1x1x24x128xf32>
      %431 = vector.shape_cast %430 : vector<1x1x24x128xf32> to vector<24x128xf32>
      %432 = vector.shape_cast %32 : vector<128xf32> to vector<1x128xf32>
      %433 = vector.broadcast %432 : vector<1x128xf32> to vector<24x128xf32>
      %434 = arith.mulf %431, %433 : vector<24x128xf32>
      %435 = vector.shape_cast %34 : vector<128xf32> to vector<1x128xf32>
      %436 = vector.broadcast %435 : vector<1x128xf32> to vector<24x128xf32>
      %437 = arith.mulf %431, %436 : vector<24x128xf32>
      %438 = vector.shape_cast %36 : vector<128xf32> to vector<1x128xf32>
      %439 = vector.broadcast %438 : vector<1x128xf32> to vector<24x128xf32>
      %440 = arith.mulf %431, %439 : vector<24x128xf32>
      %441 = arith.addf %423, %434 : vector<24x128xf32>
      %442 = arith.addf %426, %437 : vector<24x128xf32>
      %443 = arith.addf %429, %440 : vector<24x128xf32>
      %c1_148 = arith.constant 1 : index
      %c10 = arith.constant 10 : index
      %c0_149 = arith.constant 0 : index
      %c0_150 = arith.constant 0 : index
      %444 = vector.load %arg7[%c1_148, %c10, %c0_149, %c0_150] : memref<2x18x24x128xf32, #tpu.memory_space<vmem>>, vector<1x1x24x128xf32>
      %445 = vector.shape_cast %444 : vector<1x1x24x128xf32> to vector<24x128xf32>
      %446 = vector.shape_cast %38 : vector<128xf32> to vector<1x128xf32>
      %447 = vector.broadcast %446 : vector<1x128xf32> to vector<24x128xf32>
      %448 = arith.mulf %445, %447 : vector<24x128xf32>
      %449 = vector.shape_cast %40 : vector<128xf32> to vector<1x128xf32>
      %450 = vector.broadcast %449 : vector<1x128xf32> to vector<24x128xf32>
      %451 = arith.mulf %445, %450 : vector<24x128xf32>
      %452 = vector.shape_cast %42 : vector<128xf32> to vector<1x128xf32>
      %453 = vector.broadcast %452 : vector<1x128xf32> to vector<24x128xf32>
      %454 = arith.mulf %445, %453 : vector<24x128xf32>
      %455 = arith.addf %441, %448 : vector<24x128xf32>
      %456 = arith.addf %442, %451 : vector<24x128xf32>
      %457 = arith.addf %443, %454 : vector<24x128xf32>
      %458 = vector.extract_strided_slice %455 {offsets = [0, 0], sizes = [16, 128], strides = [1, 1]} : vector<24x128xf32> to vector<16x128xf32>
      %459 = vector.extract_strided_slice %456 {offsets = [1, 0], sizes = [16, 128], strides = [1, 1]} : vector<24x128xf32> to vector<16x128xf32>
      %460 = arith.addf %458, %459 : vector<16x128xf32>
      %461 = vector.extract_strided_slice %457 {offsets = [2, 0], sizes = [16, 128], strides = [1, 1]} : vector<24x128xf32> to vector<16x128xf32>
      %462 = arith.addf %460, %461 : vector<16x128xf32>
      %c128 = arith.constant 128 : index
      %c0_151 = arith.constant 0 : index
      %463 = vector.load %arg9[%c128, %c0_151] : memref<256x128xf32, #tpu.memory_space<vmem>>, vector<16x128xf32>
      tpu.vector_store %arg9[%c128, %c0_151], %462 {strides = array<i32>} : memref<256x128xf32, #tpu.memory_space<vmem>>, vector<16x128xf32>,
      %c1_152 = arith.constant 1 : index
      %c9_153 = arith.constant 9 : index
      %c0_154 = arith.constant 0 : index
      %c0_155 = arith.constant 0 : index
      %464 = vector.load %arg7[%c1_152, %c9_153, %c0_154, %c0_155] : memref<2x18x24x128xf32, #tpu.memory_space<vmem>>, vector<1x1x24x128xf32>
      %465 = vector.shape_cast %464 : vector<1x1x24x128xf32> to vector<24x128xf32>
      %466 = vector.shape_cast %26 : vector<128xf32> to vector<1x128xf32>
      %467 = vector.broadcast %466 : vector<1x128xf32> to vector<24x128xf32>
      %468 = arith.mulf %465, %467 : vector<24x128xf32>
      %469 = vector.shape_cast %28 : vector<128xf32> to vector<1x128xf32>
      %470 = vector.broadcast %469 : vector<1x128xf32> to vector<24x128xf32>
      %471 = arith.mulf %465, %470 : vector<24x128xf32>
      %472 = vector.shape_cast %30 : vector<128xf32> to vector<1x128xf32>
      %473 = vector.broadcast %472 : vector<1x128xf32> to vector<24x128xf32>
      %474 = arith.mulf %465, %473 : vector<24x128xf32>
      %c1_156 = arith.constant 1 : index
      %c10_157 = arith.constant 10 : index
      %c0_158 = arith.constant 0 : index
      %c0_159 = arith.constant 0 : index
      %475 = vector.load %arg7[%c1_156, %c10_157, %c0_158, %c0_159] : memref<2x18x24x128xf32, #tpu.memory_space<vmem>>, vector<1x1x24x128xf32>
      %476 = vector.shape_cast %475 : vector<1x1x24x128xf32> to vector<24x128xf32>
      %477 = vector.shape_cast %32 : vector<128xf32> to vector<1x128xf32>
      %478 = vector.broadcast %477 : vector<1x128xf32> to vector<24x128xf32>
      %479 = arith.mulf %476, %478 : vector<24x128xf32>
      %480 = vector.shape_cast %34 : vector<128xf32> to vector<1x128xf32>
      %481 = vector.broadcast %480 : vector<1x128xf32> to vector<24x128xf32>
      %482 = arith.mulf %476, %481 : vector<24x128xf32>
      %483 = vector.shape_cast %36 : vector<128xf32> to vector<1x128xf32>
      %484 = vector.broadcast %483 : vector<1x128xf32> to vector<24x128xf32>
      %485 = arith.mulf %476, %484 : vector<24x128xf32>
      %486 = arith.addf %468, %479 : vector<24x128xf32>
      %487 = arith.addf %471, %482 : vector<24x128xf32>
      %488 = arith.addf %474, %485 : vector<24x128xf32>
      %c1_160 = arith.constant 1 : index
      %c11 = arith.constant 11 : index
      %c0_161 = arith.constant 0 : index
      %c0_162 = arith.constant 0 : index
      %489 = vector.load %arg7[%c1_160, %c11, %c0_161, %c0_162] : memref<2x18x24x128xf32, #tpu.memory_space<vmem>>, vector<1x1x24x128xf32>
      %490 = vector.shape_cast %489 : vector<1x1x24x128xf32> to vector<24x128xf32>
      %491 = vector.shape_cast %38 : vector<128xf32> to vector<1x128xf32>
      %492 = vector.broadcast %491 : vector<1x128xf32> to vector<24x128xf32>
      %493 = arith.mulf %490, %492 : vector<24x128xf32>
      %494 = vector.shape_cast %40 : vector<128xf32> to vector<1x128xf32>
      %495 = vector.broadcast %494 : vector<1x128xf32> to vector<24x128xf32>
      %496 = arith.mulf %490, %495 : vector<24x128xf32>
      %497 = vector.shape_cast %42 : vector<128xf32> to vector<1x128xf32>
      %498 = vector.broadcast %497 : vector<1x128xf32> to vector<24x128xf32>
      %499 = arith.mulf %490, %498 : vector<24x128xf32>
      %500 = arith.addf %486, %493 : vector<24x128xf32>
      %501 = arith.addf %487, %496 : vector<24x128xf32>
      %502 = arith.addf %488, %499 : vector<24x128xf32>
      %503 = vector.extract_strided_slice %500 {offsets = [0, 0], sizes = [16, 128], strides = [1, 1]} : vector<24x128xf32> to vector<16x128xf32>
      %504 = vector.extract_strided_slice %501 {offsets = [1, 0], sizes = [16, 128], strides = [1, 1]} : vector<24x128xf32> to vector<16x128xf32>
      %505 = arith.addf %503, %504 : vector<16x128xf32>
      %506 = vector.extract_strided_slice %502 {offsets = [2, 0], sizes = [16, 128], strides = [1, 1]} : vector<24x128xf32> to vector<16x128xf32>
      %507 = arith.addf %505, %506 : vector<16x128xf32>
      %c144 = arith.constant 144 : index
      %c0_163 = arith.constant 0 : index
      %508 = vector.load %arg9[%c144, %c0_163] : memref<256x128xf32, #tpu.memory_space<vmem>>, vector<16x128xf32>
      tpu.vector_store %arg9[%c144, %c0_163], %507 {strides = array<i32>} : memref<256x128xf32, #tpu.memory_space<vmem>>, vector<16x128xf32>,
      %c1_164 = arith.constant 1 : index
      %c10_165 = arith.constant 10 : index
      %c0_166 = arith.constant 0 : index
      %c0_167 = arith.constant 0 : index
      %509 = vector.load %arg7[%c1_164, %c10_165, %c0_166, %c0_167] : memref<2x18x24x128xf32, #tpu.memory_space<vmem>>, vector<1x1x24x128xf32>
      %510 = vector.shape_cast %509 : vector<1x1x24x128xf32> to vector<24x128xf32>
      %511 = vector.shape_cast %26 : vector<128xf32> to vector<1x128xf32>
      %512 = vector.broadcast %511 : vector<1x128xf32> to vector<24x128xf32>
      %513 = arith.mulf %510, %512 : vector<24x128xf32>
      %514 = vector.shape_cast %28 : vector<128xf32> to vector<1x128xf32>
      %515 = vector.broadcast %514 : vector<1x128xf32> to vector<24x128xf32>
      %516 = arith.mulf %510, %515 : vector<24x128xf32>
      %517 = vector.shape_cast %30 : vector<128xf32> to vector<1x128xf32>
      %518 = vector.broadcast %517 : vector<1x128xf32> to vector<24x128xf32>
      %519 = arith.mulf %510, %518 : vector<24x128xf32>
      %c1_168 = arith.constant 1 : index
      %c11_169 = arith.constant 11 : index
      %c0_170 = arith.constant 0 : index
      %c0_171 = arith.constant 0 : index
      %520 = vector.load %arg7[%c1_168, %c11_169, %c0_170, %c0_171] : memref<2x18x24x128xf32, #tpu.memory_space<vmem>>, vector<1x1x24x128xf32>
      %521 = vector.shape_cast %520 : vector<1x1x24x128xf32> to vector<24x128xf32>
      %522 = vector.shape_cast %32 : vector<128xf32> to vector<1x128xf32>
      %523 = vector.broadcast %522 : vector<1x128xf32> to vector<24x128xf32>
      %524 = arith.mulf %521, %523 : vector<24x128xf32>
      %525 = vector.shape_cast %34 : vector<128xf32> to vector<1x128xf32>
      %526 = vector.broadcast %525 : vector<1x128xf32> to vector<24x128xf32>
      %527 = arith.mulf %521, %526 : vector<24x128xf32>
      %528 = vector.shape_cast %36 : vector<128xf32> to vector<1x128xf32>
      %529 = vector.broadcast %528 : vector<1x128xf32> to vector<24x128xf32>
      %530 = arith.mulf %521, %529 : vector<24x128xf32>
      %531 = arith.addf %513, %524 : vector<24x128xf32>
      %532 = arith.addf %516, %527 : vector<24x128xf32>
      %533 = arith.addf %519, %530 : vector<24x128xf32>
      %c1_172 = arith.constant 1 : index
      %c12 = arith.constant 12 : index
      %c0_173 = arith.constant 0 : index
      %c0_174 = arith.constant 0 : index
      %534 = vector.load %arg7[%c1_172, %c12, %c0_173, %c0_174] : memref<2x18x24x128xf32, #tpu.memory_space<vmem>>, vector<1x1x24x128xf32>
      %535 = vector.shape_cast %534 : vector<1x1x24x128xf32> to vector<24x128xf32>
      %536 = vector.shape_cast %38 : vector<128xf32> to vector<1x128xf32>
      %537 = vector.broadcast %536 : vector<1x128xf32> to vector<24x128xf32>
      %538 = arith.mulf %535, %537 : vector<24x128xf32>
      %539 = vector.shape_cast %40 : vector<128xf32> to vector<1x128xf32>
      %540 = vector.broadcast %539 : vector<1x128xf32> to vector<24x128xf32>
      %541 = arith.mulf %535, %540 : vector<24x128xf32>
      %542 = vector.shape_cast %42 : vector<128xf32> to vector<1x128xf32>
      %543 = vector.broadcast %542 : vector<1x128xf32> to vector<24x128xf32>
      %544 = arith.mulf %535, %543 : vector<24x128xf32>
      %545 = arith.addf %531, %538 : vector<24x128xf32>
      %546 = arith.addf %532, %541 : vector<24x128xf32>
      %547 = arith.addf %533, %544 : vector<24x128xf32>
      %548 = vector.extract_strided_slice %545 {offsets = [0, 0], sizes = [16, 128], strides = [1, 1]} : vector<24x128xf32> to vector<16x128xf32>
      %549 = vector.extract_strided_slice %546 {offsets = [1, 0], sizes = [16, 128], strides = [1, 1]} : vector<24x128xf32> to vector<16x128xf32>
      %550 = arith.addf %548, %549 : vector<16x128xf32>
      %551 = vector.extract_strided_slice %547 {offsets = [2, 0], sizes = [16, 128], strides = [1, 1]} : vector<24x128xf32> to vector<16x128xf32>
      %552 = arith.addf %550, %551 : vector<16x128xf32>
      %c160 = arith.constant 160 : index
      %c0_175 = arith.constant 0 : index
      %553 = vector.load %arg9[%c160, %c0_175] : memref<256x128xf32, #tpu.memory_space<vmem>>, vector<16x128xf32>
      tpu.vector_store %arg9[%c160, %c0_175], %552 {strides = array<i32>} : memref<256x128xf32, #tpu.memory_space<vmem>>, vector<16x128xf32>,
      %c1_176 = arith.constant 1 : index
      %c11_177 = arith.constant 11 : index
      %c0_178 = arith.constant 0 : index
      %c0_179 = arith.constant 0 : index
      %554 = vector.load %arg7[%c1_176, %c11_177, %c0_178, %c0_179] : memref<2x18x24x128xf32, #tpu.memory_space<vmem>>, vector<1x1x24x128xf32>
      %555 = vector.shape_cast %554 : vector<1x1x24x128xf32> to vector<24x128xf32>
      %556 = vector.shape_cast %26 : vector<128xf32> to vector<1x128xf32>
      %557 = vector.broadcast %556 : vector<1x128xf32> to vector<24x128xf32>
      %558 = arith.mulf %555, %557 : vector<24x128xf32>
      %559 = vector.shape_cast %28 : vector<128xf32> to vector<1x128xf32>
      %560 = vector.broadcast %559 : vector<1x128xf32> to vector<24x128xf32>
      %561 = arith.mulf %555, %560 : vector<24x128xf32>
      %562 = vector.shape_cast %30 : vector<128xf32> to vector<1x128xf32>
      %563 = vector.broadcast %562 : vector<1x128xf32> to vector<24x128xf32>
      %564 = arith.mulf %555, %563 : vector<24x128xf32>
      %c1_180 = arith.constant 1 : index
      %c12_181 = arith.constant 12 : index
      %c0_182 = arith.constant 0 : index
      %c0_183 = arith.constant 0 : index
      %565 = vector.load %arg7[%c1_180, %c12_181, %c0_182, %c0_183] : memref<2x18x24x128xf32, #tpu.memory_space<vmem>>, vector<1x1x24x128xf32>
      %566 = vector.shape_cast %565 : vector<1x1x24x128xf32> to vector<24x128xf32>
      %567 = vector.shape_cast %32 : vector<128xf32> to vector<1x128xf32>
      %568 = vector.broadcast %567 : vector<1x128xf32> to vector<24x128xf32>
      %569 = arith.mulf %566, %568 : vector<24x128xf32>
      %570 = vector.shape_cast %34 : vector<128xf32> to vector<1x128xf32>
      %571 = vector.broadcast %570 : vector<1x128xf32> to vector<24x128xf32>
      %572 = arith.mulf %566, %571 : vector<24x128xf32>
      %573 = vector.shape_cast %36 : vector<128xf32> to vector<1x128xf32>
      %574 = vector.broadcast %573 : vector<1x128xf32> to vector<24x128xf32>
      %575 = arith.mulf %566, %574 : vector<24x128xf32>
      %576 = arith.addf %558, %569 : vector<24x128xf32>
      %577 = arith.addf %561, %572 : vector<24x128xf32>
      %578 = arith.addf %564, %575 : vector<24x128xf32>
      %c1_184 = arith.constant 1 : index
      %c13 = arith.constant 13 : index
      %c0_185 = arith.constant 0 : index
      %c0_186 = arith.constant 0 : index
      %579 = vector.load %arg7[%c1_184, %c13, %c0_185, %c0_186] : memref<2x18x24x128xf32, #tpu.memory_space<vmem>>, vector<1x1x24x128xf32>
      %580 = vector.shape_cast %579 : vector<1x1x24x128xf32> to vector<24x128xf32>
      %581 = vector.shape_cast %38 : vector<128xf32> to vector<1x128xf32>
      %582 = vector.broadcast %581 : vector<1x128xf32> to vector<24x128xf32>
      %583 = arith.mulf %580, %582 : vector<24x128xf32>
      %584 = vector.shape_cast %40 : vector<128xf32> to vector<1x128xf32>
      %585 = vector.broadcast %584 : vector<1x128xf32> to vector<24x128xf32>
      %586 = arith.mulf %580, %585 : vector<24x128xf32>
      %587 = vector.shape_cast %42 : vector<128xf32> to vector<1x128xf32>
      %588 = vector.broadcast %587 : vector<1x128xf32> to vector<24x128xf32>
      %589 = arith.mulf %580, %588 : vector<24x128xf32>
      %590 = arith.addf %576, %583 : vector<24x128xf32>
      %591 = arith.addf %577, %586 : vector<24x128xf32>
      %592 = arith.addf %578, %589 : vector<24x128xf32>
      %593 = vector.extract_strided_slice %590 {offsets = [0, 0], sizes = [16, 128], strides = [1, 1]} : vector<24x128xf32> to vector<16x128xf32>
      %594 = vector.extract_strided_slice %591 {offsets = [1, 0], sizes = [16, 128], strides = [1, 1]} : vector<24x128xf32> to vector<16x128xf32>
      %595 = arith.addf %593, %594 : vector<16x128xf32>
      %596 = vector.extract_strided_slice %592 {offsets = [2, 0], sizes = [16, 128], strides = [1, 1]} : vector<24x128xf32> to vector<16x128xf32>
      %597 = arith.addf %595, %596 : vector<16x128xf32>
      %c176 = arith.constant 176 : index
      %c0_187 = arith.constant 0 : index
      %598 = vector.load %arg9[%c176, %c0_187] : memref<256x128xf32, #tpu.memory_space<vmem>>, vector<16x128xf32>
      tpu.vector_store %arg9[%c176, %c0_187], %597 {strides = array<i32>} : memref<256x128xf32, #tpu.memory_space<vmem>>, vector<16x128xf32>,
      %c1_188 = arith.constant 1 : index
      %c12_189 = arith.constant 12 : index
      %c0_190 = arith.constant 0 : index
      %c0_191 = arith.constant 0 : index
      %599 = vector.load %arg7[%c1_188, %c12_189, %c0_190, %c0_191] : memref<2x18x24x128xf32, #tpu.memory_space<vmem>>, vector<1x1x24x128xf32>
      %600 = vector.shape_cast %599 : vector<1x1x24x128xf32> to vector<24x128xf32>
      %601 = vector.shape_cast %26 : vector<128xf32> to vector<1x128xf32>
      %602 = vector.broadcast %601 : vector<1x128xf32> to vector<24x128xf32>
      %603 = arith.mulf %600, %602 : vector<24x128xf32>
      %604 = vector.shape_cast %28 : vector<128xf32> to vector<1x128xf32>
      %605 = vector.broadcast %604 : vector<1x128xf32> to vector<24x128xf32>
      %606 = arith.mulf %600, %605 : vector<24x128xf32>
      %607 = vector.shape_cast %30 : vector<128xf32> to vector<1x128xf32>
      %608 = vector.broadcast %607 : vector<1x128xf32> to vector<24x128xf32>
      %609 = arith.mulf %600, %608 : vector<24x128xf32>
      %c1_192 = arith.constant 1 : index
      %c13_193 = arith.constant 13 : index
      %c0_194 = arith.constant 0 : index
      %c0_195 = arith.constant 0 : index
      %610 = vector.load %arg7[%c1_192, %c13_193, %c0_194, %c0_195] : memref<2x18x24x128xf32, #tpu.memory_space<vmem>>, vector<1x1x24x128xf32>
      %611 = vector.shape_cast %610 : vector<1x1x24x128xf32> to vector<24x128xf32>
      %612 = vector.shape_cast %32 : vector<128xf32> to vector<1x128xf32>
      %613 = vector.broadcast %612 : vector<1x128xf32> to vector<24x128xf32>
      %614 = arith.mulf %611, %613 : vector<24x128xf32>
      %615 = vector.shape_cast %34 : vector<128xf32> to vector<1x128xf32>
      %616 = vector.broadcast %615 : vector<1x128xf32> to vector<24x128xf32>
      %617 = arith.mulf %611, %616 : vector<24x128xf32>
      %618 = vector.shape_cast %36 : vector<128xf32> to vector<1x128xf32>
      %619 = vector.broadcast %618 : vector<1x128xf32> to vector<24x128xf32>
      %620 = arith.mulf %611, %619 : vector<24x128xf32>
      %621 = arith.addf %603, %614 : vector<24x128xf32>
      %622 = arith.addf %606, %617 : vector<24x128xf32>
      %623 = arith.addf %609, %620 : vector<24x128xf32>
      %c1_196 = arith.constant 1 : index
      %c14 = arith.constant 14 : index
      %c0_197 = arith.constant 0 : index
      %c0_198 = arith.constant 0 : index
      %624 = vector.load %arg7[%c1_196, %c14, %c0_197, %c0_198] : memref<2x18x24x128xf32, #tpu.memory_space<vmem>>, vector<1x1x24x128xf32>
      %625 = vector.shape_cast %624 : vector<1x1x24x128xf32> to vector<24x128xf32>
      %626 = vector.shape_cast %38 : vector<128xf32> to vector<1x128xf32>
      %627 = vector.broadcast %626 : vector<1x128xf32> to vector<24x128xf32>
      %628 = arith.mulf %625, %627 : vector<24x128xf32>
      %629 = vector.shape_cast %40 : vector<128xf32> to vector<1x128xf32>
      %630 = vector.broadcast %629 : vector<1x128xf32> to vector<24x128xf32>
      %631 = arith.mulf %625, %630 : vector<24x128xf32>
      %632 = vector.shape_cast %42 : vector<128xf32> to vector<1x128xf32>
      %633 = vector.broadcast %632 : vector<1x128xf32> to vector<24x128xf32>
      %634 = arith.mulf %625, %633 : vector<24x128xf32>
      %635 = arith.addf %621, %628 : vector<24x128xf32>
      %636 = arith.addf %622, %631 : vector<24x128xf32>
      %637 = arith.addf %623, %634 : vector<24x128xf32>
      %638 = vector.extract_strided_slice %635 {offsets = [0, 0], sizes = [16, 128], strides = [1, 1]} : vector<24x128xf32> to vector<16x128xf32>
      %639 = vector.extract_strided_slice %636 {offsets = [1, 0], sizes = [16, 128], strides = [1, 1]} : vector<24x128xf32> to vector<16x128xf32>
      %640 = arith.addf %638, %639 : vector<16x128xf32>
      %641 = vector.extract_strided_slice %637 {offsets = [2, 0], sizes = [16, 128], strides = [1, 1]} : vector<24x128xf32> to vector<16x128xf32>
      %642 = arith.addf %640, %641 : vector<16x128xf32>
      %c192 = arith.constant 192 : index
      %c0_199 = arith.constant 0 : index
      %643 = vector.load %arg9[%c192, %c0_199] : memref<256x128xf32, #tpu.memory_space<vmem>>, vector<16x128xf32>
      tpu.vector_store %arg9[%c192, %c0_199], %642 {strides = array<i32>} : memref<256x128xf32, #tpu.memory_space<vmem>>, vector<16x128xf32>,
      %c1_200 = arith.constant 1 : index
      %c13_201 = arith.constant 13 : index
      %c0_202 = arith.constant 0 : index
      %c0_203 = arith.constant 0 : index
      %644 = vector.load %arg7[%c1_200, %c13_201, %c0_202, %c0_203] : memref<2x18x24x128xf32, #tpu.memory_space<vmem>>, vector<1x1x24x128xf32>
      %645 = vector.shape_cast %644 : vector<1x1x24x128xf32> to vector<24x128xf32>
      %646 = vector.shape_cast %26 : vector<128xf32> to vector<1x128xf32>
      %647 = vector.broadcast %646 : vector<1x128xf32> to vector<24x128xf32>
      %648 = arith.mulf %645, %647 : vector<24x128xf32>
      %649 = vector.shape_cast %28 : vector<128xf32> to vector<1x128xf32>
      %650 = vector.broadcast %649 : vector<1x128xf32> to vector<24x128xf32>
      %651 = arith.mulf %645, %650 : vector<24x128xf32>
      %652 = vector.shape_cast %30 : vector<128xf32> to vector<1x128xf32>
      %653 = vector.broadcast %652 : vector<1x128xf32> to vector<24x128xf32>
      %654 = arith.mulf %645, %653 : vector<24x128xf32>
      %c1_204 = arith.constant 1 : index
      %c14_205 = arith.constant 14 : index
      %c0_206 = arith.constant 0 : index
      %c0_207 = arith.constant 0 : index
      %655 = vector.load %arg7[%c1_204, %c14_205, %c0_206, %c0_207] : memref<2x18x24x128xf32, #tpu.memory_space<vmem>>, vector<1x1x24x128xf32>
      %656 = vector.shape_cast %655 : vector<1x1x24x128xf32> to vector<24x128xf32>
      %657 = vector.shape_cast %32 : vector<128xf32> to vector<1x128xf32>
      %658 = vector.broadcast %657 : vector<1x128xf32> to vector<24x128xf32>
      %659 = arith.mulf %656, %658 : vector<24x128xf32>
      %660 = vector.shape_cast %34 : vector<128xf32> to vector<1x128xf32>
      %661 = vector.broadcast %660 : vector<1x128xf32> to vector<24x128xf32>
      %662 = arith.mulf %656, %661 : vector<24x128xf32>
      %663 = vector.shape_cast %36 : vector<128xf32> to vector<1x128xf32>
      %664 = vector.broadcast %663 : vector<1x128xf32> to vector<24x128xf32>
      %665 = arith.mulf %656, %664 : vector<24x128xf32>
      %666 = arith.addf %648, %659 : vector<24x128xf32>
      %667 = arith.addf %651, %662 : vector<24x128xf32>
      %668 = arith.addf %654, %665 : vector<24x128xf32>
      %c1_208 = arith.constant 1 : index
      %c15 = arith.constant 15 : index
      %c0_209 = arith.constant 0 : index
      %c0_210 = arith.constant 0 : index
      %669 = vector.load %arg7[%c1_208, %c15, %c0_209, %c0_210] : memref<2x18x24x128xf32, #tpu.memory_space<vmem>>, vector<1x1x24x128xf32>
      %670 = vector.shape_cast %669 : vector<1x1x24x128xf32> to vector<24x128xf32>
      %671 = vector.shape_cast %38 : vector<128xf32> to vector<1x128xf32>
      %672 = vector.broadcast %671 : vector<1x128xf32> to vector<24x128xf32>
      %673 = arith.mulf %670, %672 : vector<24x128xf32>
      %674 = vector.shape_cast %40 : vector<128xf32> to vector<1x128xf32>
      %675 = vector.broadcast %674 : vector<1x128xf32> to vector<24x128xf32>
      %676 = arith.mulf %670, %675 : vector<24x128xf32>
      %677 = vector.shape_cast %42 : vector<128xf32> to vector<1x128xf32>
      %678 = vector.broadcast %677 : vector<1x128xf32> to vector<24x128xf32>
      %679 = arith.mulf %670, %678 : vector<24x128xf32>
      %680 = arith.addf %666, %673 : vector<24x128xf32>
      %681 = arith.addf %667, %676 : vector<24x128xf32>
      %682 = arith.addf %668, %679 : vector<24x128xf32>
      %683 = vector.extract_strided_slice %680 {offsets = [0, 0], sizes = [16, 128], strides = [1, 1]} : vector<24x128xf32> to vector<16x128xf32>
      %684 = vector.extract_strided_slice %681 {offsets = [1, 0], sizes = [16, 128], strides = [1, 1]} : vector<24x128xf32> to vector<16x128xf32>
      %685 = arith.addf %683, %684 : vector<16x128xf32>
      %686 = vector.extract_strided_slice %682 {offsets = [2, 0], sizes = [16, 128], strides = [1, 1]} : vector<24x128xf32> to vector<16x128xf32>
      %687 = arith.addf %685, %686 : vector<16x128xf32>
      %c208 = arith.constant 208 : index
      %c0_211 = arith.constant 0 : index
      %688 = vector.load %arg9[%c208, %c0_211] : memref<256x128xf32, #tpu.memory_space<vmem>>, vector<16x128xf32>
      tpu.vector_store %arg9[%c208, %c0_211], %687 {strides = array<i32>} : memref<256x128xf32, #tpu.memory_space<vmem>>, vector<16x128xf32>,
      %c1_212 = arith.constant 1 : index
      %c14_213 = arith.constant 14 : index
      %c0_214 = arith.constant 0 : index
      %c0_215 = arith.constant 0 : index
      %689 = vector.load %arg7[%c1_212, %c14_213, %c0_214, %c0_215] : memref<2x18x24x128xf32, #tpu.memory_space<vmem>>, vector<1x1x24x128xf32>
      %690 = vector.shape_cast %689 : vector<1x1x24x128xf32> to vector<24x128xf32>
      %691 = vector.shape_cast %26 : vector<128xf32> to vector<1x128xf32>
      %692 = vector.broadcast %691 : vector<1x128xf32> to vector<24x128xf32>
      %693 = arith.mulf %690, %692 : vector<24x128xf32>
      %694 = vector.shape_cast %28 : vector<128xf32> to vector<1x128xf32>
      %695 = vector.broadcast %694 : vector<1x128xf32> to vector<24x128xf32>
      %696 = arith.mulf %690, %695 : vector<24x128xf32>
      %697 = vector.shape_cast %30 : vector<128xf32> to vector<1x128xf32>
      %698 = vector.broadcast %697 : vector<1x128xf32> to vector<24x128xf32>
      %699 = arith.mulf %690, %698 : vector<24x128xf32>
      %c1_216 = arith.constant 1 : index
      %c15_217 = arith.constant 15 : index
      %c0_218 = arith.constant 0 : index
      %c0_219 = arith.constant 0 : index
      %700 = vector.load %arg7[%c1_216, %c15_217, %c0_218, %c0_219] : memref<2x18x24x128xf32, #tpu.memory_space<vmem>>, vector<1x1x24x128xf32>
      %701 = vector.shape_cast %700 : vector<1x1x24x128xf32> to vector<24x128xf32>
      %702 = vector.shape_cast %32 : vector<128xf32> to vector<1x128xf32>
      %703 = vector.broadcast %702 : vector<1x128xf32> to vector<24x128xf32>
      %704 = arith.mulf %701, %703 : vector<24x128xf32>
      %705 = vector.shape_cast %34 : vector<128xf32> to vector<1x128xf32>
      %706 = vector.broadcast %705 : vector<1x128xf32> to vector<24x128xf32>
      %707 = arith.mulf %701, %706 : vector<24x128xf32>
      %708 = vector.shape_cast %36 : vector<128xf32> to vector<1x128xf32>
      %709 = vector.broadcast %708 : vector<1x128xf32> to vector<24x128xf32>
      %710 = arith.mulf %701, %709 : vector<24x128xf32>
      %711 = arith.addf %693, %704 : vector<24x128xf32>
      %712 = arith.addf %696, %707 : vector<24x128xf32>
      %713 = arith.addf %699, %710 : vector<24x128xf32>
      %c1_220 = arith.constant 1 : index
      %c16_221 = arith.constant 16 : index
      %c0_222 = arith.constant 0 : index
      %c0_223 = arith.constant 0 : index
      %714 = vector.load %arg7[%c1_220, %c16_221, %c0_222, %c0_223] : memref<2x18x24x128xf32, #tpu.memory_space<vmem>>, vector<1x1x24x128xf32>
      %715 = vector.shape_cast %714 : vector<1x1x24x128xf32> to vector<24x128xf32>
      %716 = vector.shape_cast %38 : vector<128xf32> to vector<1x128xf32>
      %717 = vector.broadcast %716 : vector<1x128xf32> to vector<24x128xf32>
      %718 = arith.mulf %715, %717 : vector<24x128xf32>
      %719 = vector.shape_cast %40 : vector<128xf32> to vector<1x128xf32>
      %720 = vector.broadcast %719 : vector<1x128xf32> to vector<24x128xf32>
      %721 = arith.mulf %715, %720 : vector<24x128xf32>
      %722 = vector.shape_cast %42 : vector<128xf32> to vector<1x128xf32>
      %723 = vector.broadcast %722 : vector<1x128xf32> to vector<24x128xf32>
      %724 = arith.mulf %715, %723 : vector<24x128xf32>
      %725 = arith.addf %711, %718 : vector<24x128xf32>
      %726 = arith.addf %712, %721 : vector<24x128xf32>
      %727 = arith.addf %713, %724 : vector<24x128xf32>
      %728 = vector.extract_strided_slice %725 {offsets = [0, 0], sizes = [16, 128], strides = [1, 1]} : vector<24x128xf32> to vector<16x128xf32>
      %729 = vector.extract_strided_slice %726 {offsets = [1, 0], sizes = [16, 128], strides = [1, 1]} : vector<24x128xf32> to vector<16x128xf32>
      %730 = arith.addf %728, %729 : vector<16x128xf32>
      %731 = vector.extract_strided_slice %727 {offsets = [2, 0], sizes = [16, 128], strides = [1, 1]} : vector<24x128xf32> to vector<16x128xf32>
      %732 = arith.addf %730, %731 : vector<16x128xf32>
      %c224 = arith.constant 224 : index
      %c0_224 = arith.constant 0 : index
      %733 = vector.load %arg9[%c224, %c0_224] : memref<256x128xf32, #tpu.memory_space<vmem>>, vector<16x128xf32>
      tpu.vector_store %arg9[%c224, %c0_224], %732 {strides = array<i32>} : memref<256x128xf32, #tpu.memory_space<vmem>>, vector<16x128xf32>,
      %c1_225 = arith.constant 1 : index
      %c15_226 = arith.constant 15 : index
      %c0_227 = arith.constant 0 : index
      %c0_228 = arith.constant 0 : index
      %734 = vector.load %arg7[%c1_225, %c15_226, %c0_227, %c0_228] : memref<2x18x24x128xf32, #tpu.memory_space<vmem>>, vector<1x1x24x128xf32>
      %735 = vector.shape_cast %734 : vector<1x1x24x128xf32> to vector<24x128xf32>
      %736 = vector.shape_cast %26 : vector<128xf32> to vector<1x128xf32>
      %737 = vector.broadcast %736 : vector<1x128xf32> to vector<24x128xf32>
      %738 = arith.mulf %735, %737 : vector<24x128xf32>
      %739 = vector.shape_cast %28 : vector<128xf32> to vector<1x128xf32>
      %740 = vector.broadcast %739 : vector<1x128xf32> to vector<24x128xf32>
      %741 = arith.mulf %735, %740 : vector<24x128xf32>
      %742 = vector.shape_cast %30 : vector<128xf32> to vector<1x128xf32>
      %743 = vector.broadcast %742 : vector<1x128xf32> to vector<24x128xf32>
      %744 = arith.mulf %735, %743 : vector<24x128xf32>
      %c1_229 = arith.constant 1 : index
      %c16_230 = arith.constant 16 : index
      %c0_231 = arith.constant 0 : index
      %c0_232 = arith.constant 0 : index
      %745 = vector.load %arg7[%c1_229, %c16_230, %c0_231, %c0_232] : memref<2x18x24x128xf32, #tpu.memory_space<vmem>>, vector<1x1x24x128xf32>
      %746 = vector.shape_cast %745 : vector<1x1x24x128xf32> to vector<24x128xf32>
      %747 = vector.shape_cast %32 : vector<128xf32> to vector<1x128xf32>
      %748 = vector.broadcast %747 : vector<1x128xf32> to vector<24x128xf32>
      %749 = arith.mulf %746, %748 : vector<24x128xf32>
      %750 = vector.shape_cast %34 : vector<128xf32> to vector<1x128xf32>
      %751 = vector.broadcast %750 : vector<1x128xf32> to vector<24x128xf32>
      %752 = arith.mulf %746, %751 : vector<24x128xf32>
      %753 = vector.shape_cast %36 : vector<128xf32> to vector<1x128xf32>
      %754 = vector.broadcast %753 : vector<1x128xf32> to vector<24x128xf32>
      %755 = arith.mulf %746, %754 : vector<24x128xf32>
      %756 = arith.addf %738, %749 : vector<24x128xf32>
      %757 = arith.addf %741, %752 : vector<24x128xf32>
      %758 = arith.addf %744, %755 : vector<24x128xf32>
      %c1_233 = arith.constant 1 : index
      %c17 = arith.constant 17 : index
      %c0_234 = arith.constant 0 : index
      %c0_235 = arith.constant 0 : index
      %759 = vector.load %arg7[%c1_233, %c17, %c0_234, %c0_235] : memref<2x18x24x128xf32, #tpu.memory_space<vmem>>, vector<1x1x24x128xf32>
      %760 = vector.shape_cast %759 : vector<1x1x24x128xf32> to vector<24x128xf32>
      %761 = vector.shape_cast %38 : vector<128xf32> to vector<1x128xf32>
      %762 = vector.broadcast %761 : vector<1x128xf32> to vector<24x128xf32>
      %763 = arith.mulf %760, %762 : vector<24x128xf32>
      %764 = vector.shape_cast %40 : vector<128xf32> to vector<1x128xf32>
      %765 = vector.broadcast %764 : vector<1x128xf32> to vector<24x128xf32>
      %766 = arith.mulf %760, %765 : vector<24x128xf32>
      %767 = vector.shape_cast %42 : vector<128xf32> to vector<1x128xf32>
      %768 = vector.broadcast %767 : vector<1x128xf32> to vector<24x128xf32>
      %769 = arith.mulf %760, %768 : vector<24x128xf32>
      %770 = arith.addf %756, %763 : vector<24x128xf32>
      %771 = arith.addf %757, %766 : vector<24x128xf32>
      %772 = arith.addf %758, %769 : vector<24x128xf32>
      %773 = vector.extract_strided_slice %770 {offsets = [0, 0], sizes = [16, 128], strides = [1, 1]} : vector<24x128xf32> to vector<16x128xf32>
      %774 = vector.extract_strided_slice %771 {offsets = [1, 0], sizes = [16, 128], strides = [1, 1]} : vector<24x128xf32> to vector<16x128xf32>
      %775 = arith.addf %773, %774 : vector<16x128xf32>
      %776 = vector.extract_strided_slice %772 {offsets = [2, 0], sizes = [16, 128], strides = [1, 1]} : vector<24x128xf32> to vector<16x128xf32>
      %777 = arith.addf %775, %776 : vector<16x128xf32>
      %c240 = arith.constant 240 : index
      %c0_236 = arith.constant 0 : index
      %778 = vector.load %arg9[%c240, %c0_236] : memref<256x128xf32, #tpu.memory_space<vmem>>, vector<16x128xf32>
      tpu.vector_store %arg9[%c240, %c0_236], %777 {strides = array<i32>} : memref<256x128xf32, #tpu.memory_space<vmem>>, vector<16x128xf32>,
    } else {
    }
    %c0_26 = arith.constant 0 : index
    %c0_27 = arith.constant 0 : index
    %49 = vector.load %arg9[%c0_26, %c0_27] : memref<256x128xf32, #tpu.memory_space<vmem>>, vector<256x128xf32>
    %c0_28 = arith.constant 0 : index
    %c0_29 = arith.constant 0 : index
    %50 = vector.load %arg4[%c0_28, %c0_29] : memref<128x128xf32, #tpu.memory_space<vmem>>, vector<128x128xf32>
    %cst = arith.constant dense<0.000000e+00> : vector<256x128xf32>
    %51 = tpu.matmul %49, %50, %cst {dimension_numbers = #tpu.dot_dimension_numbers<[1], [0], [0], [1], [0, 0, 1, 1], [], []>} : vector<256x128xf32>, vector<128x128xf32>, vector<256x128xf32> -> vector<256x128xf32>
    %c0_30 = arith.constant 0 : index
    %c0_31 = arith.constant 0 : index
    %52 = vector.load %arg5[%c0_30, %c0_31] : memref<1x128xf32, #tpu.memory_space<vmem>>, vector<1x128xf32>
    %53 = vector.broadcast %52 : vector<1x128xf32> to vector<256x128xf32>
    %54 = arith.addf %51, %53 : vector<256x128xf32>
    %55 = vector.shape_cast %54 : vector<256x128xf32> to vector<16x16x128xf32>
    %c0_32 = arith.constant 0 : index
    %c0_33 = arith.constant 0 : index
    %c0_34 = arith.constant 0 : index
    %c0_35 = arith.constant 0 : index
    %56 = vector.load %arg6[%c0_32, %c0_33, %c0_34, %c0_35] : memref<1x16x16x128xf32, #tpu.memory_space<vmem>>, vector<1x16x16x128xf32>
    %57 = vector.shape_cast %56 : vector<1x16x16x128xf32> to vector<16x16x128xf32>
    %58 = vector.shape_cast %55 : vector<16x16x128xf32> to vector<1x16x16x128xf32>
    tpu.vector_store %arg6[%c0_32, %c0_33, %c0_34, %c0_35], %58 {strides = array<i32>} : memref<1x16x16x128xf32, #tpu.memory_space<vmem>>, vector<1x16x16x128xf32>,
    return
  }
  func.func @transform_1(%arg0: i32, %arg1: i32) -> (i32, i32) {
    %c0_i32 = arith.constant 0 : i32
    %c0_i32_0 = arith.constant 0 : i32
    %c0_i32_1 = arith.constant 0 : i32
    return %c0_i32, %c0_i32_0 : i32, i32
  }
  func.func @transform_2(%arg0: i32, %arg1: i32) -> (i32, i32) {
    %c0_i32 = arith.constant 0 : i32
    %c0_i32_0 = arith.constant 0 : i32
    %c0_i32_1 = arith.constant 0 : i32
    return %c0_i32, %c0_i32_0 : i32, i32
  }
  func.func @transform_3(%arg0: i32, %arg1: i32) -> (i32, i32) {
    %c0_i32 = arith.constant 0 : i32
    %c0_i32_0 = arith.constant 0 : i32
    %c0_i32_1 = arith.constant 0 : i32
    return %c0_i32, %c0_i32_0 : i32, i32
  }
  func.func @transform_4(%arg0: i32, %arg1: i32) -> (i32, i32, i32, i32) {
    %c0_i32 = arith.constant 0 : i32
    %c0_i32_0 = arith.constant 0 : i32
    %c0_i32_1 = arith.constant 0 : i32
    return %arg0, %arg1, %c0_i32, %c0_i32_0 : i32, i32, i32, i32
  }
}

</mosaic_0001>

<bundles_post_ra>
// kernel: tpu_custom_call.1
= control target key start
LH: loop header
LB: loop body
LE: loop exit
PB: predicated region body
PF: predicated region fallthrough
CT: control target
= control target key end

     0   :  { %9 = vsyncpa [#allocation6], 0  ;;  %s4823_s0 = inlined_call_operand.hbm [shape: f32[2,18,24,128], index: 0, kind: input, shape index: {}]   ;;  %s4824_s1 = inlined_call_operand.hbm [shape: f32[9,128], index: 1, kind: input, shape index: {}]   ;;  %s4825_s2 = inlined_call_operand.hbm [shape: f32[128,128], index: 2, kind: input, shape index: {}]   ;;  %s4826_s3 = inlined_call_operand.vmem [shape: f32[1,128], index: 3, kind: input, shape index: {}]   ;;  %s4827_s4 = inlined_call_operand.hbm [shape: f32[2,16,16,128], index: 4, kind: output, shape index: {}]  }
   0x1   :  { %10 = vsyncpa [#allocation9], 0 }
   0x2   :  { %11 = vsyncpa [#allocation7], 0 }
   0x3   :  { %13 = vsyncpa [#allocation7 + $0x1], 0  ;;  %s3456_s15 = smov 0   ;;  %s3458_s16 = smov 0  }
   0x4   :  { %s3460_s17 = smov 0   ;;  %s3462_s18 = smov 0  }
   0x5   :  { %s3464_s19 = smov 0   ;;  %s3466_s20 = smov 0  }
   0x6 LB: > { %s3073_s21 = sadd.s32 4294967295, %s3422_s20   ;;  %s3074_s22 = sadd.s32 4294967294, %s3422_s20   ;;  %s3422_s20 = sphi %s3466_s20, %s19_s20   ;;  %s3418_s19 = sphi %s3464_s19, %s4886_s19   ;;  %s3414_s18 = sphi %s3462_s18, %s4885_s18   ;;  %s3410_s17 = sphi %s3460_s17, %s4884_s17   ;;  %s3406_s16 = sphi %s3458_s16, %s4883_s16   ;;  %s3402_s15 = sphi %s3456_s15, %s4882_s15  }
   0x7   : > { %s31_s23 = sadd.s32 1, %s3418_s19  ;;  %s103_s24 = sadd.s32 1, %s3410_s17 }
   0x8   : > { %p33_p0 = scmp.ge.s32.totalorder %s31_s23, 2  ;;  %p113_p1 = scmp.ne.s32.totalorder %s3410_s17, %s3406_s16 }
   0x9   : > { %p114_p2 = scmp.eq.s32.totalorder %s3073_s21, 1  ;;  %p119_p3 = scmp.ne.s32.totalorder %s3406_s16, %s3402_s15 }
   0xa   : > { %s4888_s23 = smov (%p33_p0, %s31_s23), 0  ;;  %p120_p5 = scmp.eq.s32.totalorder %s3074_s22, 1 }
   0xb   : > { %p3496_p4 = por %p114_p2, %p113_p1  ;;  %s98_s26 = ssub.s32 %s3418_s19, %s4888_s23 }
   0xc   : > { %p3075_p6 = scmp.ge.s32.totalorder %s3422_s20, 1  ;;  %p101_p7 = scmp.eq.s32.totalorder %s98_s26, 0 }
   0xd   : > { %p3503_p8 = por %p120_p5, %p119_p3  ;;  %p127_p9 = scmp.lt.s32.totalorder %s3422_s20, 3 }
   0xe   : > { %s3509_s28 = scalar_select %p101_p7, %s3410_s17, %s103_s24  }
   0xf   : > { %p3511_p10 = pnand %p3075_p6, %p127_p9  ;;  %p3515_p11 = scmp.eq.s32.totalorder %s3073_s21, 0 }
  0x10   : > { %s138_s7 = sshll.u32 %s4824_s1, 4  ;;  %s3424_s8 = smov [#allocation5]   ;;  %s139_s7 = int_to_ptr.hbm [resolvable:$true] %s138_s7 }
  0x11   : > { %p3148_p12 = pneg %p3511_p10  ;;  %s140_s9 = sshll.u32 %s3424_s8, 4  ;;  %s141_s9 = int_to_ptr.vmem [resolvable:$true] %s140_s9 }
  0x12   : > { %s152_s12 = sshll.u32 %s4825_s2, 4  ;;  %s3425_s13 = smov 128   ;;  %s153_s12 = int_to_ptr.hbm [resolvable:$true] %s152_s12 }
  0x13   : > { %p3149_p13 = pnand %p3515_p11, %p3148_p12  ;;  %s3426_s14 = smov 8  }
  0x14   : > { %s3427_s21 = smov [#allocation8]   ;;  %173 = sbr.rel (%p3511_p10) target bundleno = 413 (0x19d), region = 32 }
  0x15   : > { %3151 = dma.hbm_to_vmem [thread:$0]  (!%p3149_p13), %s139_s7, 256, %s141_s9, [#allocation6], %s3425_s13, %s3425_s13, %s3426_s14  }
  0x16   : > { %s154_s22 = sshll.u32 %s3427_s21, 4  ;;  %s155_s22 = int_to_ptr.vmem [resolvable:$true] %s154_s22 }
  0x17   : > { %3154 = dma.hbm_to_vmem [thread:$0]  (!%p3149_p13), %s153_s12, 2048, %s155_s22, [#allocation9], %s3425_s13, %s3425_s13, %s3426_s14  }
  0x19   : > { %3387 = dma.done.wait (%p3515_p11), [#allocation6], 256  }
  0x1a   : > { %3389 = vsyncadd (%p3515_p11), [#allocation6], 4294967040 }
  0x1b   : > { %3391 = dma.done.wait (%p3515_p11), [#allocation9], 2048  }
  0x1c   : > { %3393 = vsyncadd (%p3515_p11), [#allocation9], 4294965248  ;;  %s195_s24 = sand.u32 1, %s3406_s16   ;;  %s204_s26 = smul.u32 432, %s3414_s18 }
  0x1d   : > { %s3081_s29 = sshll.u32 %s195_s24, 8  ;;  %s3428_s9 = smov [#allocation2]  }
  0x1e   : > { %s206_s7 = scalar_lea.hbm %s4823_s0, %s204_s26  ;;  %s216_s10 = sshll.u32 %s3428_s9, 4  ;;  %s217_s10 = int_to_ptr.vmem [resolvable:$true] %s216_s10 }
  0x1f   : > { %s214_s8 = sshll.u32 %s206_s7, 4  ;;  %s3314_s14 = scalar_lea.hbm %s4823_s0, 864  ;;  %s215_s8 = int_to_ptr.hbm [resolvable:$true] %s214_s8 }
  0x20   : > { %s3310_s11 = sshra.s32 %s215_s8, 4  ;;  %s3311_s11 = int_to_ptr.hbm [resolvable:$true] %s3310_s11 }
  0x21   : > { %s3312_s30 = scalar_lea.hbm %s3311_s11, 432  ;;  %p3315_p1 = scmp.lt.s32.totalorder %s3311_s11, %s4823_s0 }
  0x22   : > { %p3313_p0 = scmp.ne.s32.totalorder %s3311_s11, %s3312_s30  ;;  %p3316_p2 = scmp.lt.s32.totalorder %s3314_s14, %s3312_s30 }
  0x24   : > { %p3317_p3 = por %p3316_p2, %p3315_p1 }
  0x26   : > { %p3318_p5 = pnand %p3317_p3, %p3313_p0 }
  0x28   : > { %3321 = shalt.err (!%p3318_p5)  }
  0x29   : > { %219 = dma.hbm_to_vmem [thread:$0]  %s215_s8, 6912, %s217_s10, [#allocation3] }
  0x2a   : > { %s3552_s26 = scalar_lea.vmem [#allocation10], %s3081_s29 }
  0x2b   : > { %3394 = dma.done.wait [#allocation3], 6912 }
  0x2c   : > { %3395 = vsyncadd [#allocation3], 4294960384  ;;  %v2797_v0 = vld [vmem:[#allocation8 + $0x78] sm:$0xff]  ;;  %v2796_v1 = vld [vmem:[#allocation8 + $0x70] sm:$0xff]  ;;  %vm352_vm0 = vcmask 1046528   ;;  %vm365_vm1 = vcmask 1045504  }
  0x2d   : > { %3091 = vmatpush.msra.mxu2 %v2797_v0  ;;  %3092 = vmatpush.msra.mxu3 %v2797_v0  ;;  %v2795_v2 = vld [vmem:[#allocation8 + $0x68] sm:$0xff]  ;;  %v2794_v3 = vld [vmem:[#allocation8 + $0x60] sm:$0xff]  ;;  %v2793_v4 = vld [vmem:[#allocation8 + $0x58] sm:$0xff]  ;;  %s3089_s6 = sshll.u32 %s3414_s18, 8  ;;  %s2963_s10 = sshll.u32 %s3552_s26, 4  ;;  %s2964_s10 = int_to_ptr.vmem [resolvable:$true] %s2963_s10 }
  0x2e   : > { %2802 = vmatpush.msra.mxu0 %v2797_v0  ;;  %3090 = vmatpush.msra.mxu1 %v2797_v0  ;;  %v2792_v5 = vld [vmem:[#allocation8 + $0x50] sm:$0xff]  ;;  %v2791_v10 = vld [vmem:[#allocation8 + $0x48] sm:$0xff]  ;;  %v3568_v15 = vld [vmem:[#allocation2 + $0xc8] sm:$0xff]  ;;  %s2962_s9 = scalar_lea.hbm %s4827_s4, %s3089_s6  ;;  %s2948_s18 = scalar_lea.sflag [#allocation7], %s195_s24 }
  0x2f   : > { %3094 = vmatpush.msra.mxu2 %v2796_v1  ;;  %3095 = vmatpush.msra.mxu3 %v2796_v1  ;;  %v3554_v6 = vld [vmem:[#allocation5] ss:$0 sm:$0xff]  ;;  %v3556_v7 = vld [vmem:[#allocation5 + $0x1] ss:$0 sm:$0xff]  ;;  %v3558_v8 = vld [vmem:[#allocation5 + $0x2] ss:$0 sm:$0xff] }
  0x30   : > { %2803 = vmatpush.msra.mxu0 %v2796_v1  ;;  %3093 = vmatpush.msra.mxu1 %v2796_v1  ;;  %v3560_v9 = vld [vmem:[#allocation5 + $0x3] ss:$0 sm:$0xff]  ;;  %v3562_v11 = vld [vmem:[#allocation5 + $0x4] ss:$0 sm:$0xff]  ;;  %v3564_v12 = vld [vmem:[#allocation5 + $0x5] ss:$0 sm:$0xff]  ;;  %v915_v19 = vmul.f32 %v3556_v7, %v3568_v15  ;;  %v918_v25 = vmul.f32 %v3558_v8, %v3568_v15 }
  0x31   : > { %3097 = vmatpush.msra.mxu2 %v2795_v2  ;;  %3098 = vmatpush.msra.mxu3 %v2795_v2  ;;  %v3566_v13 = vld [vmem:[#allocation5 + $0x6] ss:$0 sm:$0xff]  ;;  %v2790_v16 = vld [vmem:[#allocation8 + $0x40] sm:$0xff]  ;;  %v3574_v20 = vld [vmem:[#allocation2 + $0xd8] sm:$0xff]  ;;  %s2965_s11 = sshll.u32 %s2962_s9, 4  ;;  %s3354_s21 = scalar_lea.hbm %s4827_s4, 512  ;;  %s2966_s11 = int_to_ptr.hbm [resolvable:$true] %s2965_s11 }
  0x32   : > { %2804 = vmatpush.msra.mxu0 %v2795_v2  ;;  %3096 = vmatpush.msra.mxu1 %v2795_v2  ;;  %v909_v14 = vld [vmem:[#allocation2 + $0xc0] sm:$0xff]  ;;  %v2789_v22 = vld [vmem:[#allocation8 + $0x38] sm:$0xff]  ;;  %v923_v26 = vmul.f32 %v3560_v9, %v3574_v20  ;;  %v925_v28 = vmul.f32 %v3562_v11, %v3574_v20  ;;  %v928_v30 = vmul.f32 %v3564_v12, %v3574_v20  ;;  %v3593_v31 = vld [vmem:[#allocation2 + $0xf0] sm:$0xff]  ;;  %s3348_s30 = sshra.s32 %s2966_s11, 4  ;;  %s3349_s30 = int_to_ptr.hbm [resolvable:$true] %s3348_s30 }
  0x33   : > { %3100 = vmatpush.msra.mxu2 %v2794_v3  ;;  %3101 = vmatpush.msra.mxu3 %v2794_v3  ;;  %v912_v17 = vmul.f32 %v3554_v6, %v909_v14  ;;  %v914_v18 = vmul.f32 %v3556_v7, %v909_v14  ;;  %v3576_v21 = vld [vmem:[#allocation2 + $0xe0] sm:$0xff]  ;;  %v917_v24 = vmul.f32 %v3558_v8, %v909_v14  ;;  %v3585_v27 = vld [vmem:[#allocation5 + $0x8] ss:$0 sm:$0xff]  ;;  %v3595_v32 = vld [vmem:[#allocation2 + $0xf8] sm:$0xff]  ;;  %s3350_s12 = scalar_lea.hbm %s3349_s30, 256  ;;  %p3355_p10 = scmp.lt.s32.totalorder %s3349_s30, %s4827_s4 }
  0x34   : > { %2805 = vmatpush.msra.mxu0 %v2794_v3  ;;  %3099 = vmatpush.msra.mxu1 %v2794_v3  ;;  %v3578_v23 = vld [vmem:[#allocation5 + $0x7] ss:$0 sm:$0xff]  ;;  %v926_v29 = vmul.f32 %v3562_v11, %v3576_v21  ;;  %v929_v33 = vmul.f32 %v3564_v12, %v3576_v21  ;;  %v943_v35 = vmul.f32 %v3566_v13, %v3593_v31  ;;  %v2787_v44 = vld [vmem:[#allocation8 + $0x28] sm:$0xff]  ;;  %v3609_v48 = vld [vmem:[#allocation2 + $0x128] sm:$0xff]  ;;  %p3351_p6 = scmp.ne.s32.totalorder %s3349_s30, %s3350_s12  ;;  %p3356_p11 = scmp.lt.s32.totalorder %s3354_s21, %s3350_s12 }
  0x35   : > { %3103 = vmatpush.msra.mxu2 %v2793_v4  ;;  %3104 = vmatpush.msra.mxu3 %v2793_v4  ;;  %v931_v34 = vadd.f32 %v923_v26, %v912_v17  ;;  %v2788_v36 = vld [vmem:[#allocation8 + $0x30] sm:$0xff]  ;;  %v933_v37 = vadd.f32 %v925_v28, %v914_v18  ;;  %v936_v39 = vadd.f32 %v928_v30, %v917_v24  ;;  %v2786_v52 = vld [vmem:[#allocation8 + $0x20] sm:$0xff]  ;;  %v3617_v56 = vld [vmem:[#allocation2 + $0x138] sm:$0xff] }
  0x36   : > { %2806 = vmatpush.msra.mxu0 %v2793_v4  ;;  %3102 = vmatpush.msra.mxu1 %v2793_v4  ;;  %v934_v38 = vadd.f32 %v926_v29, %v915_v19  ;;  %v937_v40 = vadd.f32 %v929_v33, %v918_v25  ;;  %v945_v41 = vmul.f32 %v3578_v23, %v3593_v31  ;;  %v1213_v43 = vld [vmem:[#allocation2 + $0x120] sm:$0xff]  ;;  %v2785_v62 = vld [vmem:[#allocation8 + $0x18] sm:$0xff]  ;;  %v3642_v18 = vld [vmem:[#allocation2 + $0x150] sm:$0xff]  ;;  %p3352_p7 = pnand %p3351_p6, %p3496_p4  ;;  %p3357_p12 = por %p3356_p11, %p3355_p10 }
  0x37   : > { %3106 = vmatpush.msra.mxu2 %v2792_v5  ;;  %3107 = vmatpush.msra.mxu3 %v2792_v5  ;;  %v946_v42 = vmul.f32 %v3578_v23, %v3595_v32  ;;  %v948_v45 = vmul.f32 %v3585_v27, %v3593_v31  ;;  %v949_v46 = vmul.f32 %v3585_v27, %v3595_v32  ;;  %v3619_v57 = vld [vmem:[#allocation2 + $0x140] sm:$0xff]  ;;  %v3646_v25 = vld [vmem:[#allocation2 + $0x158] sm:$0xff] }
  0x38   : > { %2807 = vmatpush.msra.mxu0 %v2792_v5  ;;  %3105 = vmatpush.msra.mxu1 %v2792_v5  ;;  %v951_v47 = vadd.f32 %v943_v35, %v931_v34  ;;  %v953_v49 = vadd.f32 %v945_v41, %v933_v37  ;;  %v1216_v51 = vmul.f32 %v3554_v6, %v1213_v43  ;;  %v2783_v26 = vld [vmem:[#allocation8 + $0x8] sm:$0xff]  ;;  %v3658_v41 = vld [vmem:[#allocation2 + $0x8] sm:$0xff]  ;;  %p3353_p9 = pneg %p3352_p7 }
  0x39   : > { %3109 = vmatpush.msra.mxu2 %v2791_v10  ;;  %3110 = vmatpush.msra.mxu3 %v2791_v10  ;;  %v3611_v50 = vadd.f32 %v946_v42, %v934_v38  ;;  %v956_v53 = vadd.f32 %v948_v45, %v936_v39  ;;  %v3614_v54 = vadd.f32 %v949_v46, %v937_v40  ;;  %v289_v40 = vld [vmem:[#allocation2] sm:$0xff] }
  0x3a   : > { %2808 = vmatpush.msra.mxu0 %v2791_v10  ;;  %3108 = vmatpush.msra.mxu1 %v2791_v10  ;;  %v1218_v55 = vmul.f32 %v3556_v7, %v1213_v43  ;;  %v962_v58 = vrot.slane %v953_v49, 1  ;;  %v1219_v60 = vmul.f32 %v3556_v7, %v3609_v48  ;;  %v1221_v61 = vmul.f32 %v3558_v8, %v1213_v43  ;;  %v2784_v10 = vld [vmem:[#allocation8 + $0x10] sm:$0xff]  ;;  %v3665_v49 = vld [vmem:[#allocation2 + $0x18] sm:$0xff]  ;;  %p3358_p13 = pnand %p3357_p12, %p3353_p9 }
  0x3b   : > { %3112 = vmatpush.msra.mxu2 %v2790_v16  ;;  %3113 = vmatpush.msra.mxu3 %v2790_v16  ;;  %v963_v59 = vrot.slane %v3611_v50, 1  ;;  %v974_v63 = vrot.slane %v956_v53, 2  ;;  %v975_v0 = vrot.slane %v3614_v54, 2  ;;  %v1222_v1 = vmul.f32 %v3558_v8, %v3609_v48 }
  0x3c   : > { %2809 = vmatpush.msra.mxu0 %v2790_v16  ;;  %3111 = vmatpush.msra.mxu1 %v2790_v16  ;;  %v1227_v2 = vmul.f32 %v3560_v9, %v3617_v56  ;;  %v1229_v4 = vmul.f32 %v3562_v11, %v3617_v56  ;;  %v1230_v5 = vmul.f32 %v3562_v11, %v3619_v57 }
  0x3d   : > { %3115 = vmatpush.msra.mxu2 %v2789_v22  ;;  %3116 = vmatpush.msra.mxu3 %v2789_v22  ;;  %v964_v3 = vsel %vm352_vm0, %v962_v58, %v963_v59  ;;  %v976_v16 = vsel %vm365_vm1, %v974_v63, %v975_v0  ;;  %v1232_v17 = vmul.f32 %v3564_v12, %v3617_v56 }
  0x3e   : > { %2810 = vmatpush.msra.mxu0 %v2789_v22  ;;  %3114 = vmatpush.msra.mxu1 %v2789_v22  ;;  %v969_v14 = vadd.f32 %v964_v3, %v951_v47  ;;  %v1233_v19 = vmul.f32 %v3564_v12, %v3619_v57  ;;  %v1235_v22 = vadd.f32 %v1227_v2, %v1216_v51  ;;  %v3667_v51 = vld [vmem:[#allocation2 + $0x20] sm:$0xff] }
  0x3f   : > { %3118 = vmatpush.msra.mxu2 %v2788_v36  ;;  %3119 = vmatpush.msra.mxu3 %v2788_v36  ;;  %v1237_v24 = vadd.f32 %v1229_v4, %v1218_v55  ;;  %v1238_v29 = vadd.f32 %v1230_v5, %v1219_v60  ;;  %v1240_v30 = vadd.f32 %v1232_v17, %v1221_v61  ;;  %v3685_v5 = vld [vmem:[#allocation2 + $0x30] sm:$0xff] }
  0x40   : > { %2811 = vmatpush.msra.mxu0 %v2788_v36  ;;  %3117 = vmatpush.msra.mxu1 %v2788_v36  ;;  %v981_v28 = vadd.f32 %v976_v16, %v969_v14  ;;  %v1241_v33 = vadd.f32 %v1233_v19, %v1222_v1  ;;  %v1247_v34 = vmul.f32 %v3566_v13, %v3642_v18  ;;  %v2782_v36 = vld [vmem:[#allocation8] sm:$0xff] }
  0x41   : > { %3121 = vmatpush.msra.mxu2 %v2787_v44  ;;  %3122 = vmatpush.msra.mxu3 %v2787_v44  ;;  %v1249_v35 = vmul.f32 %v3578_v23, %v3642_v18  ;;  %v1250_v37 = vmul.f32 %v3578_v23, %v3646_v25  ;;  %v1252_v38 = vmul.f32 %v3585_v27, %v3642_v18 }
  0x42   : > { %2812 = vmatpush.msra.mxu0 %v2787_v44  ;;  %3120 = vmatpush.msra.mxu1 %v2787_v44  ;;  %v1253_v39 = vmul.f32 %v3585_v27, %v3646_v25  ;;  %v1255_v42 = vadd.f32 %v1247_v34, %v1235_v22  ;;  %v293_v44 = vmul.f32 %v3554_v6, %v289_v40 }
  0x43   : > { %3124 = vmatpush.msra.mxu2 %v2786_v52  ;;  %3125 = vmatpush.msra.mxu3 %v2786_v52  ;;  %v1257_v43 = vadd.f32 %v1249_v35, %v1237_v24  ;;  %v3661_v45 = vadd.f32 %v1250_v37, %v1238_v29  ;;  %v1260_v46 = vadd.f32 %v1252_v38, %v1240_v30  ;;  %v3699_v29 = vld [vmem:[#allocation2 + $0x60] sm:$0xff] }
  0x44   : > { %2813 = vmatpush.msra.mxu0 %v2786_v52  ;;  %3123 = vmatpush.msra.mxu1 %v2786_v52  ;;  %v3663_v47 = vadd.f32 %v1253_v39, %v1241_v33  ;;  %v296_v53 = vmul.f32 %v3556_v7, %v289_v40  ;;  %v297_v55 = vmul.f32 %v3556_v7, %v3658_v41 }
  0x45   : > { %3127 = vmatpush.msra.mxu2 %v2785_v62  ;;  %3128 = vmatpush.msra.mxu3 %v2785_v62  ;;  %v1266_v52 = vrot.slane %v1257_v43, 1  ;;  %v300_v58 = vmul.f32 %v3558_v8, %v289_v40  ;;  %v4833_v60 = vrot.slane %v3661_v45, 1  ;;  %v1278_v61 = vrot.slane %v1260_v46, 2  ;;  %4857 = vst [vmem:[#allocation21_spill] sm:$0xff] %v3699_v29 }
  0x46   : > { %2814 = vmatpush.msra.mxu0 %v2785_v62  ;;  %3126 = vmatpush.msra.mxu1 %v2785_v62  ;;  %v4829_v62 = vrot.slane %v3663_v47, 2  ;;  %v301_v63 = vmul.f32 %v3558_v8, %v3658_v41  ;;  %v308_v1 = vmul.f32 %v3560_v9, %v3665_v49  ;;  %v311_v2 = vmul.f32 %v3562_v11, %v3665_v49 }
  0x47   : > { %3130 = vmatpush.msra.mxu2 %v2784_v10  ;;  %3131 = vmatpush.msra.mxu3 %v2784_v10  ;;  %v312_v3 = vmul.f32 %v3562_v11, %v3667_v51  ;;  %v315_v4 = vmul.f32 %v3564_v12, %v3665_v49  ;;  %v1268_v14 = vsel %vm352_vm0, %v1266_v52, %v4833_v60  ;;  %v3717_v52 = vld [vmem:[#allocation2 + $0x78] sm:$0xff]  ;;  %v3822_v60 = vld [vmem:[#allocation2 + $0x28] sm:$0xff] }
  0x48   : > { %2815 = vmatpush.msra.mxu0 %v2784_v10  ;;  %3129 = vmatpush.msra.mxu1 %v2784_v10  ;;  %v3687_v10 = vld [vmem:[#allocation2 + $0x38] sm:$0xff]  ;;  %v1280_v16 = vsel %vm365_vm1, %v1278_v61, %v4829_v62  ;;  %v316_v17 = vmul.f32 %v3564_v12, %v3667_v51  ;;  %v331_v19 = vmul.f32 %v3566_v13, %v3685_v5 }
  0x49   : > { %3133 = vmatpush.msra.mxu2 %v2783_v26  ;;  %3134 = vmatpush.msra.mxu3 %v2783_v26  ;;  %v1273_v22 = vadd.f32 %v1268_v14, %v1255_v42  ;;  %v318_v24 = vadd.f32 %v308_v1, %v293_v44  ;;  %v323_v30 = vadd.f32 %v315_v4, %v300_v58 }
  0x4a   : > { %2816 = vmatpush.msra.mxu0 %v2783_v26  ;;  %3132 = vmatpush.msra.mxu1 %v2783_v26  ;;  %v320_v26 = vadd.f32 %v311_v2, %v296_v53  ;;  %v324_v33 = vadd.f32 %v316_v17, %v301_v63  ;;  %v334_v34 = vmul.f32 %v3578_v23, %v3685_v5  ;;  %v3719_v53 = vld [vmem:[#allocation2 + $0x80] sm:$0xff] }
  0x4b   : > { %3136 = vmatpush.msra.mxu2 %v2782_v36  ;;  %3137 = vmatpush.msra.mxu3 %v2782_v36  ;;  %v335_v35 = vmul.f32 %v3578_v23, %v3687_v10  ;;  %v1285_v37 = vadd.f32 %v1280_v16, %v1273_v22  ;;  %v338_v38 = vmul.f32 %v3585_v27, %v3685_v5  ;;  %v3737_v22 = vld [vmem:[#allocation2 + $0x90] sm:$0xff] }
  0x4c   : > { %2866 = vmatmul.f32.vlgmr.msra.gmra.mxu2 %v981_v28  ;;  %2817 = vmatpush.msra.mxu0 %v2782_v36  ;;  %v321_v28 = vadd.f32 %v312_v3, %v297_v55  ;;  %v339_v39 = vmul.f32 %v3585_v27, %v3687_v10  ;;  %v341_v40 = vadd.f32 %v331_v19, %v318_v24 }
  0x4d   : > { %3135 = vmatpush.msra.mxu1 %v2782_v36  ;;  %v3705_v36 = vld [vmem:[#allocation2 + $0x68] sm:$0xff]  ;;  %v343_v42 = vadd.f32 %v334_v34, %v320_v26  ;;  %v608_v44 = vmul.f32 %v3554_v6, %v3699_v29  ;;  %v610_v46 = vmul.f32 %v3556_v7, %v3699_v29  ;;  %2890 = vmatmul.f32.vlgmr.msra.gmra.mxu3 %v1285_v37 }
  0x4e   : > { %4858 = vst [vmem:[#allocation22_spill] sm:$0xff] %v3705_v36  ;;  %v3711_v43 = vadd.f32 %v335_v35, %v321_v28  ;;  %v346_v55 = vadd.f32 %v338_v38, %v323_v30  ;;  %v3721_v58 = vadd.f32 %v339_v39, %v324_v33  ;;  %v611_v61 = vmul.f32 %v3556_v7, %v3705_v36  ;;  %v3746_v33 = vld [vmem:[#allocation2 + $0x98] sm:$0xff]  ;;  %v911_v39 = vld [vmem:[#allocation2 + $0xd0] sm:$0xff] }
  0x4f   : > { %v613_v63 = vmul.f32 %v3558_v8, %v3699_v29  ;;  %v353_v1 = vrot.slane %v343_v42, 1  ;;  %v614_v3 = vmul.f32 %v3558_v8, %v3705_v36  ;;  %v619_v4 = vmul.f32 %v3560_v9, %v3717_v52  ;;  %4859 = vst [vmem:[#allocation23_spill] sm:$0xff] %v3737_v22 }
  0x50   : > { %v4828_v2 = vrot.slane %v3711_v43, 1  ;;  %v366_v14 = vrot.slane %v346_v55, 2  ;;  %v4830_v16 = vrot.slane %v3721_v58, 2  ;;  %v621_v17 = vmul.f32 %v3562_v11, %v3717_v52 }
  0x51   : > { %v622_v19 = vmul.f32 %v3562_v11, %v3719_v53  ;;  %v624_v26 = vmul.f32 %v3564_v12, %v3717_v52  ;;  %v625_v28 = vmul.f32 %v3564_v12, %v3719_v53  ;;  %v627_v30 = vadd.f32 %v619_v4, %v608_v44 }
  0x52   : > { %v355_v24 = vsel %vm352_vm0, %v353_v1, %v4828_v2  ;;  %v368_v35 = vsel %vm365_vm1, %v366_v14, %v4830_v16  ;;  %v629_v37 = vadd.f32 %v621_v17, %v610_v46  ;;  %v639_v1 = vmul.f32 %v3566_v13, %v3737_v22 }
  0x53   : > { %v360_v34 = vadd.f32 %v355_v24, %v341_v40  ;;  %v630_v38 = vadd.f32 %v622_v19, %v611_v61  ;;  %v632_v42 = vadd.f32 %v624_v26, %v613_v63  ;;  %v633_v55 = vadd.f32 %v625_v28, %v614_v3  ;;  %v3761_v61 = vld [vmem:[#allocation2 + $0xe8] sm:$0xff]  ;;  %v3771_v28 = vld [vmem:[#allocation2 + $0x100] sm:$0xff] }
  0x54   : > { %v641_v2 = vmul.f32 %v3578_v23, %v3737_v22  ;;  %v642_v44 = vmul.f32 %v3578_v23, %v3746_v33  ;;  %v644_v40 = vmul.f32 %v3585_v27, %v3737_v22  ;;  %v645_v46 = vmul.f32 %v3585_v27, %v3746_v33 }
  0x55   : > { %v373_v62 = vadd.f32 %v368_v35, %v360_v34  ;;  %v647_v63 = vadd.f32 %v639_v1, %v627_v30  ;;  %v913_v4 = vmul.f32 %v3554_v6, %v3568_v15  ;;  %v916_v14 = vmul.f32 %v3556_v7, %v911_v39 }
  0x56   : > { %v649_v3 = vadd.f32 %v641_v2, %v629_v37  ;;  %v3766_v17 = vadd.f32 %v642_v44, %v630_v38  ;;  %v652_v19 = vadd.f32 %v644_v40, %v632_v42  ;;  %v3768_v24 = vadd.f32 %v645_v46, %v633_v55  ;;  %v3787_v40 = vld [vmem:[#allocation2 + $0x148] sm:$0xff] }
  0x57   : > { %2818 = vmatmul.f32.vlgmr.msra.gmra.mxu0 %v373_v62  ;;  %v919_v26 = vmul.f32 %v3558_v8, %v911_v39  ;;  %v924_v30 = vmul.f32 %v3560_v9, %v3576_v21  ;;  %v927_v2 = vmul.f32 %v3562_v11, %v3761_v61  ;;  %v930_v15 = vmul.f32 %v3564_v12, %v3761_v61  ;;  %v3783_v39 = vld [vmem:[#allocation2 + $0x130] sm:$0xff] }
  0x58   : > { %v658_v34 = vrot.slane %v649_v3, 1  ;;  %v4832_v62 = vrot.slane %v3766_v17, 1  ;;  %v670_v35 = vrot.slane %v652_v19, 2  ;;  %v4831_v37 = vrot.slane %v3768_v24, 2  ;;  %4860 = vst [vmem:[#allocation24_spill] sm:$0xff] %v3783_v39 }
  0x59   : > { %v944_v38 = vmul.f32 %v3566_v13, %v3595_v32  ;;  %v932_v42 = vadd.f32 %v924_v30, %v913_v4  ;;  %v935_v55 = vadd.f32 %v927_v2, %v916_v14  ;;  %v938_v1 = vadd.f32 %v930_v15, %v919_v26  ;;  %v3801_v15 = vld [vmem:[#allocation2 + $0x160] sm:$0xff] }
  0x5a   : > { %v947_v44 = vmul.f32 %v3578_v23, %v3771_v28  ;;  %v660_v46 = vsel %vm352_vm0, %v658_v34, %v4832_v62  ;;  %v672_v3 = vsel %vm365_vm1, %v670_v35, %v4831_v37  ;;  %v950_v19 = vmul.f32 %v3585_v27, %v3771_v28 }
  0x5b   : > { %v1217_v4 = vmul.f32 %v3554_v6, %v3609_v48  ;;  %v665_v14 = vadd.f32 %v660_v46, %v647_v63  ;;  %v952_v26 = vadd.f32 %v944_v38, %v932_v42  ;;  %v1220_v2 = vmul.f32 %v3556_v7, %v3783_v39  ;;  %v291_v46 = vld [vmem:[#allocation2 + $0x10] sm:$0xff] }
  0x5c   : > { %v955_v30 = vadd.f32 %v947_v44, %v935_v55  ;;  %v958_v16 = vadd.f32 %v950_v19, %v938_v1  ;;  %v1223_v34 = vmul.f32 %v3558_v8, %v3783_v39  ;;  %v1228_v35 = vmul.f32 %v3560_v9, %v3619_v57 }
  0x5d   : > { %v1231_v37 = vmul.f32 %v3562_v11, %v3787_v40  ;;  %v677_v62 = vadd.f32 %v672_v3, %v665_v14  ;;  %v1234_v63 = vmul.f32 %v3564_v12, %v3787_v40  ;;  %v1248_v38 = vmul.f32 %v3566_v13, %v3646_v25 }
  0x5e   : > { %v965_v48 = vrot.slane %v955_v30, 1  ;;  %v977_v42 = vrot.slane %v958_v16, 2  ;;  %v1236_v55 = vadd.f32 %v1228_v35, %v1217_v4  ;;  %v1251_v44 = vmul.f32 %v3578_v23, %v3801_v15 }
  0x5f   : > { %v1239_v1 = vadd.f32 %v1231_v37, %v1220_v2  ;;  %2842 = vmatmul.f32.vlgmr.msra.gmra.mxu1 %v677_v62  ;;  %v1242_v3 = vadd.f32 %v1234_v63, %v1223_v34  ;;  %v1254_v14 = vmul.f32 %v3585_v27, %v3801_v15  ;;  %v294_v30 = vmul.f32 %v3554_v6, %v3658_v41  ;;  %v3827_v2 = vld [vmem:[#allocation2 + $0x40] sm:$0xff] }
  0x60   : > { %v966_v19 = vsel %vm352_vm0, %v963_v59, %v965_v48  ;;  %v978_v37 = vsel %vm365_vm1, %v975_v0, %v977_v42  ;;  %v1256_v4 = vadd.f32 %v1248_v38, %v1236_v55  ;;  %v298_v59 = vmul.f32 %v3556_v7, %v291_v46  ;;  %v3841_v55 = vld [vmem:[#allocation2 + $0x70] sm:$0xff] }
  0x61   : > { %v970_v16 = vadd.f32 %v966_v19, %v952_v26  ;;  %v1259_v62 = vadd.f32 %v1251_v44, %v1239_v1  ;;  %v1262_v50 = vadd.f32 %v1254_v14, %v1242_v3  ;;  %v302_v34 = vmul.f32 %v3558_v8, %v291_v46  ;;  %4861 = vst [vmem:[#allocation25_spill] sm:$0xff] %v3841_v55  ;;  %v3848_v14 = vld [vmem:[#allocation2 + $0x88] sm:$0xff] }
  0x62   : > { %v309_v35 = vmul.f32 %v3560_v9, %v3667_v51  ;;  %v313_v26 = vmul.f32 %v3562_v11, %v3822_v60  ;;  %v317_v54 = vmul.f32 %v3564_v12, %v3822_v60  ;;  %v332_v38 = vmul.f32 %v3566_v13, %v3687_v10 }
  0x63   : > { %v982_v41 = vadd.f32 %v978_v37, %v970_v16  ;;  %v1269_v48 = vrot.slane %v1259_v62, 1  ;;  %v1281_v0 = vrot.slane %v1262_v50, 2  ;;  %v336_v42 = vmul.f32 %v3578_v23, %v3827_v2 }
  0x64   : > { %v319_v63 = vadd.f32 %v309_v35, %v294_v30  ;;  %v4862_v1 = vrot.slane %v3661_v45, 1  ;;  %v322_v46 = vadd.f32 %v313_v26, %v298_v59  ;;  %v325_v19 = vadd.f32 %v317_v54, %v302_v34  ;;  %v3855_v35 = vld [vmem:[#allocation2 + $0xa0] sm:$0xff] }
  0x65   : > { %2869 = vmatmul.f32.gmra.mxu2 %v982_v41  ;;  %v340_v3 = vmul.f32 %v3585_v27, %v3827_v2  ;;  %v4863_v16 = vrot.slane %v3663_v47, 2  ;;  %v609_v50 = vmul.f32 %v3554_v6, %v3705_v36  ;;  %v612_v59 = vmul.f32 %v3556_v7, %v3841_v55 }
  0x66   : > { %v1270_v44 = vsel %vm352_vm0, %v4862_v1, %v1269_v48  ;;  %v342_v62 = vadd.f32 %v332_v38, %v319_v63  ;;  %v345_v45 = vadd.f32 %v336_v42, %v322_v46  ;;  %v615_v34 = vmul.f32 %v3558_v8, %v3841_v55 }
  0x67   : > { %v1274_v30 = vadd.f32 %v1270_v44, %v1256_v4  ;;  %v1282_v37 = vsel %vm365_vm1, %v4863_v16, %v1281_v0  ;;  %v348_v41 = vadd.f32 %v340_v3, %v325_v19  ;;  %v620_v47 = vmul.f32 %v3560_v9, %v3719_v53 }
  0x68   : > { %v623_v4 = vmul.f32 %v3562_v11, %v3848_v14  ;;  %v626_v26 = vmul.f32 %v3564_v12, %v3848_v14  ;;  %v356_v54 = vrot.slane %v345_v45, 1  ;;  %v640_v63 = vmul.f32 %v3566_v13, %v3746_v33 }
  0x69   : > { %v1286_v48 = vadd.f32 %v1282_v37, %v1274_v30  ;;  %v369_v0 = vrot.slane %v348_v41, 2  ;;  %v643_v38 = vmul.f32 %v3578_v23, %v3855_v35  ;;  %v628_v42 = vadd.f32 %v620_v47, %v609_v50 }
  0x6a   : > { %v631_v1 = vadd.f32 %v623_v4, %v612_v59  ;;  %v634_v44 = vadd.f32 %v626_v26, %v615_v34  ;;  %v646_v46 = vmul.f32 %v3585_v27, %v3855_v35  ;;  %v4864_v19 = vrot.slane %v3711_v43, 1 }
  0x6b   : > { %2893 = vmatmul.f32.gmra.mxu3 %v1286_v48  ;;  %v4865_v30 = vrot.slane %v3721_v58, 2  ;;  %v988_v37 = vmul.f32 %v3554_v6, %v3574_v20  ;;  %v990_v45 = vmul.f32 %v3556_v7, %v3574_v20  ;;  %v648_v41 = vadd.f32 %v640_v63, %v628_v42  ;;  %v3899_v42 = vld [vmem:[#allocation2 + $0x108] sm:$0xff] }
  0x6c   : > { %v357_v3 = vsel %vm352_vm0, %v4864_v19, %v356_v54  ;;  %v651_v59 = vadd.f32 %v643_v38, %v631_v1  ;;  %v654_v34 = vadd.f32 %v646_v46, %v634_v44  ;;  %v991_v48 = vmul.f32 %v3556_v7, %v3576_v21  ;;  %v3901_v1 = vld [vmem:[#allocation2 + $0x110] sm:$0xff] }
  0x6d   : > { %v370_v16 = vsel %vm365_vm1, %v4865_v30, %v369_v0  ;;  %v361_v50 = vadd.f32 %v357_v3, %v342_v62  ;;  %v993_v43 = vmul.f32 %v3558_v8, %v3574_v20  ;;  %v994_v58 = vmul.f32 %v3558_v8, %v3576_v21 }
  0x6e   : > { %v999_v47 = vmul.f32 %v3560_v9, %v3593_v31  ;;  %v661_v26 = vrot.slane %v651_v59, 1  ;;  %v673_v54 = vrot.slane %v654_v34, 2  ;;  %v1001_v62 = vmul.f32 %v3562_v11, %v3593_v31 }
  0x6f   : > { %v374_v4 = vadd.f32 %v370_v16, %v361_v50  ;;  %v1002_v0 = vmul.f32 %v3562_v11, %v3595_v32  ;;  %v1004_v63 = vmul.f32 %v3564_v12, %v3593_v31  ;;  %v1005_v20 = vmul.f32 %v3564_v12, %v3595_v32 }
  0x70   : > { %v1007_v38 = vadd.f32 %v999_v47, %v988_v37  ;;  %v4866_v44 = vrot.slane %v3766_v17, 1  ;;  %v4867_v19 = vrot.slane %v3768_v24, 2  ;;  %v1009_v30 = vadd.f32 %v1001_v62, %v990_v45 }
  0x71   : > { %2821 = vmatmul.f32.gmra.mxu0 %v374_v4  ;;  %v1019_v31 = vmul.f32 %v3566_v13, %v3899_v42  ;;  %v1010_v50 = vadd.f32 %v1002_v0, %v991_v48  ;;  %v1012_v37 = vadd.f32 %v1004_v63, %v993_v43  ;;  %v1013_v59 = vadd.f32 %v1005_v20, %v994_v58 }
  0x72   : > { %v662_v46 = vsel %vm352_vm0, %v4866_v44, %v661_v26  ;;  %v674_v3 = vsel %vm365_vm1, %v4867_v19, %v673_v54  ;;  %v1021_v34 = vmul.f32 %v3578_v23, %v3899_v42  ;;  %v1022_v17 = vmul.f32 %v3578_v23, %v3901_v1 }
  0x73   : > { %v666_v16 = vadd.f32 %v662_v46, %v648_v41  ;;  %v1024_v47 = vmul.f32 %v3585_v27, %v3899_v42  ;;  %v1025_v24 = vmul.f32 %v3585_v27, %v3901_v1  ;;  %v1027_v4 = vadd.f32 %v1019_v31, %v1007_v38 }
  0x74   : > { %v1292_v41 = vmul.f32 %v3554_v6, %v3617_v56  ;;  %v1294_v48 = vmul.f32 %v3556_v7, %v3617_v56  ;;  %v1029_v43 = vadd.f32 %v1021_v34, %v1009_v30  ;;  %v3923_v58 = vadd.f32 %v1022_v17, %v1010_v50  ;;  %v3947_v50 = vld [vmem:[#allocation2 + $0x170] sm:$0xff] }
  0x75   : > { %v678_v45 = vadd.f32 %v674_v3, %v666_v16  ;;  %v1032_v26 = vadd.f32 %v1024_v47, %v1012_v37  ;;  %v3925_v54 = vadd.f32 %v1025_v24, %v1013_v59  ;;  %v1295_v62 = vmul.f32 %v3556_v7, %v3619_v57  ;;  %v3945_v16 = vld [vmem:[#allocation2 + $0x168] sm:$0xff] }
  0x76   : > { %v1297_v0 = vmul.f32 %v3558_v8, %v3617_v56  ;;  %v1298_v63 = vmul.f32 %v3558_v8, %v3619_v57  ;;  %v1303_v20 = vmul.f32 %v3560_v9, %v3642_v18  ;;  %v1038_v38 = vrot.slane %v1029_v43, 1 }
  0x77   : > { %2845 = vmatmul.f32.gmra.mxu1 %v678_v45  ;;  %v4838_v44 = vrot.slane %v3923_v58, 1  ;;  %v1050_v46 = vrot.slane %v1032_v26, 2  ;;  %v4839_v19 = vrot.slane %v3925_v54, 2  ;;  %v1305_v3 = vmul.f32 %v3562_v11, %v3642_v18 }
  0x78   : > { %v1306_v30 = vmul.f32 %v3562_v11, %v3646_v25  ;;  %v1308_v56 = vmul.f32 %v3564_v12, %v3642_v18  ;;  %v1309_v31 = vmul.f32 %v3564_v12, %v3646_v25  ;;  %v1311_v34 = vadd.f32 %v1303_v20, %v1292_v41 }
  0x79   : > { %v1040_v37 = vsel %vm352_vm0, %v1038_v38, %v4838_v44  ;;  %v1052_v59 = vsel %vm365_vm1, %v1050_v46, %v4839_v19  ;;  %v1323_v17 = vmul.f32 %v3566_v13, %v3945_v16  ;;  %v1313_v24 = vadd.f32 %v1305_v3, %v1294_v48 }
  0x7a   : > { %v1045_v47 = vadd.f32 %v1040_v37, %v1027_v4  ;;  %v1314_v45 = vadd.f32 %v1306_v30, %v1295_v62  ;;  %v1316_v43 = vadd.f32 %v1308_v56, %v1297_v0  ;;  %v1317_v26 = vadd.f32 %v1309_v31, %v1298_v63 }
  0x7b   : > { %v1325_v55 = vmul.f32 %v3578_v23, %v3945_v16  ;;  %v1326_v39 = vmul.f32 %v3578_v23, %v3947_v50  ;;  %v1328_v38 = vmul.f32 %v3585_v27, %v3945_v16  ;;  %v1329_v41 = vmul.f32 %v3585_v27, %v3947_v50 }
  0x7c   : > { %v1057_v44 = vadd.f32 %v1052_v59, %v1045_v47  ;;  %v1331_v20 = vadd.f32 %v1323_v17, %v1311_v34  ;;  %v380_v4 = vmul.f32 %v3554_v6, %v3665_v49  ;;  %v382_v63 = vmul.f32 %v3556_v7, %v3665_v49  ;;  %v3989_v17 = vld [vmem:[#allocation2 + $0x48] sm:$0xff]  ;;  %v3991_v47 = vld [vmem:[#allocation2 + $0x50] sm:$0xff] }
  0x7d   : > { %v1333_v48 = vadd.f32 %v1325_v55, %v1313_v24  ;;  %v3967_v62 = vadd.f32 %v1326_v39, %v1314_v45  ;;  %v1336_v0 = vadd.f32 %v1328_v38, %v1316_v43  ;;  %v3971_v46 = vadd.f32 %v1329_v41, %v1317_v26  ;;  %4868 = vst [vmem:[#allocation26_spill] sm:$0xff] %v3989_v17 }
  0x7e   : > { %2872 = vmatmul.f32.gmra.mxu2 %v1057_v44  ;;  %v383_v3 = vmul.f32 %v3556_v7, %v3667_v51  ;;  %v385_v30 = vmul.f32 %v3558_v8, %v3665_v49  ;;  %v386_v56 = vmul.f32 %v3558_v8, %v3667_v51  ;;  %v391_v37 = vmul.f32 %v3560_v9, %v3685_v5 }
  0x7f   : > { %v1342_v31 = vrot.slane %v1333_v48, 1  ;;  %v4844_v39 = vrot.slane %v3967_v62, 1  ;;  %v1354_v55 = vrot.slane %v1336_v0, 2  ;;  %v4845_v44 = vrot.slane %v3971_v46, 2 }
  0x80   : > { %v393_v59 = vmul.f32 %v3562_v11, %v3685_v5  ;;  %v394_v34 = vmul.f32 %v3562_v11, %v3687_v10  ;;  %v396_v49 = vmul.f32 %v3564_v12, %v3685_v5  ;;  %v397_v45 = vmul.f32 %v3564_v12, %v3687_v10 }
  0x81   : > { %v1344_v24 = vsel %vm352_vm0, %v1342_v31, %v4844_v39  ;;  %v399_v43 = vadd.f32 %v391_v37, %v380_v4  ;;  %v411_v26 = vmul.f32 %v3566_v13, %v3989_v17  ;;  %v1356_v41 = vsel %vm365_vm1, %v1354_v55, %v4845_v44 }
  0x82   : > { %v1349_v38 = vadd.f32 %v1344_v24, %v1331_v20  ;;  %v401_v48 = vadd.f32 %v393_v59, %v382_v63  ;;  %v402_v0 = vadd.f32 %v394_v34, %v383_v3  ;;  %v404_v19 = vadd.f32 %v396_v49, %v385_v30 }
  0x83   : > { %v405_v36 = vadd.f32 %v397_v45, %v386_v56  ;;  %v413_v29 = vmul.f32 %v3578_v23, %v3989_v17  ;;  %v414_v31 = vmul.f32 %v3578_v23, %v3991_v47  ;;  %v416_v4 = vmul.f32 %v3585_v27, %v3989_v17 }
  0x84   : > { %v1361_v39 = vadd.f32 %v1356_v41, %v1349_v38  ;;  %v417_v20 = vmul.f32 %v3585_v27, %v3991_v47  ;;  %v419_v37 = vadd.f32 %v411_v26, %v399_v43  ;;  %v684_v63 = vmul.f32 %v3554_v6, %v3717_v52  ;;  %v4033_v38 = vld [vmem:[#allocation2 + $0xa8] sm:$0xff] }
  0x85   : > { %v421_v24 = vadd.f32 %v413_v29, %v401_v48  ;;  %v4011_v55 = vadd.f32 %v414_v31, %v402_v0  ;;  %v686_v3 = vmul.f32 %v3556_v7, %v3717_v52  ;;  %v424_v30 = vadd.f32 %v416_v4, %v404_v19  ;;  %v4042_v31 = vld [vmem:[#allocation2 + $0xb0] sm:$0xff] }
  0x86   : > { %2896 = vmatmul.f32.gmra.mxu3 %v1361_v39  ;;  %v4017_v56 = vadd.f32 %v417_v20, %v405_v36  ;;  %v687_v59 = vmul.f32 %v3556_v7, %v3719_v53  ;;  %v689_v34 = vmul.f32 %v3558_v8, %v3717_v52  ;;  %v690_v45 = vmul.f32 %v3558_v8, %v3719_v53 }
  0x87   : > { %v430_v49 = vrot.slane %v421_v24, 1  ;;  %v4848_v29 = vrot.slane %v4011_v55, 1  ;;  %v695_v43 = vmul.f32 %v3560_v9, %v3737_v22  ;;  %v442_v26 = vrot.slane %v424_v30, 2 }
  0x88   : > { %v443_v19 = vrot.slane %v4017_v56, 2  ;;  %v697_v36 = vmul.f32 %v3562_v11, %v3737_v22  ;;  %v698_v39 = vmul.f32 %v3562_v11, %v3746_v33  ;;  %v700_v41 = vmul.f32 %v3564_v12, %v3737_v22 }
  0x89   : > { %v432_v52 = vsel %vm352_vm0, %v430_v49, %v4848_v29  ;;  %v701_v48 = vmul.f32 %v3564_v12, %v3746_v33  ;;  %v703_v0 = vadd.f32 %v695_v43, %v684_v63  ;;  %v715_v49 = vmul.f32 %v3566_v13, %v4033_v38 }
  0x8a   : > { %v437_v4 = vadd.f32 %v432_v52, %v419_v37  ;;  %v444_v20 = vsel %vm365_vm1, %v442_v26, %v443_v19  ;;  %v705_v24 = vadd.f32 %v697_v36, %v686_v3  ;;  %v706_v30 = vadd.f32 %v698_v39, %v687_v59 }
  0x8b   : > { %v708_v44 = vadd.f32 %v700_v41, %v689_v34  ;;  %v709_v17 = vadd.f32 %v701_v48, %v690_v45  ;;  %v717_v29 = vmul.f32 %v3578_v23, %v4033_v38  ;;  %v718_v63 = vmul.f32 %v3578_v23, %v4042_v31  ;;  %v4067_v41 = vld [vmem:[#allocation2 + $0x118] sm:$0xff] }
  0x8c   : > { %v449_v22 = vadd.f32 %v444_v20, %v437_v4  ;;  %v720_v37 = vmul.f32 %v3585_v27, %v4033_v38  ;;  %v721_v43 = vmul.f32 %v3585_v27, %v4042_v31  ;;  %v723_v3 = vadd.f32 %v715_v49, %v703_v0 }
  0x8d   : > { %v725_v59 = vadd.f32 %v717_v29, %v705_v24  ;;  %v989_v34 = vmul.f32 %v3554_v6, %v3576_v21  ;;  %v992_v45 = vmul.f32 %v3556_v7, %v3761_v61  ;;  %v4061_v26 = vadd.f32 %v718_v63, %v706_v30 }
  0x8e   : > { %2824 = vmatmul.f32.gmra.mxu0 %v449_v22  ;;  %v728_v36 = vadd.f32 %v720_v37, %v708_v44  ;;  %v4063_v39 = vadd.f32 %v721_v43, %v709_v17  ;;  %v995_v52 = vmul.f32 %v3558_v8, %v3761_v61  ;;  %v1000_v29 = vmul.f32 %v3560_v9, %v3595_v32 }
  0x8f   : > { %v734_v48 = vrot.slane %v725_v59, 1  ;;  %v1003_v21 = vmul.f32 %v3562_v11, %v3771_v28  ;;  %v1006_v22 = vmul.f32 %v3564_v12, %v3771_v28  ;;  %v735_v0 = vrot.slane %v4061_v26, 1 }
  0x90   : > { %v746_v44 = vrot.slane %v728_v36, 2  ;;  %v747_v17 = vrot.slane %v4063_v39, 2  ;;  %v1020_v61 = vmul.f32 %v3566_v13, %v3901_v1  ;;  %v1008_v4 = vadd.f32 %v1000_v29, %v989_v34  ;;  %v4093_v36 = vld [vmem:[#allocation2 + $0x178] sm:$0xff] }
  0x91   : > { %v1011_v20 = vadd.f32 %v1003_v21, %v992_v45  ;;  %v1014_v24 = vadd.f32 %v1006_v22, %v995_v52  ;;  %v1023_v32 = vmul.f32 %v3578_v23, %v4067_v41  ;;  %v736_v30 = vsel %vm352_vm0, %v734_v48, %v735_v0 }
  0x92   : > { %v748_v49 = vsel %vm365_vm1, %v746_v44, %v747_v17  ;;  %v1026_v63 = vmul.f32 %v3585_v27, %v4067_v41  ;;  %v1293_v37 = vmul.f32 %v3554_v6, %v3619_v57  ;;  %v741_v43 = vadd.f32 %v736_v30, %v723_v3 }
  0x93   : > { %v1028_v59 = vadd.f32 %v1020_v61, %v1008_v4  ;;  %v1031_v34 = vadd.f32 %v1023_v32, %v1011_v20  ;;  %v1296_v45 = vmul.f32 %v3556_v7, %v3787_v40  ;;  %v1299_v48 = vmul.f32 %v3558_v8, %v3787_v40 }
  0x94   : > { %v1034_v52 = vadd.f32 %v1026_v63, %v1014_v24  ;;  %v1304_v29 = vmul.f32 %v3560_v9, %v3646_v25  ;;  %v1307_v21 = vmul.f32 %v3562_v11, %v3801_v15  ;;  %v753_v22 = vadd.f32 %v748_v49, %v741_v43 }
  0x95   : > { %v1041_v57 = vrot.slane %v1031_v34, 1  ;;  %v1310_v3 = vmul.f32 %v3564_v12, %v3801_v15  ;;  %v1324_v7 = vmul.f32 %v3566_v13, %v3947_v50  ;;  %v1327_v40 = vmul.f32 %v3578_v23, %v4093_v36 }
  0x96   : > { %v1053_v44 = vrot.slane %v1034_v52, 2  ;;  %v1312_v61 = vadd.f32 %v1304_v29, %v1293_v37  ;;  %v1315_v4 = vadd.f32 %v1307_v21, %v1296_v45  ;;  %2848 = vmatmul.f32.gmra.mxu1 %v753_v22  ;;  %v4869_v20 = vrot.slane %v3923_v58, 1  ;;  %v4117_v52 = vld [vmem:[#allocation2 + $0x58] sm:$0xff]  ;;  %v4119_v58 = vld [vmem:[#allocation5 + $0x1] ss:$0 sm:$0xff] }
  0x97   : > { %v1318_v32 = vadd.f32 %v1310_v3, %v1299_v48  ;;  %v1330_v30 = vmul.f32 %v3585_v27, %v4093_v36  ;;  %v381_v49 = vmul.f32 %v3554_v6, %v3667_v51  ;;  %v4870_v43 = vrot.slane %v3925_v54, 2 }
  0x98   : > { %v1042_v24 = vsel %vm352_vm0, %v4869_v20, %v1041_v57  ;;  %v1332_v34 = vadd.f32 %v1324_v7, %v1312_v61  ;;  %v1335_v45 = vadd.f32 %v1327_v40, %v1315_v4  ;;  %v384_v48 = vmul.f32 %v4119_v58, %v3822_v60 }
  0x99   : > { %v1046_v63 = vadd.f32 %v1042_v24, %v1028_v59  ;;  %v1054_v37 = vsel %vm365_vm1, %v4870_v43, %v1053_v44  ;;  %v1338_v29 = vadd.f32 %v1330_v30, %v1318_v32  ;;  %v387_v21 = vmul.f32 %v3558_v8, %v3822_v60  ;;  %v4147_v24 = vld [vmem:[#allocation2 + $0xb8] sm:$0xff] }
  0x9a   : > { %v392_v6 = vmul.f32 %v3560_v9, %v3687_v10  ;;  %v1345_v54 = vrot.slane %v1335_v45, 1  ;;  %v395_v59 = vmul.f32 %v3562_v11, %v3827_v2  ;;  %v398_v22 = vmul.f32 %v3564_v12, %v3827_v2 }
  0x9b   : > { %v1058_v51 = vadd.f32 %v1054_v37, %v1046_v63  ;;  %v1357_v57 = vrot.slane %v1338_v29, 2  ;;  %v412_v7 = vmul.f32 %v3566_v13, %v3991_v47  ;;  %v415_v44 = vmul.f32 %v3578_v23, %v4117_v52  ;;  %v4143_v13 = vld [vmem:[#allocation5] ss:$0 sm:$0xff]  ;;  %v4155_v63 = vld [vmem:[#allocation5 + $0x3] ss:$0 sm:$0xff] }
  0x9c   : > { %v400_v3 = vadd.f32 %v392_v6, %v381_v49  ;;  %v4871_v8 = vrot.slane %v3967_v62, 1  ;;  %v403_v60 = vadd.f32 %v395_v59, %v384_v48  ;;  %v406_v61 = vadd.f32 %v398_v22, %v387_v21  ;;  %v4151_v49 = vld [vmem:[#allocation5 + $0x2] ss:$0 sm:$0xff]  ;;  %v4159_v37 = vld [vmem:[#allocation5 + $0x4] ss:$0 sm:$0xff] }
  0x9d   : > { %2875 = vmatmul.f32.gmra.mxu2 %v1058_v51  ;;  %v418_v11 = vmul.f32 %v3585_v27, %v4117_v52  ;;  %v4872_v12 = vrot.slane %v3971_v46, 2  ;;  %v685_v23 = vmul.f32 %v4143_v13, %v3719_v53  ;;  %v688_v30 = vmul.f32 %v4119_v58, %v3848_v14  ;;  %v4167_v21 = vld [vmem:[#allocation5 + $0x6] ss:$0 sm:$0xff]  ;;  %v4171_v6 = vld [vmem:[#allocation5 + $0x7] ss:$0 sm:$0xff] }
  0x9e   : > { %v1346_v9 = vsel %vm352_vm0, %v4871_v8, %v1345_v54  ;;  %v420_v20 = vadd.f32 %v412_v7, %v400_v3  ;;  %v423_v62 = vadd.f32 %v415_v44, %v403_v60  ;;  %v691_v27 = vmul.f32 %v4151_v49, %v3848_v14 }
  0x9f   : > { %v1350_v4 = vadd.f32 %v1346_v9, %v1332_v34  ;;  %v1358_v40 = vsel %vm365_vm1, %v4872_v12, %v1357_v57  ;;  %v426_v32 = vadd.f32 %v418_v11, %v406_v61  ;;  %v696_v43 = vmul.f32 %v4155_v63, %v3746_v33  ;;  %v4163_v34 = vld [vmem:[#allocation5 + $0x5] ss:$0 sm:$0xff]  ;;  %v4175_v57 = vld [vmem:[#allocation5 + $0x8] ss:$0 sm:$0xff]  ;;  %v3238_v9 = vld [vmem:[#allocation2 + $0xf0] sm:$0xff] }
  0xa0   : > { %v699_v53 = vmul.f32 %v4159_v37, %v3855_v35  ;;  %v702_v45 = vmul.f32 %v4163_v34, %v3855_v35  ;;  %v433_v29 = vrot.slane %v423_v62, 1  ;;  %v716_v14 = vmul.f32 %v4167_v21, %v4042_v31 }
  0xa1   : > { %v1362_v46 = vadd.f32 %v1358_v40, %v1350_v4  ;;  %v445_v48 = vrot.slane %v426_v32, 2  ;;  %v719_v51 = vmul.f32 %v4171_v6, %v4147_v24  ;;  %v704_v54 = vadd.f32 %v696_v43, %v685_v23  ;;  %v4187_v23 = vld [vmem:[#allocation2 + $0xf8] sm:$0xff] }
  0xa2   : > { %v707_v59 = vadd.f32 %v699_v53, %v688_v30  ;;  %v710_v22 = vadd.f32 %v702_v45, %v691_v27  ;;  %v722_v3 = vmul.f32 %v4175_v57, %v4147_v24  ;;  %v4873_v7 = vrot.slane %v4011_v55, 1 }
  0xa3   : > { %2899 = vmatmul.f32.gmra.mxu3 %v1362_v46  ;;  %v446_v8 = vsel %vm365_vm1, %v443_v19, %v445_v48  ;;  %v1064_v60 = vmul.f32 %v3238_v9, %v4143_v13  ;;  %v1066_v61 = vmul.f32 %v3238_v9, %v4119_v58  ;;  %v724_v4 = vadd.f32 %v716_v14, %v704_v54 }
  0xa4   : > { %v434_v44 = vsel %vm352_vm0, %v4873_v7, %v433_v29  ;;  %v727_v12 = vadd.f32 %v719_v51, %v707_v59  ;;  %v730_v40 = vadd.f32 %v722_v3, %v710_v22  ;;  %v1067_v55 = vmul.f32 %v4187_v23, %v4119_v58  ;;  %v3240_v51 = vld [vmem:[#allocation2 + $0x120] sm:$0xff] }
  0xa5   : > { %v438_v11 = vadd.f32 %v434_v44, %v420_v20  ;;  %v1069_v62 = vmul.f32 %v3238_v9, %v4151_v49  ;;  %v1070_v56 = vmul.f32 %v4187_v23, %v4151_v49  ;;  %v1075_v19 = vmul.f32 %v4155_v63, %v3899_v42 }
  0xa6   : > { %v737_v30 = vrot.slane %v727_v12, 1  ;;  %v749_v27 = vrot.slane %v730_v40, 2  ;;  %v1077_v20 = vmul.f32 %v4159_v37, %v3899_v42  ;;  %v1078_v46 = vmul.f32 %v4159_v37, %v3901_v1 }
  0xa7   : > { %v450_v32 = vadd.f32 %v446_v8, %v438_v11  ;;  %v1080_v43 = vmul.f32 %v4163_v34, %v3899_v42  ;;  %v1081_v53 = vmul.f32 %v4163_v34, %v3901_v1  ;;  %v1083_v45 = vadd.f32 %v1075_v19, %v1064_v60  ;;  %v4212_v8 = vld [vmem:[#allocation2 + $0x128] sm:$0xff] }
  0xa8   : > { %v738_v29 = vsel %vm352_vm0, %v735_v0, %v737_v30  ;;  %v750_v48 = vsel %vm365_vm1, %v747_v17, %v749_v27  ;;  %v1085_v14 = vadd.f32 %v1077_v20, %v1066_v61  ;;  %v1095_v54 = vmul.f32 %v3240_v51, %v4167_v21 }
  0xa9   : > { %2827 = vmatmul.f32.gmra.mxu0 %v450_v32  ;;  %v742_v59 = vadd.f32 %v738_v29, %v724_v4  ;;  %v1086_v22 = vadd.f32 %v1078_v46, %v1067_v55  ;;  %v1088_v3 = vadd.f32 %v1080_v43, %v1069_v62  ;;  %v1089_v7 = vadd.f32 %v1081_v53, %v1070_v56  ;;  %v4245_v53 = vld [vmem:[#allocation2 + $0x180] sm:$0xff] }
  0xaa   : > { %v1097_v44 = vmul.f32 %v3240_v51, %v4171_v6  ;;  %v1098_v26 = vmul.f32 %v4212_v8, %v4171_v6  ;;  %v1100_v0 = vmul.f32 %v3240_v51, %v4175_v57  ;;  %v1101_v39 = vmul.f32 %v4212_v8, %v4175_v57 }
  0xab   : > { %v754_v17 = vadd.f32 %v750_v48, %v742_v59  ;;  %v1103_v9 = vadd.f32 %v1095_v54, %v1083_v45  ;;  %v1368_v60 = vmul.f32 %v4143_v13, %v3642_v18  ;;  %v1370_v61 = vmul.f32 %v4119_v58, %v3642_v18  ;;  %v4247_v45 = vld [vmem:[#allocation2 + $0x188] sm:$0xff] }
  0xac   : > { %v1105_v11 = vadd.f32 %v1097_v44, %v1085_v14  ;;  %v4223_v4 = vadd.f32 %v1098_v26, %v1086_v22  ;;  %v1108_v12 = vadd.f32 %v1100_v0, %v1088_v3  ;;  %v4225_v40 = vadd.f32 %v1101_v39, %v1089_v7 }
  0xad   : > { %2851 = vmatmul.f32.gmra.mxu1 %v754_v17  ;;  %v1371_v55 = vmul.f32 %v4119_v58, %v3646_v25  ;;  %v1373_v62 = vmul.f32 %v4151_v49, %v3642_v18  ;;  %v1374_v56 = vmul.f32 %v4151_v49, %v3646_v25  ;;  %v1379_v19 = vmul.f32 %v4155_v63, %v3945_v16 }
  0xae   : > { %v1114_v32 = vrot.slane %v1105_v11, 1  ;;  %v1115_v30 = vrot.slane %v4223_v4, 1  ;;  %v1126_v27 = vrot.slane %v1108_v12, 2  ;;  %v1127_v20 = vrot.slane %v4225_v40, 2 }
  0xaf   : > { %v1381_v46 = vmul.f32 %v4159_v37, %v3945_v16  ;;  %v1382_v43 = vmul.f32 %v4159_v37, %v3947_v50  ;;  %v1384_v18 = vmul.f32 %v4163_v34, %v3945_v16  ;;  %v1385_v25 = vmul.f32 %v4163_v34, %v3947_v50 }
  0xb0   : > { %v1116_v29 = vsel %vm352_vm0, %v1114_v32, %v1115_v30  ;;  %v1128_v48 = vsel %vm365_vm1, %v1126_v27, %v1127_v20  ;;  %v1387_v14 = vadd.f32 %v1379_v19, %v1368_v60  ;;  %v1399_v51 = vmul.f32 %v4167_v21, %v4245_v53 }
  0xb1   : > { %v1121_v54 = vadd.f32 %v1116_v29, %v1103_v9  ;;  %v1389_v59 = vadd.f32 %v1381_v46, %v1370_v61  ;;  %v1390_v22 = vadd.f32 %v1382_v43, %v1371_v55  ;;  %v1392_v3 = vadd.f32 %v1384_v18, %v1373_v62  ;;  %v4874_v18 = vld [vmem:[#allocation26_spill] sm:$0xff] }
  0xb2   : > { %v1393_v7 = vadd.f32 %v1385_v25, %v1374_v56  ;;  %v1401_v44 = vmul.f32 %v4171_v6, %v4245_v53  ;;  %v1402_v26 = vmul.f32 %v4171_v6, %v4247_v45  ;;  %v1404_v0 = vmul.f32 %v4175_v57, %v4245_v53 }
  0xb3   : > { %v1133_v39 = vadd.f32 %v1128_v48, %v1121_v54  ;;  %v1405_v17 = vmul.f32 %v4175_v57, %v4247_v45  ;;  %v1407_v60 = vadd.f32 %v1399_v51, %v1387_v14  ;;  %v456_v9 = vmul.f32 %v4143_v13, %v3685_v5 }
  0xb4   : > { %v1409_v61 = vadd.f32 %v1401_v44, %v1389_v59  ;;  %v4267_v11 = vadd.f32 %v1402_v26, %v1390_v22  ;;  %v1412_v12 = vadd.f32 %v1404_v0, %v1392_v3  ;;  %v458_v55 = vmul.f32 %v4119_v58, %v3685_v5  ;;  %v4875_v59 = vld [vmem:[#allocation21_spill] sm:$0xff] }
  0xb5   : > { %2878 = vmatmul.f32.gmra.mxu2 %v1133_v39  ;;  %v4271_v62 = vadd.f32 %v1405_v17, %v1393_v7  ;;  %v459_v56 = vmul.f32 %v4119_v58, %v3687_v10  ;;  %v461_v19 = vmul.f32 %v4151_v49, %v3685_v5  ;;  %v462_v32 = vmul.f32 %v4151_v49, %v3687_v10 }
  0xb6   : > { %v1418_v27 = vrot.slane %v1409_v61, 1  ;;  %v1419_v46 = vrot.slane %v4267_v11, 1  ;;  %v1430_v43 = vrot.slane %v1412_v12, 2  ;;  %v467_v25 = vmul.f32 %v4155_v63, %v4874_v18  ;;  %v4876_v61 = vld [vmem:[#allocation22_spill] sm:$0xff] }
  0xb7   : > { %v4852_v29 = vrot.slane %v4271_v62, 2  ;;  %v469_v48 = vmul.f32 %v4159_v37, %v4874_v18  ;;  %v470_v14 = vmul.f32 %v4159_v37, %v3991_v47  ;;  %v472_v5 = vmul.f32 %v4163_v34, %v4874_v18 }
  0xb8   : > { %v1420_v10 = vsel %vm352_vm0, %v1418_v27, %v1419_v46  ;;  %v473_v51 = vmul.f32 %v4163_v34, %v3991_v47  ;;  %v475_v54 = vadd.f32 %v467_v25, %v456_v9  ;;  %v487_v22 = vmul.f32 %v4167_v21, %v4875_v59 }
  0xb9   : > { %v1425_v3 = vadd.f32 %v1420_v10, %v1407_v60  ;;  %v1432_v7 = vsel %vm365_vm1, %v1430_v43, %v4852_v29  ;;  %v477_v44 = vadd.f32 %v469_v48, %v458_v55  ;;  %v478_v26 = vadd.f32 %v470_v14, %v459_v56  ;;  %v4877_v55 = vld [vmem:[#allocation23_spill] sm:$0xff] }
  0xba   : > { %v480_v0 = vadd.f32 %v472_v5, %v461_v19  ;;  %v481_v39 = vadd.f32 %v473_v51, %v462_v32  ;;  %v489_v17 = vmul.f32 %v4171_v6, %v4875_v59  ;;  %v490_v12 = vmul.f32 %v4171_v6, %v4876_v61 }
  0xbb   : > { %v1437_v27 = vadd.f32 %v1432_v7, %v1425_v3  ;;  %v492_v9 = vmul.f32 %v4175_v57, %v4875_v59  ;;  %v493_v60 = vmul.f32 %v4175_v57, %v4876_v61  ;;  %v495_v25 = vadd.f32 %v487_v22, %v475_v54 }
  0xbc   : > { %v497_v10 = vadd.f32 %v489_v17, %v477_v44  ;;  %v4307_v43 = vadd.f32 %v490_v12, %v478_v26  ;;  %v760_v56 = vmul.f32 %v4143_v13, %v4877_v55  ;;  %v762_v19 = vmul.f32 %v4119_v58, %v4877_v55  ;;  %v4338_v12 = vld [vmem:[#allocation2 + $0xc8] sm:$0xff] }
  0xbd   : > { %2902 = vmatmul.f32.gmra.mxu3 %v1437_v27  ;;  %v500_v32 = vadd.f32 %v492_v9, %v480_v0  ;;  %v4313_v48 = vadd.f32 %v493_v60, %v481_v39  ;;  %v763_v14 = vmul.f32 %v4119_v58, %v3746_v33  ;;  %v765_v5 = vmul.f32 %v4151_v49, %v4877_v55  ;;  %v4329_v0 = vld [vmem:[#allocation2 + $0xc0] sm:$0xff] }
  0xbe   : > { %v506_v51 = vrot.slane %v497_v10, 1  ;;  %v4851_v54 = vrot.slane %v4307_v43, 1  ;;  %v766_v59 = vmul.f32 %v4151_v49, %v3746_v33  ;;  %v771_v22 = vmul.f32 %v4155_v63, %v4033_v38 }
  0xbf   : > { %v518_v3 = vrot.slane %v500_v32, 2  ;;  %v519_v7 = vrot.slane %v4313_v48, 2  ;;  %v773_v44 = vmul.f32 %v4159_v37, %v4033_v38  ;;  %v774_v26 = vmul.f32 %v4159_v37, %v4042_v31 }
  0xc0   : > { %v508_v39 = vsel %vm352_vm0, %v506_v51, %v4851_v54  ;;  %v776_v33 = vmul.f32 %v4163_v34, %v4033_v38  ;;  %v777_v17 = vmul.f32 %v4163_v34, %v4042_v31  ;;  %v779_v61 = vadd.f32 %v771_v22, %v760_v56 }
  0xc1   : > { %v513_v27 = vadd.f32 %v508_v39, %v495_v25  ;;  %v520_v9 = vsel %vm365_vm1, %v518_v3, %v519_v7  ;;  %v781_v60 = vadd.f32 %v773_v44, %v762_v19  ;;  %v782_v10 = vadd.f32 %v774_v26, %v763_v14 }
  0xc2   : > { %v784_v55 = vadd.f32 %v776_v33, %v765_v5  ;;  %v785_v32 = vadd.f32 %v777_v17, %v766_v59  ;;  %v791_v51 = vmul.f32 %v4167_v21, %v4329_v0  ;;  %v793_v54 = vmul.f32 %v4171_v6, %v4329_v0 }
  0xc3   : > { %v525_v29 = vadd.f32 %v520_v9, %v513_v27  ;;  %v794_v56 = vmul.f32 %v4171_v6, %v4338_v12  ;;  %v796_v25 = vmul.f32 %v4175_v57, %v4329_v0  ;;  %v797_v22 = vmul.f32 %v4175_v57, %v4338_v12 }
  0xc4   : > { %v799_v19 = vadd.f32 %v791_v51, %v779_v61  ;;  %v801_v14 = vadd.f32 %v793_v54, %v781_v60  ;;  %v1065_v5 = vmul.f32 %v4187_v23, %v4143_v13  ;;  %v1068_v59 = vmul.f32 %v4119_v58, %v3771_v28 }
  0xc5   : > { %2830 = vmatmul.f32.gmra.mxu0 %v525_v29  ;;  %v4357_v3 = vadd.f32 %v794_v56, %v782_v10  ;;  %v804_v44 = vadd.f32 %v796_v25, %v784_v55  ;;  %v4359_v26 = vadd.f32 %v797_v22, %v785_v32  ;;  %v1071_v39 = vmul.f32 %v4151_v49, %v3771_v28  ;;  %v4878_v55 = vld [vmem:[#allocation24_spill] sm:$0xff]  ;;  %v3242_v22 = vld [vmem:[#allocation2 + $0x158] sm:$0xff] }
  0xc6   : > { %v810_v33 = vrot.slane %v801_v14, 1  ;;  %v1076_v17 = vmul.f32 %v4155_v63, %v3901_v1  ;;  %v1079_v54 = vmul.f32 %v4159_v37, %v4067_v41  ;;  %v1082_v23 = vmul.f32 %v4163_v34, %v4067_v41 }
  0xc7   : > { %v811_v29 = vrot.slane %v4357_v3, 1  ;;  %v822_v61 = vrot.slane %v804_v44, 2  ;;  %v823_v27 = vrot.slane %v4359_v26, 2  ;;  %v1096_v9 = vmul.f32 %v4212_v8, %v4167_v21 }
  0xc8   : > { %v1084_v60 = vadd.f32 %v1076_v17, %v1065_v5  ;;  %v1087_v28 = vadd.f32 %v1079_v54, %v1068_v59  ;;  %v1090_v10 = vadd.f32 %v1082_v23, %v1071_v39  ;;  %v1099_v32 = vmul.f32 %v4171_v6, %v4878_v55  ;;  %v4386_v39 = vld [vmem:[#allocation2 + $0x190] sm:$0xff] }
  0xc9   : > { %v812_v51 = vsel %vm352_vm0, %v810_v33, %v811_v29  ;;  %v824_v56 = vsel %vm365_vm1, %v822_v61, %v823_v27  ;;  %v1102_v25 = vmul.f32 %v4175_v57, %v4878_v55  ;;  %v1369_v8 = vmul.f32 %v3242_v22, %v4143_v13 }
  0xca   : > { %v817_v14 = vadd.f32 %v812_v51, %v799_v19  ;;  %v1104_v5 = vadd.f32 %v1096_v9, %v1084_v60  ;;  %v1107_v59 = vadd.f32 %v1099_v32, %v1087_v28  ;;  %v1372_v44 = vmul.f32 %v4119_v58, %v3801_v15 }
  0xcb   : > { %v1110_v17 = vadd.f32 %v1102_v25, %v1090_v10  ;;  %v1375_v33 = vmul.f32 %v4151_v49, %v3801_v15  ;;  %v1380_v54 = vmul.f32 %v4155_v63, %v3947_v50  ;;  %v1383_v23 = vmul.f32 %v4159_v37, %v4093_v36  ;;  %v3243_v25 = vld [vmem:[#allocation2 + $0x38] sm:$0xff] }
  0xcc   : > { %v829_v61 = vadd.f32 %v824_v56, %v817_v14  ;;  %v1117_v55 = vrot.slane %v1107_v59, 1  ;;  %v1386_v19 = vmul.f32 %v4163_v34, %v4093_v36  ;;  %v1400_v9 = vmul.f32 %v4167_v21, %v4247_v45 }
  0xcd   : > { %v1129_v60 = vrot.slane %v1110_v17, 2  ;;  %v1388_v28 = vadd.f32 %v1380_v54, %v1369_v8  ;;  %v1391_v10 = vadd.f32 %v1383_v23, %v1372_v44  ;;  %v1403_v15 = vmul.f32 %v4171_v6, %v4386_v39 }
  0xce   : > { %2854 = vmatmul.f32.gmra.mxu1 %v829_v61  ;;  %v1118_v32 = vsel %vm352_vm0, %v1115_v30, %v1117_v55  ;;  %v1394_v51 = vadd.f32 %v1386_v19, %v1375_v33  ;;  %v1406_v56 = vmul.f32 %v4175_v57, %v4386_v39  ;;  %v457_v22 = vmul.f32 %v3243_v25, %v4143_v13  ;;  %v3244_v55 = vld [vmem:[#allocation2 + $0x68] sm:$0xff] }
  0xcf   : > { %v1122_v14 = vadd.f32 %v1118_v32, %v1104_v5  ;;  %v1130_v8 = vsel %vm365_vm1, %v1127_v20, %v1129_v60  ;;  %v1408_v59 = vadd.f32 %v1400_v9, %v1388_v28  ;;  %v1411_v44 = vadd.f32 %v1403_v15, %v1391_v10  ;;  %v4879_v9 = vld [vmem:[#allocation25_spill] sm:$0xff] }
  0xd0   : > { %v1414_v17 = vadd.f32 %v1406_v56, %v1394_v51  ;;  %v460_v4 = vmul.f32 %v4119_v58, %v3827_v2  ;;  %v463_v30 = vmul.f32 %v4151_v49, %v3827_v2  ;;  %v468_v33 = vmul.f32 %v4155_v63, %v3991_v47 }
  0xd1   : > { %v1134_v54 = vadd.f32 %v1130_v8, %v1122_v14  ;;  %v1421_v23 = vrot.slane %v1411_v44, 1  ;;  %v471_v5 = vmul.f32 %v4159_v37, %v4117_v52  ;;  %v474_v40 = vmul.f32 %v4163_v34, %v4117_v52  ;;  %v4431_v8 = vld [vmem:[#allocation2 + $0xd0] sm:$0xff] }
  0xd2   : > { %v1433_v20 = vrot.slane %v1414_v17, 2  ;;  %v476_v61 = vadd.f32 %v468_v33, %v457_v22  ;;  %v488_v19 = vmul.f32 %v3244_v55, %v4167_v21  ;;  %v491_v60 = vmul.f32 %v4171_v6, %v4879_v9  ;;  %v3245_v22 = vld [vmem:[#allocation2 + $0x98] sm:$0xff] }
  0xd3   : > { %2881 = vmatmul.f32.gmra.mxu2 %v1134_v54  ;;  %v1422_v2 = vsel %vm352_vm0, %v1419_v46, %v1421_v23  ;;  %v479_v28 = vadd.f32 %v471_v5, %v460_v4  ;;  %v482_v10 = vadd.f32 %v474_v40, %v463_v30  ;;  %v494_v15 = vmul.f32 %v4175_v57, %v4879_v9 }
  0xd4   : > { %v1426_v32 = vadd.f32 %v1422_v2, %v1408_v59  ;;  %v4880_v51 = vrot.slane %v4271_v62, 2  ;;  %v496_v25 = vadd.f32 %v488_v19, %v476_v61  ;;  %v761_v14 = vmul.f32 %v3245_v22, %v4143_v13 }
  0xd5   : > { %v499_v44 = vadd.f32 %v491_v60, %v479_v28  ;;  %v502_v11 = vadd.f32 %v494_v15, %v482_v10  ;;  %v764_v46 = vmul.f32 %v4119_v58, %v3855_v35  ;;  %v767_v17 = vmul.f32 %v4151_v49, %v3855_v35  ;;  %v1148_v28 = vld [vmem:[#allocation2 + $0x120] sm:$0xff] }
  0xd6   : > { %v1434_v56 = vsel %vm365_vm1, %v4880_v51, %v1433_v20  ;;  %v772_v62 = vmul.f32 %v4155_v63, %v4042_v31  ;;  %v775_v59 = vmul.f32 %v4159_v37, %v4147_v24  ;;  %v778_v30 = vmul.f32 %v4163_v34, %v4147_v24 }
  0xd7   : > { %v1438_v4 = vadd.f32 %v1434_v56, %v1426_v32  ;;  %v509_v33 = vrot.slane %v499_v44, 1  ;;  %v521_v54 = vrot.slane %v502_v11, 2  ;;  %v792_v23 = vmul.f32 %v4167_v21, %v4338_v12  ;;  %v4459_v56 = vld [vmem:[#allocation2 + $0x128] sm:$0xff] }
  0xd8   : > { %v795_v5 = vmul.f32 %v4171_v6, %v4431_v8  ;;  %v780_v35 = vadd.f32 %v772_v62, %v761_v14  ;;  %v783_v40 = vadd.f32 %v775_v59, %v764_v46  ;;  %v786_v20 = vadd.f32 %v778_v30, %v767_v17  ;;  %v4474_v59 = vld [vmem:[#allocation2 + $0x140] sm:$0xff] }
  0xd9   : > { %2905 = vmatmul.f32.gmra.mxu3 %v1438_v4  ;;  %v798_v61 = vmul.f32 %v4175_v57, %v4431_v8  ;;  %v4881_v55 = vrot.slane %v4307_v43, 1  ;;  %v522_v9 = vsel %vm365_vm1, %v519_v7, %v521_v54  ;;  %v1140_v60 = vmul.f32 %v4143_v13, %v3899_v42 }
  0xda   : > { %v1142_v2 = vmul.f32 %v4119_v58, %v3899_v42  ;;  %v800_v15 = vadd.f32 %v792_v23, %v780_v35  ;;  %v803_v32 = vadd.f32 %v795_v5, %v783_v40  ;;  %v1143_v43 = vmul.f32 %v4119_v58, %v3901_v1 }
  0xdb   : > { %v510_v19 = vsel %vm352_vm0, %v4881_v55, %v509_v33  ;;  %v806_v51 = vadd.f32 %v798_v61, %v786_v20  ;;  %v1145_v48 = vmul.f32 %v4151_v49, %v3899_v42  ;;  %v1146_v7 = vmul.f32 %v4151_v49, %v3901_v1  ;;  %v1168_v42 = vld [vmem:[#allocation2 + $0x138] sm:$0xff] }
  0xdc   : > { %v514_v10 = vadd.f32 %v510_v19, %v496_v25  ;;  %v1151_v22 = vmul.f32 %v4155_v63, %v1148_v28  ;;  %v813_v44 = vrot.slane %v803_v32, 1  ;;  %v1153_v25 = vmul.f32 %v4159_v37, %v1148_v28 }
  0xdd   : > { %v825_v11 = vrot.slane %v806_v51, 2  ;;  %v1154_v46 = vmul.f32 %v4159_v37, %v4459_v56  ;;  %v1156_v17 = vmul.f32 %v4163_v34, %v1148_v28  ;;  %v1157_v4 = vmul.f32 %v4163_v34, %v4459_v56 }
  0xde   : > { %v526_v14 = vadd.f32 %v522_v9, %v514_v10  ;;  %v1159_v62 = vadd.f32 %v1151_v22, %v1140_v60  ;;  %v814_v1 = vsel %vm352_vm0, %v811_v29, %v813_v44  ;;  %v1161_v33 = vadd.f32 %v1153_v25, %v1142_v2  ;;  %v4515_v25 = vld [vmem:[#allocation2 + $0x1a0] sm:$0xff] }
  0xdf   : > { %v826_v30 = vsel %vm365_vm1, %v823_v27, %v825_v11  ;;  %v1171_v54 = vmul.f32 %v4167_v21, %v1168_v42  ;;  %v818_v23 = vadd.f32 %v814_v1, %v800_v15  ;;  %v1162_v5 = vadd.f32 %v1154_v46, %v1143_v43  ;;  %v1472_v11 = vld [vmem:[#allocation2 + $0x198] sm:$0xff] }
  0xe0   : > { %2833 = vmatmul.f32.gmra.mxu0 %v526_v14  ;;  %v1164_v35 = vadd.f32 %v1156_v17, %v1145_v48  ;;  %v1165_v40 = vadd.f32 %v1157_v4, %v1146_v7  ;;  %v1173_v20 = vmul.f32 %v4171_v6, %v1168_v42  ;;  %v1174_v61 = vmul.f32 %v4171_v6, %v4474_v59 }
  0xe1   : > { %v1176_v3 = vmul.f32 %v4175_v57, %v1168_v42  ;;  %v1177_v29 = vmul.f32 %v4175_v57, %v4474_v59  ;;  %v830_v26 = vadd.f32 %v826_v30, %v818_v23  ;;  %v1179_v55 = vadd.f32 %v1171_v54, %v1159_v62 }
  0xe2   : > { %v1444_v27 = vmul.f32 %v4143_v13, %v3945_v16  ;;  %v1446_v19 = vmul.f32 %v4119_v58, %v3945_v16  ;;  %v1181_v9 = vadd.f32 %v1173_v20, %v1161_v33  ;;  %v4493_v60 = vadd.f32 %v1174_v61, %v1162_v5 }
  0xe3   : > { %v1184_v2 = vadd.f32 %v1176_v3, %v1164_v35  ;;  %v4495_v28 = vadd.f32 %v1177_v29, %v1165_v40  ;;  %2857 = vmatmul.f32.gmra.mxu1 %v830_v26  ;;  %v1447_v10 = vmul.f32 %v4119_v58, %v3947_v50  ;;  %v1449_v15 = vmul.f32 %v4151_v49, %v3945_v16 }
  0xe4   : > { %v1450_v32 = vmul.f32 %v4151_v49, %v3947_v50  ;;  %v1455_v51 = vmul.f32 %v4155_v63, %v4245_v53  ;;  %v1190_v43 = vrot.slane %v1181_v9, 1  ;;  %v1191_v48 = vrot.slane %v4493_v60, 1 }
  0xe5   : > { %v1202_v7 = vrot.slane %v1184_v2, 2  ;;  %v1203_v22 = vrot.slane %v4495_v28, 2  ;;  %v1457_v14 = vmul.f32 %v4159_v37, %v4245_v53  ;;  %v1458_v44 = vmul.f32 %v4159_v37, %v4247_v45 }
  0xe6   : > { %v1460_v16 = vmul.f32 %v4163_v34, %v4245_v53  ;;  %v1461_v50 = vmul.f32 %v4163_v34, %v4247_v45  ;;  %v1192_v46 = vsel %vm352_vm0, %v1190_v43, %v1191_v48  ;;  %v1463_v4 = vadd.f32 %v1455_v51, %v1444_v27  ;;  %v540_v27 = vld [vmem:[#allocation2 + $0x60] sm:$0xff] }
  0xe7   : > { %v1204_v17 = vsel %vm365_vm1, %v1202_v7, %v1203_v22  ;;  %v1475_v62 = vmul.f32 %v4167_v21, %v1472_v11  ;;  %v1197_v42 = vadd.f32 %v1192_v46, %v1179_v55  ;;  %v1465_v1 = vadd.f32 %v1457_v14, %v1446_v19  ;;  %v4536_v19 = vld [vmem:[#allocation2 + $0x68] sm:$0xff] }
  0xe8   : > { %v1466_v53 = vadd.f32 %v1458_v44, %v1447_v10  ;;  %v1468_v30 = vadd.f32 %v1460_v16, %v1449_v15  ;;  %v1469_v33 = vadd.f32 %v1461_v50, %v1450_v32  ;;  %v1477_v54 = vmul.f32 %v4171_v6, %v1472_v11 }
  0xe9   : > { %v1478_v23 = vmul.f32 %v4171_v6, %v4515_v25  ;;  %v1480_v5 = vmul.f32 %v4175_v57, %v1472_v11  ;;  %v1209_v35 = vadd.f32 %v1204_v17, %v1197_v42  ;;  %v1481_v40 = vmul.f32 %v4175_v57, %v4515_v25  ;;  %v560_v11 = vld [vmem:[#allocation2 + $0x78] sm:$0xff] }
  0xea   : > { %v1483_v20 = vadd.f32 %v1475_v62, %v1463_v4  ;;  %v532_v61 = vmul.f32 %v4143_v13, %v4874_v18  ;;  %v1485_v3 = vadd.f32 %v1477_v54, %v1465_v1  ;;  %v534_v55 = vmul.f32 %v4119_v58, %v4874_v18 }
  0xeb   : > { %v4532_v29 = vadd.f32 %v1478_v23, %v1466_v53  ;;  %v1488_v26 = vadd.f32 %v1480_v5, %v1468_v30  ;;  %2884 = vmatmul.f32.gmra.mxu2 %v1209_v35  ;;  %v4538_v9 = vadd.f32 %v1481_v40, %v1469_v33  ;;  %v535_v2 = vmul.f32 %v4119_v58, %v3991_v47 }
  0xec   : > { %v537_v10 = vmul.f32 %v4151_v49, %v4874_v18  ;;  %v538_v15 = vmul.f32 %v4151_v49, %v3991_v47  ;;  %v1494_v32 = vrot.slane %v1485_v3, 1  ;;  %v543_v7 = vmul.f32 %v4155_v63, %v540_v27  ;;  %v4553_v18 = vld [vmem:[#allocation2 + $0x80] sm:$0xff] }
  0xed   : > { %v1495_v51 = vrot.slane %v4532_v29, 1  ;;  %v1506_v43 = vrot.slane %v1488_v26, 2  ;;  %v1507_v14 = vrot.slane %v4538_v9, 2  ;;  %v545_v44 = vmul.f32 %v4159_v37, %v540_v27  ;;  %v4692_v9 = vld [vmem:[%s4826_s3] ss:$0 sm:$0xff] }
  0xee   : > { %v546_v16 = vmul.f32 %v4159_v37, %v4536_v19  ;;  %v548_v50 = vmul.f32 %v4163_v34, %v540_v27  ;;  %v549_v46 = vmul.f32 %v4163_v34, %v4536_v19  ;;  %v551_v17 = vadd.f32 %v543_v7, %v532_v61 }
  0xef   : > { %v1496_v47 = vsel %vm352_vm0, %v1494_v32, %v1495_v51  ;;  %v563_v4 = vmul.f32 %v4167_v21, %v560_v11  ;;  %v1508_v42 = vsel %vm365_vm1, %v1506_v43, %v1507_v14  ;;  %v553_v1 = vadd.f32 %v545_v44, %v534_v55 }
  0xf0   : > { %v1501_v62 = vadd.f32 %v1496_v47, %v1483_v20  ;;  %v554_v53 = vadd.f32 %v546_v16, %v535_v2  ;;  %v556_v30 = vadd.f32 %v548_v50, %v537_v10  ;;  %v557_v33 = vadd.f32 %v549_v46, %v538_v15  ;;  %v864_v46 = vld [vmem:[#allocation2 + $0xd8] sm:$0xff] }
  0xf1   : > { %v565_v54 = vmul.f32 %v4171_v6, %v560_v11  ;;  %v566_v23 = vmul.f32 %v4171_v6, %v4553_v18  ;;  %v568_v35 = vmul.f32 %v4175_v57, %v560_v11  ;;  %v569_v40 = vmul.f32 %v4175_v57, %v4553_v18 }
  0xf2   : > { %v1513_v5 = vadd.f32 %v1508_v42, %v1501_v62  ;;  %v571_v20 = vadd.f32 %v563_v4, %v551_v17  ;;  %v836_v26 = vmul.f32 %v4143_v13, %v4033_v38  ;;  %v838_v55 = vmul.f32 %v4119_v58, %v4033_v38  ;;  %v4599_v62 = vld [vmem:[#allocation2 + $0xe0] sm:$0xff] }
  0xf3   : > { %v573_v61 = vadd.f32 %v565_v54, %v553_v1  ;;  %v4570_v3 = vadd.f32 %v566_v23, %v554_v53  ;;  %v576_v27 = vadd.f32 %v568_v35, %v556_v30  ;;  %v4576_v2 = vadd.f32 %v569_v40, %v557_v33 }
  0xf4   : > { %2908 = vmatmul.f32.gmra.mxu3 %v1513_v5  ;;  %v839_v10 = vmul.f32 %v4119_v58, %v4042_v31  ;;  %v841_v15 = vmul.f32 %v4151_v49, %v4033_v38  ;;  %v842_v7 = vmul.f32 %v4151_v49, %v4042_v31  ;;  %v847_v44 = vmul.f32 %v4155_v63, %v4329_v0 }
  0xf5   : > { %v582_v32 = vrot.slane %v573_v61, 1  ;;  %v583_v43 = vrot.slane %v4570_v3, 1  ;;  %v594_v16 = vrot.slane %v576_v27, 2  ;;  %v595_v50 = vrot.slane %v4576_v2, 2  ;;  %v1150_v61 = vld [vmem:[#allocation2 + $0x130] sm:$0xff] }
  0xf6   : > { %v849_v11 = vmul.f32 %v4159_v37, %v4329_v0  ;;  %v850_v47 = vmul.f32 %v4159_v37, %v4338_v12  ;;  %v852_v31 = vmul.f32 %v4163_v34, %v4329_v0  ;;  %v853_v17 = vmul.f32 %v4163_v34, %v4338_v12 }
  0xf7   : > { %v584_v38 = vsel %vm352_vm0, %v582_v32, %v583_v43  ;;  %v855_v4 = vadd.f32 %v847_v44, %v836_v26  ;;  %v596_v1 = vsel %vm365_vm1, %v594_v16, %v595_v50  ;;  %v867_v23 = vmul.f32 %v4167_v21, %v864_v46 }
  0xf8   : > { %v589_v42 = vadd.f32 %v584_v38, %v571_v20  ;;  %v857_v53 = vadd.f32 %v849_v11, %v838_v55  ;;  %v858_v30 = vadd.f32 %v850_v47, %v839_v10  ;;  %v860_v33 = vadd.f32 %v852_v31, %v841_v15  ;;  %v3246_v55 = vld [vmem:[#allocation2 + $0x110] sm:$0xff]  ;;  %v1170_v11 = vld [vmem:[#allocation2 + $0x148] sm:$0xff] }
  0xf9   : > { %v861_v54 = vadd.f32 %v853_v17, %v842_v7  ;;  %v869_v5 = vmul.f32 %v4171_v6, %v864_v46  ;;  %v870_v35 = vmul.f32 %v4171_v6, %v4599_v62  ;;  %v872_v40 = vmul.f32 %v4175_v57, %v864_v46 }
  0xfa   : > { %v601_v0 = vadd.f32 %v596_v1, %v589_v42  ;;  %v873_v20 = vmul.f32 %v4175_v57, %v4599_v62  ;;  %v875_v26 = vadd.f32 %v867_v23, %v855_v4  ;;  %v1141_v10 = vmul.f32 %v3246_v55, %v4143_v13  ;;  %v4641_v55 = vpop.f32.mrf.mxu2 }
  0xfb   : > { %v877_v27 = vadd.f32 %v869_v5, %v857_v53  ;;  %v1144_v15 = vmul.f32 %v4119_v58, %v4067_v41  ;;  %v4614_v32 = vadd.f32 %v870_v35, %v858_v30  ;;  %v880_v7 = vadd.f32 %v872_v40, %v860_v33 }
  0xfc   : > { %2836 = vmatmul.f32.gmra.mxu0 %v601_v0  ;;  %v4616_v44 = vadd.f32 %v873_v20, %v861_v54  ;;  %v1147_v16 = vmul.f32 %v4151_v49, %v4067_v41  ;;  %v1152_v46 = vmul.f32 %v4155_v63, %v4459_v56  ;;  %v1155_v38 = vmul.f32 %v4159_v37, %v1150_v61  ;;  %v4629_v54 = vpop.f32.mrf.mxu0  ;;  %v3247_v0 = vld [vmem:[#allocation2 + $0x170] sm:$0xff] }
  0xfd   : > { %v886_v47 = vrot.slane %v877_v27, 1  ;;  %v1158_v31 = vmul.f32 %v4163_v34, %v1150_v61  ;;  %v887_v17 = vrot.slane %v4614_v32, 1  ;;  %v898_v4 = vrot.slane %v880_v7, 2  ;;  %v1474_v27 = vld [vmem:[#allocation2 + $0x1a8] sm:$0xff] }
  0xfe   : > { %v899_v42 = vrot.slane %v4616_v44, 2  ;;  %v1172_v1 = vmul.f32 %v4167_v21, %v4474_v59  ;;  %v1160_v53 = vadd.f32 %v1152_v46, %v1141_v10  ;;  %v1163_v30 = vadd.f32 %v1155_v38, %v1144_v15 }
  0xff   : > { %v1166_v41 = vadd.f32 %v1158_v31, %v1147_v16  ;;  %v1175_v33 = vmul.f32 %v4171_v6, %v1170_v11  ;;  %v888_v56 = vsel %vm352_vm0, %v886_v47, %v887_v17  ;;  %v1178_v5 = vmul.f32 %v4175_v57, %v1170_v11  ;;  %v4649_v11 = vpop.f32.mrf.mxu1 }
 0x100   : > { %v900_v23 = vsel %vm365_vm1, %v898_v4, %v899_v42  ;;  %v1445_v59 = vmul.f32 %v3247_v0, %v4143_v13  ;;  %v893_v35 = vadd.f32 %v888_v56, %v875_v26  ;;  %v1180_v40 = vadd.f32 %v1172_v1, %v1160_v53  ;;  %v4651_v26 = vpop.f32.mrf.mxu3 }
 0x101   : > { %v1183_v20 = vadd.f32 %v1175_v33, %v1163_v30  ;;  %v1448_v61 = vmul.f32 %v4119_v58, %v4093_v36  ;;  %v1186_v10 = vadd.f32 %v1178_v5, %v1166_v41  ;;  %v1451_v15 = vmul.f32 %v4151_v49, %v4093_v36  ;;  %v3248_v33 = vld [vmem:[#allocation2 + $0x50] sm:$0xff] }
 0x102   : > { %v1456_v7 = vmul.f32 %v4155_v63, %v4247_v45  ;;  %v1459_v16 = vmul.f32 %v4159_v37, %v4386_v39  ;;  %v905_v47 = vadd.f32 %v900_v23, %v893_v35  ;;  %v1462_v38 = vmul.f32 %v4163_v34, %v4386_v39  ;;  %v542_v39 = vld [vmem:[#allocation2 + $0x70] sm:$0xff] }
 0x103   : > { %v1193_v46 = vrot.slane %v1183_v20, 1  ;;  %v1476_v31 = vmul.f32 %v4167_v21, %v4515_v25  ;;  %v1205_v4 = vrot.slane %v1186_v10, 2  ;;  %v1479_v45 = vmul.f32 %v4171_v6, %v1474_v27 }
 0x104   : > { %v1464_v36 = vadd.f32 %v1456_v7, %v1445_v59  ;;  %v1467_v1 = vadd.f32 %v1459_v16, %v1448_v61  ;;  %2860 = vmatmul.f32.gmra.mxu1 %v905_v47  ;;  %v1470_v30 = vadd.f32 %v1462_v38, %v1451_v15  ;;  %v1482_v41 = vmul.f32 %v4175_v57, %v1474_v27  ;;  %v562_v59 = vld [vmem:[#allocation2 + $0x88] sm:$0xff]  ;;  %v2822_v16 = vpop.f32.mrf.mxu0 }
 0x105   : > { %v1194_v53 = vsel %vm352_vm0, %v1191_v48, %v1193_v46  ;;  %v533_v56 = vmul.f32 %v3248_v33, %v4143_v13  ;;  %v1206_v25 = vsel %vm365_vm1, %v1203_v22, %v1205_v4  ;;  %v536_v60 = vmul.f32 %v4119_v58, %v4117_v52 }
 0x106   : > { %v1198_v23 = vadd.f32 %v1194_v53, %v1180_v40  ;;  %v1484_v5 = vadd.f32 %v1476_v31, %v1464_v36  ;;  %v1487_v0 = vadd.f32 %v1479_v45, %v1467_v1  ;;  %v1490_v35 = vadd.f32 %v1482_v41, %v1470_v30  ;;  %v3249_v36 = vld [vmem:[#allocation2 + $0xb0] sm:$0xff]  ;;  %v866_v1 = vld [vmem:[#allocation2 + $0xe8] sm:$0xff]  ;;  %v2870_v45 = vpop.f32.mrf.mxu2 }
 0x107   : > { %v539_v48 = vmul.f32 %v4151_v49, %v4117_v52  ;;  %v544_v20 = vmul.f32 %v4155_v63, %v4536_v19  ;;  %v547_v40 = vmul.f32 %v4159_v37, %v542_v39  ;;  %v550_v28 = vmul.f32 %v4163_v34, %v542_v39 }
 0x108   : > { %v1210_v61 = vadd.f32 %v1206_v25, %v1198_v23  ;;  %v1497_v27 = vrot.slane %v1487_v0, 1  ;;  %v1509_v22 = vrot.slane %v1490_v35, 2  ;;  %v564_v15 = vmul.f32 %v4167_v21, %v4553_v18  ;;  %v2894_v41 = vpop.f32.mrf.mxu3 }
 0x109   : > { %v552_v10 = vadd.f32 %v544_v20, %v533_v56  ;;  %v567_v7 = vmul.f32 %v4171_v6, %v562_v59  ;;  %v555_v19 = vadd.f32 %v547_v40, %v536_v60  ;;  %v558_v47 = vadd.f32 %v550_v28, %v539_v48 }
 0x10a   : > { %2887 = vmatmul.f32.gmra.mxu2 %v1210_v61  ;;  %v1498_v52 = vsel %vm352_vm0, %v1495_v51, %v1497_v27  ;;  %v570_v46 = vmul.f32 %v4175_v57, %v562_v59  ;;  %v1510_v31 = vsel %vm365_vm1, %v1507_v14, %v1509_v22  ;;  %v837_v18 = vmul.f32 %v3249_v36, %v4143_v13  ;;  %v2846_v14 = vpop.f32.mrf.mxu1 }
 0x10b   : > { %v1502_v38 = vadd.f32 %v1498_v52, %v1484_v5  ;;  %v572_v4 = vadd.f32 %v564_v15, %v552_v10  ;;  %v575_v53 = vadd.f32 %v567_v7, %v555_v19  ;;  %v840_v29 = vmul.f32 %v4119_v58, %v4147_v24 }
 0x10c   : > { %v578_v30 = vadd.f32 %v570_v46, %v558_v47  ;;  %v843_v51 = vmul.f32 %v4151_v49, %v4147_v24  ;;  %v848_v13 = vmul.f32 %v4155_v63, %v4338_v12  ;;  %v851_v56 = vmul.f32 %v4159_v37, %v4431_v8  ;;  %v2825_v35 = vpop.f32.mrf.mxu0 }
 0x10d   : > { %v1514_v33 = vadd.f32 %v1510_v31, %v1502_v38  ;;  %v854_v58 = vmul.f32 %v4163_v34, %v4431_v8  ;;  %v585_v39 = vrot.slane %v575_v53, 1  ;;  %v868_v24 = vmul.f32 %v4167_v21, %v4599_v62 }
 0x10e   : > { %v597_v23 = vrot.slane %v578_v30, 2  ;;  %v871_v49 = vmul.f32 %v4171_v6, %v866_v1  ;;  %v856_v25 = vadd.f32 %v848_v13, %v837_v18  ;;  %v859_v5 = vadd.f32 %v851_v56, %v840_v29  ;;  %v2873_v20 = vpop.f32.mrf.mxu2 }
 0x10f   : > { %2911 = vmatmul.f32.gmra.mxu3 %v1514_v33  ;;  %v862_v0 = vadd.f32 %v854_v58, %v843_v51  ;;  %v874_v63 = vmul.f32 %v4175_v57, %v866_v1  ;;  %v586_v37 = vsel %vm352_vm0, %v583_v43, %v585_v39  ;;  %v2820_v21 = vadd.f32 %v4692_v9, %v4629_v54 }
 0x110   : > { %v598_v34 = vsel %vm365_vm1, %v595_v50, %v597_v23  ;;  %v2844_v6 = vadd.f32 %v4692_v9, %v4649_v11  ;;  %v590_v12 = vadd.f32 %v586_v37, %v572_v4  ;;  %v879_v8 = vadd.f32 %v871_v49, %v859_v5  ;;  %v2897_v40 = vpop.f32.mrf.mxu3 }
 0x111   : > { %v882_v62 = vadd.f32 %v874_v63, %v862_v0  ;;  %v876_v57 = vadd.f32 %v868_v24, %v856_v25  ;;  %2915 = vst [vmem:[%s3552_s26] sm:$0xff] %v2820_v21  ;;  %v2868_v3 = vadd.f32 %v4692_v9, %v4641_v55  ;;  %v2892_v2 = vadd.f32 %v4692_v9, %v4651_v26 }
 0x112   : > { %v2823_v43 = vadd.f32 %v4692_v9, %v2822_v16  ;;  %v602_v50 = vadd.f32 %v598_v34, %v590_v12  ;;  %v889_v54 = vrot.slane %v879_v8, 1  ;;  %2923 = vst [vmem:[%s3552_s26 + $0x40] sm:$0xff] %v2844_v6  ;;  %v2847_v11 = vadd.f32 %v4692_v9, %v2846_v14 }
 0x113   : > { %v901_v59 = vrot.slane %v882_v62, 2  ;;  %2931 = vst [vmem:[%s3552_s26 + $0x80] sm:$0xff] %v2868_v3  ;;  %v2871_v60 = vadd.f32 %v4692_v9, %v2870_v45  ;;  %v2895_v48 = vadd.f32 %v4692_v9, %v2894_v41  ;;  %v2826_v27 = vadd.f32 %v4692_v9, %v2825_v35  ;;  %v2849_v32 = vpop.f32.mrf.mxu1 }
 0x114   : > { %2839 = vmatmul.f32.gmra.mxu0 %v602_v50  ;;  %v890_v55 = vsel %vm352_vm0, %v887_v17, %v889_v54  ;;  %2939 = vst [vmem:[%s3552_s26 + $0xc0] sm:$0xff] %v2892_v2  ;;  %v2850_v44 = vadd.f32 %v4692_v9, %v2849_v32  ;;  %v2898_v28 = vadd.f32 %v4692_v9, %v2897_v40 }
 0x115   : > { %v902_v26 = vsel %vm365_vm1, %v899_v42, %v901_v59  ;;  %v894_v61 = vadd.f32 %v890_v55, %v876_v57  ;;  %2916 = vst [vmem:[%s3552_s26 + $0x8] sm:$0xff] %v2823_v43  ;;  %v2874_v42 = vadd.f32 %v4692_v9, %v2873_v20 }
 0x116   : > { %2924 = vst [vmem:[%s3552_s26 + $0x48] sm:$0xff] %v2847_v11 }
 0x117   : > { %v906_v17 = vadd.f32 %v902_v26, %v894_v61  ;;  %2932 = vst [vmem:[%s3552_s26 + $0x88] sm:$0xff] %v2871_v60 }
 0x118   : > { %2940 = vst [vmem:[%s3552_s26 + $0xc8] sm:$0xff] %v2895_v48 }
 0x119   : > { %2863 = vmatmul.f32.gmra.mxu1 %v906_v17  ;;  %2917 = vst [vmem:[%s3552_s26 + $0x10] sm:$0xff] %v2826_v27 }
 0x11a   : > { %2925 = vst [vmem:[%s3552_s26 + $0x50] sm:$0xff] %v2850_v44 }
 0x11b   : > { %2933 = vst [vmem:[%s3552_s26 + $0x90] sm:$0xff] %v2874_v42 }
 0x11c   : > { %2941 = vst [vmem:[%s3552_s26 + $0xd0] sm:$0xff] %v2898_v28 }
 0x120   : > { %v2876_v22 = vpop.f32.mrf.mxu2 }
 0x121   : > { %v2877_v10 = vadd.f32 %v4692_v9, %v2876_v22 }
 0x123   : > { %2934 = vst [vmem:[%s3552_s26 + $0x98] sm:$0xff] %v2877_v10 }
 0x126   : > { %v2828_v15 = vpop.f32.mrf.mxu0  ;;  %v2900_v7 = vpop.f32.mrf.mxu3 }
 0x127   : > { %v2829_v16 = vadd.f32 %v4692_v9, %v2828_v15  ;;  %v2901_v52 = vadd.f32 %v4692_v9, %v2900_v7 }
 0x129   : > { %2918 = vst [vmem:[%s3552_s26 + $0x18] sm:$0xff] %v2829_v16 }
 0x12a   : > { %2942 = vst [vmem:[%s3552_s26 + $0xd8] sm:$0xff] %v2901_v52  ;;  %v2852_v19 = vpop.f32.mrf.mxu1 }
 0x12b   : > { %v2853_v47 = vadd.f32 %v4692_v9, %v2852_v19 }
 0x12d   : > { %2926 = vst [vmem:[%s3552_s26 + $0x58] sm:$0xff] %v2853_v47 }
 0x138   : > { %v2879_v46 = vpop.f32.mrf.mxu2 }
 0x139   : > { %v2880_v38 = vadd.f32 %v4692_v9, %v2879_v46 }
 0x13b   : > { %2935 = vst [vmem:[%s3552_s26 + $0xa0] sm:$0xff] %v2880_v38 }
 0x140   : > { %v2903_v31 = vpop.f32.mrf.mxu3 }
 0x141   : > { %v2904_v4 = vadd.f32 %v4692_v9, %v2903_v31 }
 0x142   : > { %v2831_v36 = vpop.f32.mrf.mxu0 }
 0x143   : > { %v2832_v18 = vadd.f32 %v4692_v9, %v2831_v36  ;;  %2943 = vst [vmem:[%s3552_s26 + $0xe0] sm:$0xff] %v2904_v4 }
 0x145   : > { %2919 = vst [vmem:[%s3552_s26 + $0x20] sm:$0xff] %v2832_v18 }
 0x14b   : > { %v2855_v1 = vpop.f32.mrf.mxu1 }
 0x14c   : > { %v2856_v45 = vadd.f32 %v4692_v9, %v2855_v1 }
 0x14e   : > { %2927 = vst [vmem:[%s3552_s26 + $0x60] sm:$0xff] %v2856_v45 }
 0x156   : > { %v2882_v53 = vpop.f32.mrf.mxu2 }
 0x157   : > { %v2883_v30 = vadd.f32 %v4692_v9, %v2882_v53 }
 0x159   : > { %2936 = vst [vmem:[%s3552_s26 + $0xa8] sm:$0xff] %v2883_v30 }
 0x15c   : > { %v2906_v51 = vpop.f32.mrf.mxu3 }
 0x15d   : > { %v2834_v29 = vpop.f32.mrf.mxu0  ;;  %v2907_v41 = vadd.f32 %v4692_v9, %v2906_v51 }
 0x15e   : > { %v2835_v14 = vadd.f32 %v4692_v9, %v2834_v29 }
 0x15f   : > { %2944 = vst [vmem:[%s3552_s26 + $0xe8] sm:$0xff] %v2907_v41 }
 0x160   : > { %2920 = vst [vmem:[%s3552_s26 + $0x28] sm:$0xff] %v2835_v14  ;;  %v2858_v33 = vpop.f32.mrf.mxu1 }
 0x161   : > { %v2859_v13 = vadd.f32 %v4692_v9, %v2858_v33 }
 0x163   : > { %2928 = vst [vmem:[%s3552_s26 + $0x68] sm:$0xff] %v2859_v13 }
 0x16e   : > { %v2885_v56 = vpop.f32.mrf.mxu2 }
 0x16f   : > { %v2886_v58 = vadd.f32 %v4692_v9, %v2885_v56 }
 0x171   : > { %2937 = vst [vmem:[%s3552_s26 + $0xb0] sm:$0xff] %v2886_v58 }
 0x177   : > { %v2909_v39 = vpop.f32.mrf.mxu3 }
 0x178   : > { %v2910_v23 = vadd.f32 %v4692_v9, %v2909_v39 }
 0x179   : > { %v2837_v24 = vpop.f32.mrf.mxu0 }
 0x17a   : > { %v2838_v49 = vadd.f32 %v4692_v9, %v2837_v24  ;;  %2945 = vst [vmem:[%s3552_s26 + $0xf0] sm:$0xff] %v2910_v23 }
 0x17c   : > { %2921 = vst [vmem:[%s3552_s26 + $0x30] sm:$0xff] %v2838_v49 }
 0x181   : > { %v2861_v25 = vpop.f32.mrf.mxu1 }
 0x182   : > { %v2862_v5 = vadd.f32 %v4692_v9, %v2861_v25 }
 0x184   : > { %2929 = vst [vmem:[%s3552_s26 + $0x70] sm:$0xff] %v2862_v5 }
 0x18d   : > { %v2888_v0 = vpop.f32.mrf.mxu2 }
 0x18e   : > { %v2889_v63 = vadd.f32 %v4692_v9, %v2888_v0 }
 0x190   : > { %2938 = vst [vmem:[%s3552_s26 + $0xb8] sm:$0xff] %v2889_v63 }
 0x191   : > { %v2840_v37 = vpop.f32.mrf.mxu0 }
 0x192   : > { %v2912_v34 = vpop.f32.mrf.mxu3  ;;  %v2841_v21 = vadd.f32 %v4692_v9, %v2840_v37 }
 0x193   : > { %v2913_v6 = vadd.f32 %v4692_v9, %v2912_v34 }
 0x194   : > { %2922 = vst [vmem:[%s3552_s26 + $0x38] sm:$0xff] %v2841_v21 }
 0x195   : > { %2946 = vst [vmem:[%s3552_s26 + $0xf8] sm:$0xff] %v2913_v6 }
 0x196   : > { %v2864_v12 = vpop.f32.mrf.mxu1 }
 0x197   : > { %v2865_v8 = vadd.f32 %v4692_v9, %v2864_v12 }
 0x199   : > { %2930 = vst [vmem:[%s3552_s26 + $0x78] sm:$0xff] %v2865_v8 }
 0x19a   : > { %3361 = shalt.err (!%p3358_p13)
}
 0x19b   : > { %s3429_s24 = smov 128   ;;  %s3430_s26 = smov 8  }
 0x19c   : > { %3146 = dma.vmem_to_hbm [thread:$0]  (%p3496_p4), %s2964_s10, 4096, %s2966_s11, %s2948_s18, %s3429_s24, %s3429_s24, %s3430_s26  }
 0x19d PF: > { %p3163_p0 = scmp.ge.s32.totalorder %s3422_s20, 2  ;;  %s2980_s5 = sand.u32 1, %s3402_s15  }
 0x19e   : > { %s2981_s6 = scalar_lea.sflag [#allocation7], %s2980_s5 }
 0x19f   : > { %p3156_p1 = pnand %p3163_p0, %p3503_p8 }
 0x1a1   : > { %p3157_p2 = pneg %p3156_p1 }
 0x1a3   : > { %3397 = dma.done.wait (%p3157_p2), %s2981_s6, 4096  }
 0x1a4   : > { %3399 = vsyncadd (%p3157_p2), %s2981_s6, 4294963200  ;;  %s19_s20 = sadd.s32 1, %s3422_s20   ;;  %s4882_s15 = smov %s3406_s16 }
 0x1a5   : > { %p16_p3 = scmp.ge.s32.totalorder %s19_s20, 4   ;;  %s4883_s16 = smov %s3410_s17 }
 0x1a6   : > { %s4884_s17 = smov %s3509_s28  ;;  %s4885_s18 = smov %s3418_s19 }
 0x1a7   : > { %s4886_s19 = smov %s4888_s23  ;;  %18 = sbr.rel (!%p16_p3) target bundleno = 6 (0x6), region = 138 }
 0x1ac   :  { %2987 = vsyncpa [#allocation6], 1 }
 0x1ad   :  { %2989 = vsyncpa [#allocation6 + $0x1], 1 }
 0x1ae   :  { %2990 = vsyncpa [#allocation9], 1 }
 0x1af   :  { %2991 = vsyncpa [#allocation7], 1 }
 0x1b0   :  { %2993 = vsyncpa [#allocation7 + $0x1], 1 }
 0x1b1   :  { %2994 = vsyncmov [#allocation3] }
 0x1b4   :  { %s2995_s25 = vpop.sfrf %2994 }
 0x1b5   :  { %p3087_p4 = scmp.ne.s32.totalorder %s2995_s25, 0 }
 0x1b7   :  { %2999 = shalt.err (%p3087_p4)  }
 0x1b8   :  { %3001 = vsyncmov [#allocation3 + $0x1] }
 0x1bb   :  { %s3002_s27 = vpop.sfrf %3001 }
 0x1bc   :  { %p3088_p8 = scmp.ne.s32.totalorder %s3002_s27, 0 }
 0x1be   :  { %3006 = shalt.err (%p3088_p8)  }

</bundles_post_ra>
